<compile_context>
chip_gen: v7x
topology: tpu7x:2x2x1
jax: 0.10.0
libtpu: 0.0.40
codegen_flags: <defaults>
</compile_context>

<pallas_src>
from functools import partial

import numpy as np
import jax
import jax.numpy as jnp
from jax.experimental import pallas as pl
from jax.experimental.pallas import tpu as pltpu

KERNEL_SIZE = 15
SIGMA = 3.0


def gaussian_taps_1d(kernel_size: int, sigma: float):
    """Matches kornia get_gaussian_kernel1d (float32, L1-normalized)."""
    x = np.arange(kernel_size, dtype=np.float32) - kernel_size // 2
    if kernel_size % 2 == 0:
        x = x + np.float32(0.5)
    g = np.exp(-(x * x) / np.float32(2.0 * sigma * sigma))
    g = g / g.sum()
    return [float(v) for v in g]


def _round_up(n: int, m: int) -> int:
    return ((n + m - 1) // m) * m


def _make_blur_kernel(nbc: int, h: int, w: int, taps, voff: int):
    """Kernel body for one grid step of `nbc` (b, c) planes.

    x_ref : (nbc, h, w)                input planes
    o_ref : (nbc, h, w)                blurred output
    vbuf  : (nbc, h + voff + half, w)  row-reflected planes (input dtype)
    hbuf  : (nbc, h, w + 2*half)       column-reflected fp32 vertical result
    """
    half = len(taps) // 2
    center = taps[half]

    def kernel(x_ref, o_ref, vbuf, hbuf):
        # ---- assemble row-reflected halo in VMEM (edge-exclusive reflect) ----
        vbuf[:, voff:voff + h, :] = x_ref[...]                       # aligned bulk copy
        for d in range(1, half + 1):                                 # statically unrolled
            # padded row (voff - d) mirrors original row d
            vbuf[:, voff - d:voff - d + 1, :] = x_ref[:, d:d + 1, :]
            # padded row (voff + h - 1 + d) mirrors original row h - 1 - d
            vbuf[:, voff + h - 1 + d:voff + h + d, :] = x_ref[:, h - 1 - d:h - d, :]

        # ---- vertical separable pass (sublane-shifted ref reads, fp32 acc) ----
        acc = center * vbuf[:, voff:voff + h, :].astype(jnp.float32)
        for d in range(1, half + 1):                                 # symmetric taps
            wgt = taps[half - d]
            lo = vbuf[:, voff - d:voff - d + h, :].astype(jnp.float32)
            hi = vbuf[:, voff + d:voff + d + h, :].astype(jnp.float32)
            acc = acc + wgt * (lo + hi)

        # ---- column-reflected halo for the fp32 intermediate (VMEM scratch) ----
        hbuf[:, :, half:half + w] = acc
        for d in range(1, half + 1):
            # padded col (half - d) mirrors original col d
            hbuf[:, :, half - d:half - d + 1] = acc[:, :, d:d + 1]
            # padded col (half + w - 1 + d) mirrors original col w - 1 - d
            hbuf[:, :, half + w - 1 + d:half + w + d] = acc[:, :, w - 1 - d:w - d]

        # ---- horizontal separable pass (lane-shifted reads from scratch ref) ----
        out = center * hbuf[:, :, half:half + w]
        for d in range(1, half + 1):                                 # symmetric taps
            wgt = taps[half - d]
            left = hbuf[:, :, half - d:half - d + w]
            right = hbuf[:, :, half + d:half + d + w]
            out = out + wgt * (left + right)
        o_ref[...] = out.astype(o_ref.dtype)

    return kernel


@partial(jax.jit, static_argnames=("kernel_size", "sigma"))
def gaussian_blur2d(x, kernel_size: int = KERNEL_SIZE, sigma: float = SIGMA):
    """Equivalent of GaussianBlur2d((k, k), (sigma, sigma), 'reflect')."""
    assert kernel_size % 2 == 1
    b, c, h, w = x.shape
    half = kernel_size // 2
    if h <= half or w <= half:
        raise ValueError("reflect padding requires H > k//2 and W > k//2")
    taps = gaussian_taps_1d(kernel_size, sigma)

    bc = b * c
    xr = x.reshape(bc, h, w)        # metadata-only; no HBM copy

    # Planes per grid step: largest divisor of bc with <= ~1 MiB (fp32) input.
    target_elems = 256 * 1024
    nbc_cap = max(1, target_elems // (h * w))
    nbc = 1
    for d in range(1, bc + 1):
        if bc % d == 0 and d <= nbc_cap:
            nbc = d

    # Sublane-aligned row offset for the reflected-plane scratch.
    voff = _round_up(half, 8)

    # Explicit VMEM budget: double-buffered in/out blocks + both scratches
    # (scratch shapes padded to the (8, 128) tile internally), with 2x margin.
    itemsize = jnp.dtype(x.dtype).itemsize
    blk_b = nbc * _round_up(h, 8) * _round_up(w, 128) * itemsize
    vbuf_b = nbc * _round_up(h + voff + half, 8) * _round_up(w, 128) * itemsize
    hbuf_b = nbc * _round_up(h, 8) * _round_up(w + 2 * half, 128) * 4
    need = 4 * blk_b + vbuf_b + hbuf_b
    vmem_limit = int(min(100 * 2 ** 20, max(2 * need, 16 * 2 ** 20)))

    kernel = _make_blur_kernel(nbc, h, w, taps, voff)
    out = pl.pallas_call(
        kernel,
        out_shape=jax.ShapeDtypeStruct((bc, h, w), x.dtype),
        grid=(bc // nbc,),
        in_specs=[pl.BlockSpec((nbc, h, w), lambda i: (i, 0, 0))],
        out_specs=pl.BlockSpec((nbc, h, w), lambda i: (i, 0, 0)),
        scratch_shapes=[
            pltpu.VMEM((nbc, h + voff + half, w), x.dtype),
            pltpu.VMEM((nbc, h, w + 2 * half), jnp.float32),
        ],
        compiler_params=pltpu.CompilerParams(
            dimension_semantics=("parallel",),
            vmem_limit_bytes=vmem_limit),
    )(xr)
    return out.reshape(b, c, h, w)  # metadata-only; no HBM copy


@partial(jax.jit, static_argnames=("kernel_size", "sigma"))
def reference_blur2d(x, kernel_size: int = KERNEL_SIZE, sigma: float = SIGMA):
    """Pure-JAX reference: dense 2D depthwise cross-correlation (fp32)."""
    b, c, h, w = x.shape
    half = kernel_size // 2
    taps = jnp.asarray(gaussian_taps_1d(kernel_size, sigma), dtype=jnp.float32)
    k2d = jnp.outer(taps, taps)
    xp = jnp.pad(x.astype(jnp.float32),
                 ((0, 0), (0, 0), (half, half), (half, half)), mode="reflect")
    out = jnp.zeros((b, c, h, w), jnp.float32)
    for i in range(kernel_size):
        for j in range(kernel_size):
            out = out + k2d[i, j] * xp[:, :, i:i + h, j:j + w]
    return out.astype(x.dtype)


if __name__ == "__main__":
    key = jax.random.PRNGKey(0)
    B, C, H, W = 2, 4, 16, 16
    x = jax.random.normal(key, (B, C, H, W), dtype=jnp.float32)

    y = jax.block_until_ready(gaussian_blur2d(x))
    assert y.shape == (B, C, H, W), y.shape

    y_ref = jax.block_until_ready(reference_blur2d(x))
    max_err = float(jnp.max(jnp.abs(y - y_ref)))
    assert max_err < 1e-4, f"max abs error {max_err}"

    print("KERNEL_OK")
</pallas_src>

<mosaic_0001>
module attributes {stable_mosaic.version = 11 : i64} {
  func.func @kernel(%arg0: i32, %arg1: memref<8x16x16xf32, #tpu.memory_space<vmem>>, %arg2: memref<8x16x16xf32, #tpu.memory_space<vmem>>, %arg3: memref<8x31x16xf32, #tpu.memory_space<vmem>>, %arg4: memref<8x16x30xf32, #tpu.memory_space<vmem>>) attributes {dimension_semantics = [#tpu.dimension_semantics<parallel>], iteration_bounds = array<i64: 1>, scalar_prefetch = 0 : i64, scratch_operands = 2 : i64, tpu.core_type = #tpu.core_type<tc>, window_params = [{transform_indices = @transform_0, window_bounds = array<i64: 8, 16, 16>}, {transform_indices = @transform_1, window_bounds = array<i64: 8, 16, 16>}]} {
    %c0 = arith.constant 0 : index
    %c0_0 = arith.constant 0 : index
    %c0_1 = arith.constant 0 : index
    %0 = vector.load %arg1[%c0, %c0_0, %c0_1] : memref<8x16x16xf32, #tpu.memory_space<vmem>>, vector<8x16x16xf32>
    %c0_2 = arith.constant 0 : index
    %c8 = arith.constant 8 : index
    %c0_3 = arith.constant 0 : index
    %1 = vector.load %arg3[%c0_2, %c8, %c0_3] : memref<8x31x16xf32, #tpu.memory_space<vmem>>, vector<8x16x16xf32>
    tpu.vector_store %arg3[%c0_2, %c8, %c0_3], %0 {strides = array<i32>} : memref<8x31x16xf32, #tpu.memory_space<vmem>>, vector<8x16x16xf32>,
    %c0_4 = arith.constant 0 : index
    %c1 = arith.constant 1 : index
    %c0_5 = arith.constant 0 : index
    %2 = vector.load %arg1[%c0_4, %c1, %c0_5] : memref<8x16x16xf32, #tpu.memory_space<vmem>>, vector<8x1x16xf32>
    %c0_6 = arith.constant 0 : index
    %c7 = arith.constant 7 : index
    %c0_7 = arith.constant 0 : index
    %3 = vector.load %arg3[%c0_6, %c7, %c0_7] : memref<8x31x16xf32, #tpu.memory_space<vmem>>, vector<8x1x16xf32>
    tpu.vector_store %arg3[%c0_6, %c7, %c0_7], %2 {strides = array<i32>} : memref<8x31x16xf32, #tpu.memory_space<vmem>>, vector<8x1x16xf32>,
    %c0_8 = arith.constant 0 : index
    %c14 = arith.constant 14 : index
    %c0_9 = arith.constant 0 : index
    %4 = vector.load %arg1[%c0_8, %c14, %c0_9] : memref<8x16x16xf32, #tpu.memory_space<vmem>>, vector<8x1x16xf32>
    %c0_10 = arith.constant 0 : index
    %c24 = arith.constant 24 : index
    %c0_11 = arith.constant 0 : index
    %5 = vector.load %arg3[%c0_10, %c24, %c0_11] : memref<8x31x16xf32, #tpu.memory_space<vmem>>, vector<8x1x16xf32>
    tpu.vector_store %arg3[%c0_10, %c24, %c0_11], %4 {strides = array<i32>} : memref<8x31x16xf32, #tpu.memory_space<vmem>>, vector<8x1x16xf32>,
    %c0_12 = arith.constant 0 : index
    %c2 = arith.constant 2 : index
    %c0_13 = arith.constant 0 : index
    %6 = vector.load %arg1[%c0_12, %c2, %c0_13] : memref<8x16x16xf32, #tpu.memory_space<vmem>>, vector<8x1x16xf32>
    %c0_14 = arith.constant 0 : index
    %c6 = arith.constant 6 : index
    %c0_15 = arith.constant 0 : index
    %7 = vector.load %arg3[%c0_14, %c6, %c0_15] : memref<8x31x16xf32, #tpu.memory_space<vmem>>, vector<8x1x16xf32>
    tpu.vector_store %arg3[%c0_14, %c6, %c0_15], %6 {strides = array<i32>} : memref<8x31x16xf32, #tpu.memory_space<vmem>>, vector<8x1x16xf32>,
    %c0_16 = arith.constant 0 : index
    %c13 = arith.constant 13 : index
    %c0_17 = arith.constant 0 : index
    %8 = vector.load %arg1[%c0_16, %c13, %c0_17] : memref<8x16x16xf32, #tpu.memory_space<vmem>>, vector<8x1x16xf32>
    %c0_18 = arith.constant 0 : index
    %c25 = arith.constant 25 : index
    %c0_19 = arith.constant 0 : index
    %9 = vector.load %arg3[%c0_18, %c25, %c0_19] : memref<8x31x16xf32, #tpu.memory_space<vmem>>, vector<8x1x16xf32>
    tpu.vector_store %arg3[%c0_18, %c25, %c0_19], %8 {strides = array<i32>} : memref<8x31x16xf32, #tpu.memory_space<vmem>>, vector<8x1x16xf32>,
    %c0_20 = arith.constant 0 : index
    %c3 = arith.constant 3 : index
    %c0_21 = arith.constant 0 : index
    %10 = vector.load %arg1[%c0_20, %c3, %c0_21] : memref<8x16x16xf32, #tpu.memory_space<vmem>>, vector<8x1x16xf32>
    %c0_22 = arith.constant 0 : index
    %c5 = arith.constant 5 : index
    %c0_23 = arith.constant 0 : index
    %11 = vector.load %arg3[%c0_22, %c5, %c0_23] : memref<8x31x16xf32, #tpu.memory_space<vmem>>, vector<8x1x16xf32>
    tpu.vector_store %arg3[%c0_22, %c5, %c0_23], %10 {strides = array<i32>} : memref<8x31x16xf32, #tpu.memory_space<vmem>>, vector<8x1x16xf32>,
    %c0_24 = arith.constant 0 : index
    %c12 = arith.constant 12 : index
    %c0_25 = arith.constant 0 : index
    %12 = vector.load %arg1[%c0_24, %c12, %c0_25] : memref<8x16x16xf32, #tpu.memory_space<vmem>>, vector<8x1x16xf32>
    %c0_26 = arith.constant 0 : index
    %c26 = arith.constant 26 : index
    %c0_27 = arith.constant 0 : index
    %13 = vector.load %arg3[%c0_26, %c26, %c0_27] : memref<8x31x16xf32, #tpu.memory_space<vmem>>, vector<8x1x16xf32>
    tpu.vector_store %arg3[%c0_26, %c26, %c0_27], %12 {strides = array<i32>} : memref<8x31x16xf32, #tpu.memory_space<vmem>>, vector<8x1x16xf32>,
    %c0_28 = arith.constant 0 : index
    %c4 = arith.constant 4 : index
    %c0_29 = arith.constant 0 : index
    %14 = vector.load %arg1[%c0_28, %c4, %c0_29] : memref<8x16x16xf32, #tpu.memory_space<vmem>>, vector<8x1x16xf32>
    %c0_30 = arith.constant 0 : index
    %c4_31 = arith.constant 4 : index
    %c0_32 = arith.constant 0 : index
    %15 = vector.load %arg3[%c0_30, %c4_31, %c0_32] : memref<8x31x16xf32, #tpu.memory_space<vmem>>, vector<8x1x16xf32>
    tpu.vector_store %arg3[%c0_30, %c4_31, %c0_32], %14 {strides = array<i32>} : memref<8x31x16xf32, #tpu.memory_space<vmem>>, vector<8x1x16xf32>,
    %c0_33 = arith.constant 0 : index
    %c11 = arith.constant 11 : index
    %c0_34 = arith.constant 0 : index
    %16 = vector.load %arg1[%c0_33, %c11, %c0_34] : memref<8x16x16xf32, #tpu.memory_space<vmem>>, vector<8x1x16xf32>
    %c0_35 = arith.constant 0 : index
    %c27 = arith.constant 27 : index
    %c0_36 = arith.constant 0 : index
    %17 = vector.load %arg3[%c0_35, %c27, %c0_36] : memref<8x31x16xf32, #tpu.memory_space<vmem>>, vector<8x1x16xf32>
    tpu.vector_store %arg3[%c0_35, %c27, %c0_36], %16 {strides = array<i32>} : memref<8x31x16xf32, #tpu.memory_space<vmem>>, vector<8x1x16xf32>,
    %c0_37 = arith.constant 0 : index
    %c5_38 = arith.constant 5 : index
    %c0_39 = arith.constant 0 : index
    %18 = vector.load %arg1[%c0_37, %c5_38, %c0_39] : memref<8x16x16xf32, #tpu.memory_space<vmem>>, vector<8x1x16xf32>
    %c0_40 = arith.constant 0 : index
    %c3_41 = arith.constant 3 : index
    %c0_42 = arith.constant 0 : index
    %19 = vector.load %arg3[%c0_40, %c3_41, %c0_42] : memref<8x31x16xf32, #tpu.memory_space<vmem>>, vector<8x1x16xf32>
    tpu.vector_store %arg3[%c0_40, %c3_41, %c0_42], %18 {strides = array<i32>} : memref<8x31x16xf32, #tpu.memory_space<vmem>>, vector<8x1x16xf32>,
    %c0_43 = arith.constant 0 : index
    %c10 = arith.constant 10 : index
    %c0_44 = arith.constant 0 : index
    %20 = vector.load %arg1[%c0_43, %c10, %c0_44] : memref<8x16x16xf32, #tpu.memory_space<vmem>>, vector<8x1x16xf32>
    %c0_45 = arith.constant 0 : index
    %c28 = arith.constant 28 : index
    %c0_46 = arith.constant 0 : index
    %21 = vector.load %arg3[%c0_45, %c28, %c0_46] : memref<8x31x16xf32, #tpu.memory_space<vmem>>, vector<8x1x16xf32>
    tpu.vector_store %arg3[%c0_45, %c28, %c0_46], %20 {strides = array<i32>} : memref<8x31x16xf32, #tpu.memory_space<vmem>>, vector<8x1x16xf32>,
    %c0_47 = arith.constant 0 : index
    %c6_48 = arith.constant 6 : index
    %c0_49 = arith.constant 0 : index
    %22 = vector.load %arg1[%c0_47, %c6_48, %c0_49] : memref<8x16x16xf32, #tpu.memory_space<vmem>>, vector<8x1x16xf32>
    %c0_50 = arith.constant 0 : index
    %c2_51 = arith.constant 2 : index
    %c0_52 = arith.constant 0 : index
    %23 = vector.load %arg3[%c0_50, %c2_51, %c0_52] : memref<8x31x16xf32, #tpu.memory_space<vmem>>, vector<8x1x16xf32>
    tpu.vector_store %arg3[%c0_50, %c2_51, %c0_52], %22 {strides = array<i32>} : memref<8x31x16xf32, #tpu.memory_space<vmem>>, vector<8x1x16xf32>,
    %c0_53 = arith.constant 0 : index
    %c9 = arith.constant 9 : index
    %c0_54 = arith.constant 0 : index
    %24 = vector.load %arg1[%c0_53, %c9, %c0_54] : memref<8x16x16xf32, #tpu.memory_space<vmem>>, vector<8x1x16xf32>
    %c0_55 = arith.constant 0 : index
    %c29 = arith.constant 29 : index
    %c0_56 = arith.constant 0 : index
    %25 = vector.load %arg3[%c0_55, %c29, %c0_56] : memref<8x31x16xf32, #tpu.memory_space<vmem>>, vector<8x1x16xf32>
    tpu.vector_store %arg3[%c0_55, %c29, %c0_56], %24 {strides = array<i32>} : memref<8x31x16xf32, #tpu.memory_space<vmem>>, vector<8x1x16xf32>,
    %c0_57 = arith.constant 0 : index
    %c7_58 = arith.constant 7 : index
    %c0_59 = arith.constant 0 : index
    %26 = vector.load %arg1[%c0_57, %c7_58, %c0_59] : memref<8x16x16xf32, #tpu.memory_space<vmem>>, vector<8x1x16xf32>
    %c0_60 = arith.constant 0 : index
    %c1_61 = arith.constant 1 : index
    %c0_62 = arith.constant 0 : index
    %27 = vector.load %arg3[%c0_60, %c1_61, %c0_62] : memref<8x31x16xf32, #tpu.memory_space<vmem>>, vector<8x1x16xf32>
    tpu.vector_store %arg3[%c0_60, %c1_61, %c0_62], %26 {strides = array<i32>} : memref<8x31x16xf32, #tpu.memory_space<vmem>>, vector<8x1x16xf32>,
    %c0_63 = arith.constant 0 : index
    %c8_64 = arith.constant 8 : index
    %c0_65 = arith.constant 0 : index
    %28 = vector.load %arg1[%c0_63, %c8_64, %c0_65] : memref<8x16x16xf32, #tpu.memory_space<vmem>>, vector<8x1x16xf32>
    %c0_66 = arith.constant 0 : index
    %c30 = arith.constant 30 : index
    %c0_67 = arith.constant 0 : index
    %29 = vector.load %arg3[%c0_66, %c30, %c0_67] : memref<8x31x16xf32, #tpu.memory_space<vmem>>, vector<8x1x16xf32>
    tpu.vector_store %arg3[%c0_66, %c30, %c0_67], %28 {strides = array<i32>} : memref<8x31x16xf32, #tpu.memory_space<vmem>>, vector<8x1x16xf32>,
    %c0_68 = arith.constant 0 : index
    %c8_69 = arith.constant 8 : index
    %c0_70 = arith.constant 0 : index
    %30 = vector.load %arg3[%c0_68, %c8_69, %c0_70] : memref<8x31x16xf32, #tpu.memory_space<vmem>>, vector<8x16x16xf32>
    %cst = arith.constant 0.134598345 : f32
    %31 = vector.broadcast %cst : f32 to vector<8x16x16xf32>
    %32 = arith.mulf %31, %30 : vector<8x16x16xf32>
    %c0_71 = arith.constant 0 : index
    %c7_72 = arith.constant 7 : index
    %c0_73 = arith.constant 0 : index
    %33 = vector.load %arg3[%c0_71, %c7_72, %c0_73] : memref<8x31x16xf32, #tpu.memory_space<vmem>>, vector<8x16x16xf32>
    %c0_74 = arith.constant 0 : index
    %c9_75 = arith.constant 9 : index
    %c0_76 = arith.constant 0 : index
    %34 = vector.load %arg3[%c0_74, %c9_75, %c0_76] : memref<8x31x16xf32, #tpu.memory_space<vmem>>, vector<8x16x16xf32>
    %35 = arith.addf %33, %34 : vector<8x16x16xf32>
    %cst_77 = arith.constant 0.127324566 : f32
    %36 = vector.broadcast %cst_77 : f32 to vector<8x16x16xf32>
    %37 = arith.mulf %36, %35 : vector<8x16x16xf32>
    %38 = arith.addf %32, %37 : vector<8x16x16xf32>
    %c0_78 = arith.constant 0 : index
    %c6_79 = arith.constant 6 : index
    %c0_80 = arith.constant 0 : index
    %39 = vector.load %arg3[%c0_78, %c6_79, %c0_80] : memref<8x31x16xf32, #tpu.memory_space<vmem>>, vector<8x16x16xf32>
    %c0_81 = arith.constant 0 : index
    %c10_82 = arith.constant 10 : index
    %c0_83 = arith.constant 0 : index
    %40 = vector.load %arg3[%c0_81, %c10_82, %c0_83] : memref<8x31x16xf32, #tpu.memory_space<vmem>>, vector<8x16x16xf32>
    %41 = arith.addf %39, %40 : vector<8x16x16xf32>
    %cst_84 = arith.constant 0.107777923 : f32
    %42 = vector.broadcast %cst_84 : f32 to vector<8x16x16xf32>
    %43 = arith.mulf %42, %41 : vector<8x16x16xf32>
    %44 = arith.addf %38, %43 : vector<8x16x16xf32>
    %c0_85 = arith.constant 0 : index
    %c5_86 = arith.constant 5 : index
    %c0_87 = arith.constant 0 : index
    %45 = vector.load %arg3[%c0_85, %c5_86, %c0_87] : memref<8x31x16xf32, #tpu.memory_space<vmem>>, vector<8x16x16xf32>
    %c0_88 = arith.constant 0 : index
    %c11_89 = arith.constant 11 : index
    %c0_90 = arith.constant 0 : index
    %46 = vector.load %arg3[%c0_88, %c11_89, %c0_90] : memref<8x31x16xf32, #tpu.memory_space<vmem>>, vector<8x16x16xf32>
    %47 = arith.addf %45, %46 : vector<8x16x16xf32>
    %cst_91 = arith.constant 0.0816380233 : f32
    %48 = vector.broadcast %cst_91 : f32 to vector<8x16x16xf32>
    %49 = arith.mulf %48, %47 : vector<8x16x16xf32>
    %50 = arith.addf %44, %49 : vector<8x16x16xf32>
    %c0_92 = arith.constant 0 : index
    %c4_93 = arith.constant 4 : index
    %c0_94 = arith.constant 0 : index
    %51 = vector.load %arg3[%c0_92, %c4_93, %c0_94] : memref<8x31x16xf32, #tpu.memory_space<vmem>>, vector<8x16x16xf32>
    %c0_95 = arith.constant 0 : index
    %c12_96 = arith.constant 12 : index
    %c0_97 = arith.constant 0 : index
    %52 = vector.load %arg3[%c0_95, %c12_96, %c0_97] : memref<8x31x16xf32, #tpu.memory_space<vmem>>, vector<8x16x16xf32>
    %53 = arith.addf %51, %52 : vector<8x16x16xf32>
    %cst_98 = arith.constant 0.0553350337 : f32
    %54 = vector.broadcast %cst_98 : f32 to vector<8x16x16xf32>
    %55 = arith.mulf %54, %53 : vector<8x16x16xf32>
    %56 = arith.addf %50, %55 : vector<8x16x16xf32>
    %c0_99 = arith.constant 0 : index
    %c3_100 = arith.constant 3 : index
    %c0_101 = arith.constant 0 : index
    %57 = vector.load %arg3[%c0_99, %c3_100, %c0_101] : memref<8x31x16xf32, #tpu.memory_space<vmem>>, vector<8x16x16xf32>
    %c0_102 = arith.constant 0 : index
    %c13_103 = arith.constant 13 : index
    %c0_104 = arith.constant 0 : index
    %58 = vector.load %arg3[%c0_102, %c13_103, %c0_104] : memref<8x31x16xf32, #tpu.memory_space<vmem>>, vector<8x16x16xf32>
    %59 = arith.addf %57, %58 : vector<8x16x16xf32>
    %cst_105 = arith.constant 0.0335623957 : f32
    %60 = vector.broadcast %cst_105 : f32 to vector<8x16x16xf32>
    %61 = arith.mulf %60, %59 : vector<8x16x16xf32>
    %62 = arith.addf %56, %61 : vector<8x16x16xf32>
    %c0_106 = arith.constant 0 : index
    %c2_107 = arith.constant 2 : index
    %c0_108 = arith.constant 0 : index
    %63 = vector.load %arg3[%c0_106, %c2_107, %c0_108] : memref<8x31x16xf32, #tpu.memory_space<vmem>>, vector<8x16x16xf32>
    %c0_109 = arith.constant 0 : index
    %c14_110 = arith.constant 14 : index
    %c0_111 = arith.constant 0 : index
    %64 = vector.load %arg3[%c0_109, %c14_110, %c0_111] : memref<8x31x16xf32, #tpu.memory_space<vmem>>, vector<8x16x16xf32>
    %65 = arith.addf %63, %64 : vector<8x16x16xf32>
    %cst_112 = arith.constant 0.018215904 : f32
    %66 = vector.broadcast %cst_112 : f32 to vector<8x16x16xf32>
    %67 = arith.mulf %66, %65 : vector<8x16x16xf32>
    %68 = arith.addf %62, %67 : vector<8x16x16xf32>
    %c0_113 = arith.constant 0 : index
    %c1_114 = arith.constant 1 : index
    %c0_115 = arith.constant 0 : index
    %69 = vector.load %arg3[%c0_113, %c1_114, %c0_115] : memref<8x31x16xf32, #tpu.memory_space<vmem>>, vector<8x16x16xf32>
    %c0_116 = arith.constant 0 : index
    %c15 = arith.constant 15 : index
    %c0_117 = arith.constant 0 : index
    %70 = vector.load %arg3[%c0_116, %c15, %c0_117] : memref<8x31x16xf32, #tpu.memory_space<vmem>>, vector<8x16x16xf32>
    %71 = arith.addf %69, %70 : vector<8x16x16xf32>
    %cst_118 = arith.constant 0.00884694885 : f32
    %72 = vector.broadcast %cst_118 : f32 to vector<8x16x16xf32>
    %73 = arith.mulf %72, %71 : vector<8x16x16xf32>
    %74 = arith.addf %68, %73 : vector<8x16x16xf32>
    %c0_119 = arith.constant 0 : index
    %c0_120 = arith.constant 0 : index
    %c7_121 = arith.constant 7 : index
    %75 = vector.load %arg4[%c0_119, %c0_120, %c7_121] : memref<8x16x30xf32, #tpu.memory_space<vmem>>, vector<8x16x16xf32>
    tpu.vector_store %arg4[%c0_119, %c0_120, %c7_121], %74 {strides = array<i32>} : memref<8x16x30xf32, #tpu.memory_space<vmem>>, vector<8x16x16xf32>,
    %76 = vector.extract_strided_slice %74 {offsets = [0, 0, 1], sizes = [8, 16, 1], strides = [1, 1, 1]} : vector<8x16x16xf32> to vector<8x16x1xf32>
    %c0_122 = arith.constant 0 : index
    %c0_123 = arith.constant 0 : index
    %c6_124 = arith.constant 6 : index
    %77 = vector.load %arg4[%c0_122, %c0_123, %c6_124] : memref<8x16x30xf32, #tpu.memory_space<vmem>>, vector<8x16x1xf32>
    tpu.vector_store %arg4[%c0_122, %c0_123, %c6_124], %76 {strides = array<i32>} : memref<8x16x30xf32, #tpu.memory_space<vmem>>, vector<8x16x1xf32>,
    %78 = vector.extract_strided_slice %74 {offsets = [0, 0, 14], sizes = [8, 16, 1], strides = [1, 1, 1]} : vector<8x16x16xf32> to vector<8x16x1xf32>
    %c0_125 = arith.constant 0 : index
    %c0_126 = arith.constant 0 : index
    %c23 = arith.constant 23 : index
    %79 = vector.load %arg4[%c0_125, %c0_126, %c23] : memref<8x16x30xf32, #tpu.memory_space<vmem>>, vector<8x16x1xf32>
    tpu.vector_store %arg4[%c0_125, %c0_126, %c23], %78 {strides = array<i32>} : memref<8x16x30xf32, #tpu.memory_space<vmem>>, vector<8x16x1xf32>,
    %80 = vector.extract_strided_slice %74 {offsets = [0, 0, 2], sizes = [8, 16, 1], strides = [1, 1, 1]} : vector<8x16x16xf32> to vector<8x16x1xf32>
    %c0_127 = arith.constant 0 : index
    %c0_128 = arith.constant 0 : index
    %c5_129 = arith.constant 5 : index
    %81 = vector.load %arg4[%c0_127, %c0_128, %c5_129] : memref<8x16x30xf32, #tpu.memory_space<vmem>>, vector<8x16x1xf32>
    tpu.vector_store %arg4[%c0_127, %c0_128, %c5_129], %80 {strides = array<i32>} : memref<8x16x30xf32, #tpu.memory_space<vmem>>, vector<8x16x1xf32>,
    %82 = vector.extract_strided_slice %74 {offsets = [0, 0, 13], sizes = [8, 16, 1], strides = [1, 1, 1]} : vector<8x16x16xf32> to vector<8x16x1xf32>
    %c0_130 = arith.constant 0 : index
    %c0_131 = arith.constant 0 : index
    %c24_132 = arith.constant 24 : index
    %83 = vector.load %arg4[%c0_130, %c0_131, %c24_132] : memref<8x16x30xf32, #tpu.memory_space<vmem>>, vector<8x16x1xf32>
    tpu.vector_store %arg4[%c0_130, %c0_131, %c24_132], %82 {strides = array<i32>} : memref<8x16x30xf32, #tpu.memory_space<vmem>>, vector<8x16x1xf32>,
    %84 = vector.extract_strided_slice %74 {offsets = [0, 0, 3], sizes = [8, 16, 1], strides = [1, 1, 1]} : vector<8x16x16xf32> to vector<8x16x1xf32>
    %c0_133 = arith.constant 0 : index
    %c0_134 = arith.constant 0 : index
    %c4_135 = arith.constant 4 : index
    %85 = vector.load %arg4[%c0_133, %c0_134, %c4_135] : memref<8x16x30xf32, #tpu.memory_space<vmem>>, vector<8x16x1xf32>
    tpu.vector_store %arg4[%c0_133, %c0_134, %c4_135], %84 {strides = array<i32>} : memref<8x16x30xf32, #tpu.memory_space<vmem>>, vector<8x16x1xf32>,
    %86 = vector.extract_strided_slice %74 {offsets = [0, 0, 12], sizes = [8, 16, 1], strides = [1, 1, 1]} : vector<8x16x16xf32> to vector<8x16x1xf32>
    %c0_136 = arith.constant 0 : index
    %c0_137 = arith.constant 0 : index
    %c25_138 = arith.constant 25 : index
    %87 = vector.load %arg4[%c0_136, %c0_137, %c25_138] : memref<8x16x30xf32, #tpu.memory_space<vmem>>, vector<8x16x1xf32>
    tpu.vector_store %arg4[%c0_136, %c0_137, %c25_138], %86 {strides = array<i32>} : memref<8x16x30xf32, #tpu.memory_space<vmem>>, vector<8x16x1xf32>,
    %88 = vector.extract_strided_slice %74 {offsets = [0, 0, 4], sizes = [8, 16, 1], strides = [1, 1, 1]} : vector<8x16x16xf32> to vector<8x16x1xf32>
    %c0_139 = arith.constant 0 : index
    %c0_140 = arith.constant 0 : index
    %c3_141 = arith.constant 3 : index
    %89 = vector.load %arg4[%c0_139, %c0_140, %c3_141] : memref<8x16x30xf32, #tpu.memory_space<vmem>>, vector<8x16x1xf32>
    tpu.vector_store %arg4[%c0_139, %c0_140, %c3_141], %88 {strides = array<i32>} : memref<8x16x30xf32, #tpu.memory_space<vmem>>, vector<8x16x1xf32>,
    %90 = vector.extract_strided_slice %74 {offsets = [0, 0, 11], sizes = [8, 16, 1], strides = [1, 1, 1]} : vector<8x16x16xf32> to vector<8x16x1xf32>
    %c0_142 = arith.constant 0 : index
    %c0_143 = arith.constant 0 : index
    %c26_144 = arith.constant 26 : index
    %91 = vector.load %arg4[%c0_142, %c0_143, %c26_144] : memref<8x16x30xf32, #tpu.memory_space<vmem>>, vector<8x16x1xf32>
    tpu.vector_store %arg4[%c0_142, %c0_143, %c26_144], %90 {strides = array<i32>} : memref<8x16x30xf32, #tpu.memory_space<vmem>>, vector<8x16x1xf32>,
    %92 = vector.extract_strided_slice %74 {offsets = [0, 0, 5], sizes = [8, 16, 1], strides = [1, 1, 1]} : vector<8x16x16xf32> to vector<8x16x1xf32>
    %c0_145 = arith.constant 0 : index
    %c0_146 = arith.constant 0 : index
    %c2_147 = arith.constant 2 : index
    %93 = vector.load %arg4[%c0_145, %c0_146, %c2_147] : memref<8x16x30xf32, #tpu.memory_space<vmem>>, vector<8x16x1xf32>
    tpu.vector_store %arg4[%c0_145, %c0_146, %c2_147], %92 {strides = array<i32>} : memref<8x16x30xf32, #tpu.memory_space<vmem>>, vector<8x16x1xf32>,
    %94 = vector.extract_strided_slice %74 {offsets = [0, 0, 10], sizes = [8, 16, 1], strides = [1, 1, 1]} : vector<8x16x16xf32> to vector<8x16x1xf32>
    %c0_148 = arith.constant 0 : index
    %c0_149 = arith.constant 0 : index
    %c27_150 = arith.constant 27 : index
    %95 = vector.load %arg4[%c0_148, %c0_149, %c27_150] : memref<8x16x30xf32, #tpu.memory_space<vmem>>, vector<8x16x1xf32>
    tpu.vector_store %arg4[%c0_148, %c0_149, %c27_150], %94 {strides = array<i32>} : memref<8x16x30xf32, #tpu.memory_space<vmem>>, vector<8x16x1xf32>,
    %96 = vector.extract_strided_slice %74 {offsets = [0, 0, 6], sizes = [8, 16, 1], strides = [1, 1, 1]} : vector<8x16x16xf32> to vector<8x16x1xf32>
    %c0_151 = arith.constant 0 : index
    %c0_152 = arith.constant 0 : index
    %c1_153 = arith.constant 1 : index
    %97 = vector.load %arg4[%c0_151, %c0_152, %c1_153] : memref<8x16x30xf32, #tpu.memory_space<vmem>>, vector<8x16x1xf32>
    tpu.vector_store %arg4[%c0_151, %c0_152, %c1_153], %96 {strides = array<i32>} : memref<8x16x30xf32, #tpu.memory_space<vmem>>, vector<8x16x1xf32>,
    %98 = vector.extract_strided_slice %74 {offsets = [0, 0, 9], sizes = [8, 16, 1], strides = [1, 1, 1]} : vector<8x16x16xf32> to vector<8x16x1xf32>
    %c0_154 = arith.constant 0 : index
    %c0_155 = arith.constant 0 : index
    %c28_156 = arith.constant 28 : index
    %99 = vector.load %arg4[%c0_154, %c0_155, %c28_156] : memref<8x16x30xf32, #tpu.memory_space<vmem>>, vector<8x16x1xf32>
    tpu.vector_store %arg4[%c0_154, %c0_155, %c28_156], %98 {strides = array<i32>} : memref<8x16x30xf32, #tpu.memory_space<vmem>>, vector<8x16x1xf32>,
    %100 = vector.extract_strided_slice %74 {offsets = [0, 0, 7], sizes = [8, 16, 1], strides = [1, 1, 1]} : vector<8x16x16xf32> to vector<8x16x1xf32>
    %c0_157 = arith.constant 0 : index
    %c0_158 = arith.constant 0 : index
    %c0_159 = arith.constant 0 : index
    %101 = vector.load %arg4[%c0_157, %c0_158, %c0_159] : memref<8x16x30xf32, #tpu.memory_space<vmem>>, vector<8x16x1xf32>
    tpu.vector_store %arg4[%c0_157, %c0_158, %c0_159], %100 {strides = array<i32>} : memref<8x16x30xf32, #tpu.memory_space<vmem>>, vector<8x16x1xf32>,
    %102 = vector.extract_strided_slice %74 {offsets = [0, 0, 8], sizes = [8, 16, 1], strides = [1, 1, 1]} : vector<8x16x16xf32> to vector<8x16x1xf32>
    %c0_160 = arith.constant 0 : index
    %c0_161 = arith.constant 0 : index
    %c29_162 = arith.constant 29 : index
    %103 = vector.load %arg4[%c0_160, %c0_161, %c29_162] : memref<8x16x30xf32, #tpu.memory_space<vmem>>, vector<8x16x1xf32>
    tpu.vector_store %arg4[%c0_160, %c0_161, %c29_162], %102 {strides = array<i32>} : memref<8x16x30xf32, #tpu.memory_space<vmem>>, vector<8x16x1xf32>,
    %c0_163 = arith.constant 0 : index
    %c0_164 = arith.constant 0 : index
    %c7_165 = arith.constant 7 : index
    %104 = vector.load %arg4[%c0_163, %c0_164, %c7_165] : memref<8x16x30xf32, #tpu.memory_space<vmem>>, vector<8x16x16xf32>
    %cst_166 = arith.constant 0.134598345 : f32
    %105 = vector.broadcast %cst_166 : f32 to vector<8x16x16xf32>
    %106 = arith.mulf %105, %104 : vector<8x16x16xf32>
    %c0_167 = arith.constant 0 : index
    %c0_168 = arith.constant 0 : index
    %c6_169 = arith.constant 6 : index
    %107 = vector.load %arg4[%c0_167, %c0_168, %c6_169] : memref<8x16x30xf32, #tpu.memory_space<vmem>>, vector<8x16x16xf32>
    %c0_170 = arith.constant 0 : index
    %c0_171 = arith.constant 0 : index
    %c8_172 = arith.constant 8 : index
    %108 = vector.load %arg4[%c0_170, %c0_171, %c8_172] : memref<8x16x30xf32, #tpu.memory_space<vmem>>, vector<8x16x16xf32>
    %109 = arith.addf %107, %108 : vector<8x16x16xf32>
    %cst_173 = arith.constant 0.127324566 : f32
    %110 = vector.broadcast %cst_173 : f32 to vector<8x16x16xf32>
    %111 = arith.mulf %110, %109 : vector<8x16x16xf32>
    %112 = arith.addf %106, %111 : vector<8x16x16xf32>
    %c0_174 = arith.constant 0 : index
    %c0_175 = arith.constant 0 : index
    %c5_176 = arith.constant 5 : index
    %113 = vector.load %arg4[%c0_174, %c0_175, %c5_176] : memref<8x16x30xf32, #tpu.memory_space<vmem>>, vector<8x16x16xf32>
    %c0_177 = arith.constant 0 : index
    %c0_178 = arith.constant 0 : index
    %c9_179 = arith.constant 9 : index
    %114 = vector.load %arg4[%c0_177, %c0_178, %c9_179] : memref<8x16x30xf32, #tpu.memory_space<vmem>>, vector<8x16x16xf32>
    %115 = arith.addf %113, %114 : vector<8x16x16xf32>
    %cst_180 = arith.constant 0.107777923 : f32
    %116 = vector.broadcast %cst_180 : f32 to vector<8x16x16xf32>
    %117 = arith.mulf %116, %115 : vector<8x16x16xf32>
    %118 = arith.addf %112, %117 : vector<8x16x16xf32>
    %c0_181 = arith.constant 0 : index
    %c0_182 = arith.constant 0 : index
    %c4_183 = arith.constant 4 : index
    %119 = vector.load %arg4[%c0_181, %c0_182, %c4_183] : memref<8x16x30xf32, #tpu.memory_space<vmem>>, vector<8x16x16xf32>
    %c0_184 = arith.constant 0 : index
    %c0_185 = arith.constant 0 : index
    %c10_186 = arith.constant 10 : index
    %120 = vector.load %arg4[%c0_184, %c0_185, %c10_186] : memref<8x16x30xf32, #tpu.memory_space<vmem>>, vector<8x16x16xf32>
    %121 = arith.addf %119, %120 : vector<8x16x16xf32>
    %cst_187 = arith.constant 0.0816380233 : f32
    %122 = vector.broadcast %cst_187 : f32 to vector<8x16x16xf32>
    %123 = arith.mulf %122, %121 : vector<8x16x16xf32>
    %124 = arith.addf %118, %123 : vector<8x16x16xf32>
    %c0_188 = arith.constant 0 : index
    %c0_189 = arith.constant 0 : index
    %c3_190 = arith.constant 3 : index
    %125 = vector.load %arg4[%c0_188, %c0_189, %c3_190] : memref<8x16x30xf32, #tpu.memory_space<vmem>>, vector<8x16x16xf32>
    %c0_191 = arith.constant 0 : index
    %c0_192 = arith.constant 0 : index
    %c11_193 = arith.constant 11 : index
    %126 = vector.load %arg4[%c0_191, %c0_192, %c11_193] : memref<8x16x30xf32, #tpu.memory_space<vmem>>, vector<8x16x16xf32>
    %127 = arith.addf %125, %126 : vector<8x16x16xf32>
    %cst_194 = arith.constant 0.0553350337 : f32
    %128 = vector.broadcast %cst_194 : f32 to vector<8x16x16xf32>
    %129 = arith.mulf %128, %127 : vector<8x16x16xf32>
    %130 = arith.addf %124, %129 : vector<8x16x16xf32>
    %c0_195 = arith.constant 0 : index
    %c0_196 = arith.constant 0 : index
    %c2_197 = arith.constant 2 : index
    %131 = vector.load %arg4[%c0_195, %c0_196, %c2_197] : memref<8x16x30xf32, #tpu.memory_space<vmem>>, vector<8x16x16xf32>
    %c0_198 = arith.constant 0 : index
    %c0_199 = arith.constant 0 : index
    %c12_200 = arith.constant 12 : index
    %132 = vector.load %arg4[%c0_198, %c0_199, %c12_200] : memref<8x16x30xf32, #tpu.memory_space<vmem>>, vector<8x16x16xf32>
    %133 = arith.addf %131, %132 : vector<8x16x16xf32>
    %cst_201 = arith.constant 0.0335623957 : f32
    %134 = vector.broadcast %cst_201 : f32 to vector<8x16x16xf32>
    %135 = arith.mulf %134, %133 : vector<8x16x16xf32>
    %136 = arith.addf %130, %135 : vector<8x16x16xf32>
    %c0_202 = arith.constant 0 : index
    %c0_203 = arith.constant 0 : index
    %c1_204 = arith.constant 1 : index
    %137 = vector.load %arg4[%c0_202, %c0_203, %c1_204] : memref<8x16x30xf32, #tpu.memory_space<vmem>>, vector<8x16x16xf32>
    %c0_205 = arith.constant 0 : index
    %c0_206 = arith.constant 0 : index
    %c13_207 = arith.constant 13 : index
    %138 = vector.load %arg4[%c0_205, %c0_206, %c13_207] : memref<8x16x30xf32, #tpu.memory_space<vmem>>, vector<8x16x16xf32>
    %139 = arith.addf %137, %138 : vector<8x16x16xf32>
    %cst_208 = arith.constant 0.018215904 : f32
    %140 = vector.broadcast %cst_208 : f32 to vector<8x16x16xf32>
    %141 = arith.mulf %140, %139 : vector<8x16x16xf32>
    %142 = arith.addf %136, %141 : vector<8x16x16xf32>
    %c0_209 = arith.constant 0 : index
    %c0_210 = arith.constant 0 : index
    %c0_211 = arith.constant 0 : index
    %143 = vector.load %arg4[%c0_209, %c0_210, %c0_211] : memref<8x16x30xf32, #tpu.memory_space<vmem>>, vector<8x16x16xf32>
    %c0_212 = arith.constant 0 : index
    %c0_213 = arith.constant 0 : index
    %c14_214 = arith.constant 14 : index
    %144 = vector.load %arg4[%c0_212, %c0_213, %c14_214] : memref<8x16x30xf32, #tpu.memory_space<vmem>>, vector<8x16x16xf32>
    %145 = arith.addf %143, %144 : vector<8x16x16xf32>
    %cst_215 = arith.constant 0.00884694885 : f32
    %146 = vector.broadcast %cst_215 : f32 to vector<8x16x16xf32>
    %147 = arith.mulf %146, %145 : vector<8x16x16xf32>
    %148 = arith.addf %142, %147 : vector<8x16x16xf32>
    %c0_216 = arith.constant 0 : index
    %c0_217 = arith.constant 0 : index
    %c0_218 = arith.constant 0 : index
    %149 = vector.load %arg2[%c0_216, %c0_217, %c0_218] : memref<8x16x16xf32, #tpu.memory_space<vmem>>, vector<8x16x16xf32>
    tpu.vector_store %arg2[%c0_216, %c0_217, %c0_218], %148 {strides = array<i32>} : memref<8x16x16xf32, #tpu.memory_space<vmem>>, vector<8x16x16xf32>,
    return
  }
  func.func @transform_0(%arg0: i32) -> (i32, i32, i32) {
    %c0_i32 = arith.constant 0 : i32
    %c0_i32_0 = arith.constant 0 : i32
    %c0_i32_1 = arith.constant 0 : i32
    return %arg0, %c0_i32, %c0_i32_0 : i32, i32, i32
  }
  func.func @transform_1(%arg0: i32) -> (i32, i32, i32) {
    %c0_i32 = arith.constant 0 : i32
    %c0_i32_0 = arith.constant 0 : i32
    %c0_i32_1 = arith.constant 0 : i32
    return %arg0, %c0_i32, %c0_i32_0 : i32, i32, i32
  }
}

</mosaic_0001>

<bundles_post_ra>
// kernel: gaussian_blur2d.1
= control target key start
LH: loop header
LB: loop body
LE: loop exit
PB: predicated region body
PF: predicated region fallthrough
CT: control target
= control target key end

     0   :  { %6 = vsyncpa [#allocation5], 0  ;;  %s4912_s0 = inlined_call_operand.hbm [shape: f32[8,16,16], index: 0, kind: input, shape index: {}]   ;;  %s4913_s1 = inlined_call_operand.hbm [shape: f32[8,16,16], index: 1, kind: output, shape index: {}]  }
   0x1   :  { %7 = vsyncpa [#allocation6], 0  ;;  %s3166_s6 = smov [#allocation4]   ;;  %s3118_s10 = scalar_lea.hbm %s4912_s0, 2048 }
   0x2   :  { %s13_s7 = sshll.u32 %s3166_s6, 4  ;;  %p3119_p0 = scmp.ne.s32.totalorder %s4912_s0, %s3118_s10  ;;  %s14_s7 = int_to_ptr.vmem [resolvable:$true] %s13_s7 }
   0x3   :  { %p3122_p1 = scmp.lt.u32.totalorder %s3118_s10, %s4912_s0 }
   0x5   :  { %p3124_p2 = pnand %p3122_p1, %p3119_p0 }
   0x7   :  { %3127 = shalt.err (!%p3124_p2)
}
   0x8   :  { %s3128_s15 = scalar_lea.vmem %s14_s7, 2048  ;;  %p3133_p4 = scmp.lt.s32.totalorder %s14_s7, %s14_s7 }
   0x9   :  { %p3129_p3 = scmp.ne.s32.totalorder %s14_s7, %s3128_s15  ;;  %p3134_p5 = scmp.lt.s32.totalorder %s3128_s15, %s3128_s15 }
   0xb   :  { %p3135_p6 = por %p3134_p5, %p3133_p4 }
   0xd   :  { %p3136_p7 = pnand %p3135_p6, %p3129_p3 }
   0xf   :  { %3139 = shalt.err (!%p3136_p7)
}
  0x10   :  { %s3167_s16 = smov 128   ;;  %s3168_s17 = smov 8  }
  0x11   :  { %19 = dma.hbm_to_vmem [thread:$0]  %s4912_s0, 2048, %s14_s7, [#allocation5], %s3167_s16, %s3167_s16, %s3168_s17  }
  0x12   :  { %3162 = dma.done.wait [#allocation5], 2048  }
  0x13   :  { %3163 = vsyncadd [#allocation5], 4294965248  ;;  %vm39_vm0 = vcmask 130048   ;;  %vm64_vm1 = vcmask 122880   ;;  %v25_v0 = vld [vmem:[#allocation4 + $0x10] sm:$0xff]  ;;  %v26_v1 = vld [vmem:[#allocation4 + $0x18] sm:$0xff] }
  0x14   :  { %v57_v2 = vld [vmem:[#allocation4 + $0x11] sm:$0x1]  ;;  %42 = vst.msk [vmem:[#allocation2 + $0x28] sm:$0xff] %vm39_vm0, %v25_v0  ;;  %43 = vst.msk [vmem:[#allocation2 + $0x30] sm:$0xff] %vm39_vm0, %v26_v1  ;;  %v74_v3 = vld [vmem:[#allocation4 + $0x1e] sm:$0x1] }
  0x15   :  { %66 = vst.msk [vmem:[#allocation2 + $0x27] sm:$0x1] %vm64_vm1, %v57_v2  ;;  %v90_v4 = vld [vmem:[#allocation4 + $0x12] sm:$0x1]  ;;  %v106_v5 = vld [vmem:[#allocation4 + $0x1d] sm:$0x1] }
  0x16   :  { %82 = vst.msk [vmem:[#allocation2 + $0x38] sm:$0x1] %vm64_vm1, %v74_v3  ;;  %98 = vst.msk [vmem:[#allocation2 + $0x26] sm:$0x1] %vm64_vm1, %v90_v4  ;;  %v122_v6 = vld [vmem:[#allocation4 + $0x13] sm:$0x1] }
  0x17   :  { %114 = vst.msk [vmem:[#allocation2 + $0x39] sm:$0x1] %vm64_vm1, %v106_v5  ;;  %v138_v7 = vld [vmem:[#allocation4 + $0x1c] sm:$0x1]  ;;  %v154_v8 = vld [vmem:[#allocation4 + $0x14] sm:$0x1] }
  0x18   :  { %130 = vst.msk [vmem:[#allocation2 + $0x25] sm:$0x1] %vm64_vm1, %v122_v6  ;;  %146 = vst.msk [vmem:[#allocation2 + $0x3a] sm:$0x1] %vm64_vm1, %v138_v7  ;;  %v186_v9 = vld [vmem:[#allocation4 + $0x15] sm:$0x1] }
  0x19   :  { %162 = vst.msk [vmem:[#allocation2 + $0x24] sm:$0x1] %vm64_vm1, %v154_v8  ;;  %v218_v10 = vld [vmem:[#allocation4 + $0x16] sm:$0x1]  ;;  %v250_v11 = vld [vmem:[#allocation4 + $0x17] sm:$0x1] }
  0x1a   :  { %194 = vst.msk [vmem:[#allocation2 + $0x23] sm:$0x1] %vm64_vm1, %v186_v9  ;;  %226 = vst.msk [vmem:[#allocation2 + $0x22] sm:$0x1] %vm64_vm1, %v218_v10  ;;  %v23_v12 = vld [vmem:[#allocation4] sm:$0xff]  ;;  %v24_v13 = vld [vmem:[#allocation4 + $0x8] sm:$0xff] }
  0x1b   :  { %258 = vst.msk [vmem:[#allocation2 + $0x21] sm:$0x1] %vm64_vm1, %v250_v11  ;;  %v56_v14 = vld [vmem:[#allocation4 + $0x1] sm:$0x1]  ;;  %v73_v15 = vld [vmem:[#allocation4 + $0xe] sm:$0x1] }
  0x1c   :  { %40 = vst.msk [vmem:[#allocation2 + $0x8] sm:$0xff] %vm39_vm0, %v23_v12  ;;  %41 = vst.msk [vmem:[#allocation2 + $0x10] sm:$0xff] %vm39_vm0, %v24_v13  ;;  %v89_v16 = vld [vmem:[#allocation4 + $0x2] sm:$0x1]  ;;  %v105_v17 = vld [vmem:[#allocation4 + $0xd] sm:$0x1] }
  0x1d   :  { %65 = vst.msk [vmem:[#allocation2 + $0x7] sm:$0x1] %vm64_vm1, %v56_v14  ;;  %81 = vst.msk [vmem:[#allocation2 + $0x18] sm:$0x1] %vm64_vm1, %v73_v15  ;;  %v121_v18 = vld [vmem:[#allocation4 + $0x3] sm:$0x1] }
  0x1e   :  { %97 = vst.msk [vmem:[#allocation2 + $0x6] sm:$0x1] %vm64_vm1, %v89_v16  ;;  %113 = vst.msk [vmem:[#allocation2 + $0x19] sm:$0x1] %vm64_vm1, %v105_v17  ;;  %v137_v19 = vld [vmem:[#allocation4 + $0xc] sm:$0x1] }
  0x1f   :  { %v153_v20 = vld [vmem:[#allocation4 + $0x4] sm:$0x1]  ;;  %129 = vst.msk [vmem:[#allocation2 + $0x5] sm:$0x1] %vm64_vm1, %v121_v18  ;;  %145 = vst.msk [vmem:[#allocation2 + $0x1a] sm:$0x1] %vm64_vm1, %v137_v19 }
  0x20   :  { %161 = vst.msk [vmem:[#allocation2 + $0x4] sm:$0x1] %vm64_vm1, %v153_v20  ;;  %v185_v21 = vld [vmem:[#allocation4 + $0x5] sm:$0x1]  ;;  %v217_v22 = vld [vmem:[#allocation4 + $0x6] sm:$0x1] }
  0x21   :  { %v249_v23 = vld [vmem:[#allocation4 + $0x7] sm:$0x1]  ;;  %v283_v24 = vld [vmem:[#allocation2 + $0x28] sm:$0xff]  ;;  %193 = vst.msk [vmem:[#allocation2 + $0x3] sm:$0x1] %vm64_vm1, %v185_v21  ;;  %v284_v26 = vld [vmem:[#allocation2 + $0x30] sm:$0xff] }
  0x22   :  { %v315_v25 = vld [vmem:[#allocation2 + $0x27] sm:$0xff]  ;;  %225 = vst.msk [vmem:[#allocation2 + $0x2] sm:$0x1] %vm64_vm1, %v217_v22  ;;  %257 = vst.msk [vmem:[#allocation2 + $0x1] sm:$0x1] %vm64_vm1, %v249_v23  ;;  %v316_v27 = vld [vmem:[#allocation2 + $0x2f] sm:$0xff] }
  0x23   :  { %v3244_v28 = vld [vmem:[#allocation2 + $0x29] sm:$0xff]  ;;  %v299_v29 = vmul.f32 0.13459834, %v283_v24  ;;  %v332_v30 = vld [vmem:[#allocation2 + $0x31] sm:$0xff]  ;;  %v300_v44 = vmul.f32 0.13459834, %v284_v26 }
  0x24   :  { %v347_v31 = vadd.f32 %v3244_v28, %v315_v25  ;;  %v395_v32 = vld [vmem:[#allocation2 + $0x26] sm:$0xff]  ;;  %v396_v33 = vld [vmem:[#allocation2 + $0x2e] sm:$0xff]  ;;  %v348_v34 = vadd.f32 %v332_v30, %v316_v27  ;;  %s3169_s0 = smov 7   ;;  %vm881_vm2 = vcmask 187448   ;;  %s3170_s20 = smov 5   ;;  %vm946_vm3 = vcmask 56368  }
  0x25   :  { %v3247_v35 = vld [vmem:[#allocation2 + $0x2a] sm:$0xff]  ;;  %v412_v36 = vld [vmem:[#allocation2 + $0x32] sm:$0xff]  ;;  %v690_v54 = vld [vmem:[#allocation2 + $0x22] sm:$0xff]  ;;  %s3171_s21 = smov 9   ;;  %s3172_s22 = smov 3   ;;  %vm1011_vm4 = vcmask 195768  }
  0x26   :  { %v475_v37 = vld [vmem:[#allocation2 + $0x25] sm:$0xff]  ;;  %v363_v38 = vmul.f32 0.12732457, %v347_v31  ;;  %v427_v39 = vadd.f32 %v3247_v35, %v395_v32  ;;  %v428_v40 = vadd.f32 %v412_v36, %v396_v33  ;;  %v476_v41 = vld [vmem:[#allocation2 + $0x2d] sm:$0xff]  ;;  %v364_v50 = vmul.f32 0.12732457, %v348_v34 }
  0x27   :  { %v3250_v42 = vld [vmem:[#allocation2 + $0x2b] sm:$0xff]  ;;  %v492_v43 = vld [vmem:[#allocation2 + $0x33] sm:$0xff]  ;;  %v626_v49 = vld [vmem:[#allocation2 + $0x23] sm:$0xff]  ;;  %v707_v63 = vadd.f32 %v690_v54, %v396_v33  ;;  %s3173_s23 = smov 11   ;;  %s3174_s24 = smov 1   ;;  %vm1076_vm5 = vcmask 48168  }
  0x28   :  { %v507_v45 = vadd.f32 %v3250_v42, %v475_v37  ;;  %v508_v46 = vadd.f32 %v492_v43, %v476_v41  ;;  %v555_v47 = vld [vmem:[#allocation2 + $0x24] sm:$0xff]  ;;  %v3253_v48 = vld [vmem:[#allocation2 + $0x2c] sm:$0xff]  ;;  %v379_v51 = vadd.f32 %v363_v38, %v299_v29  ;;  %v443_v52 = vmul.f32 0.10777792, %v427_v39  ;;  %v234_v54 = vld [vmem:[#allocation4 + $0x19] sm:$0x1] }
  0x29   :  { %v579_v53 = vadd.f32 %v3253_v48, %v555_v47  ;;  %v754_v55 = vld [vmem:[#allocation2 + $0x21] sm:$0xff]  ;;  %v3256_v56 = vmul.f32 0.10777792, %v428_v40  ;;  %v643_v58 = vadd.f32 %v626_v49, %v476_v41  ;;  %v282_v60 = vld [vmem:[#allocation2 + $0x10] sm:$0xff]  ;;  %v723_v8 = vmul.f32 0.018215904, %v707_v63 }
  0x2a   :  { %v523_v57 = vmul.f32 0.08163802, %v507_v45  ;;  %v281_v59 = vld [vmem:[#allocation2 + $0x8] sm:$0xff]  ;;  %v459_v61 = vadd.f32 %v443_v52, %v379_v51  ;;  %v771_v0 = vadd.f32 %v754_v55, %v316_v27  ;;  %v3260_v4 = vmul.f32 0.08163802, %v508_v46  ;;  %v330_v10 = vld [vmem:[#allocation2 + $0x11] sm:$0xff] }
  0x2b   :  { %v595_v62 = vmul.f32 0.055335034, %v579_v53  ;;  %v313_v1 = vld [vmem:[#allocation2 + $0x7] sm:$0xff]  ;;  %v314_v2 = vld [vmem:[#allocation2 + $0xf] sm:$0xff]  ;;  %v659_v5 = vmul.f32 0.033562396, %v643_v58  ;;  %v380_v38 = vadd.f32 %v364_v50, %v300_v44 }
  0x2c   :  { %v3258_v3 = vld [vmem:[#allocation2 + $0x9] sm:$0xff]  ;;  %v297_v6 = vmul.f32 0.13459834, %v281_v59  ;;  %v539_v7 = vadd.f32 %v523_v57, %v459_v61  ;;  %v298_v9 = vmul.f32 0.13459834, %v282_v60  ;;  %v346_v14 = vadd.f32 %v330_v10, %v314_v2  ;;  %v410_v17 = vld [vmem:[#allocation2 + $0x12] sm:$0xff] }
  0x2d   :  { %v345_v11 = vadd.f32 %v3258_v3, %v313_v1  ;;  %v393_v12 = vld [vmem:[#allocation2 + $0x6] sm:$0xff]  ;;  %v787_v13 = vmul.f32 0.008846949, %v771_v0  ;;  %v394_v15 = vld [vmem:[#allocation2 + $0xe] sm:$0xff]  ;;  %v170_v45 = vld [vmem:[#allocation4 + $0x1b] sm:$0x1] }
  0x2e   :  { %v3263_v16 = vld [vmem:[#allocation2 + $0xa] sm:$0xff]  ;;  %v611_v18 = vadd.f32 %v595_v62, %v539_v7  ;;  %v426_v21 = vadd.f32 %v410_v17, %v394_v15  ;;  %v362_v25 = vmul.f32 0.12732457, %v346_v14  ;;  %v490_v26 = vld [vmem:[#allocation2 + $0x13] sm:$0xff]  ;;  %v689_v37 = vld [vmem:[#allocation2 + $0x2] sm:$0xff]  ;;  %s3175_s25 = smov 13  }
  0x2f   :  { %v361_v19 = vmul.f32 0.12732457, %v345_v11  ;;  %v425_v20 = vadd.f32 %v3263_v16, %v393_v12  ;;  %v473_v22 = vld [vmem:[#allocation2 + $0x5] sm:$0xff]  ;;  %v474_v23 = vld [vmem:[#allocation2 + $0xd] sm:$0xff]  ;;  %v705_v52 = vadd.f32 %v689_v37, %v394_v15  ;;  %178 = vst.msk [vmem:[#allocation2 + $0x3b] sm:$0x1] %vm64_vm1, %v170_v45 }
  0x30   :  { %v3266_v24 = vld [vmem:[#allocation2 + $0xb] sm:$0xff]  ;;  %v675_v31 = vadd.f32 %v659_v5, %v611_v18  ;;  %v442_v34 = vmul.f32 0.10777792, %v426_v21  ;;  %v625_v36 = vld [vmem:[#allocation2 + $0x3] sm:$0xff]  ;;  %v506_v39 = vadd.f32 %v490_v26, %v474_v23  ;;  %v202_v53 = vld [vmem:[#allocation4 + $0x1a] sm:$0x1]  ;;  %v378_v57 = vadd.f32 %v362_v25, %v298_v9 }
  0x31   :  { %v505_v27 = vadd.f32 %v3266_v24, %v473_v22  ;;  %v553_v29 = vld [vmem:[#allocation2 + $0x4] sm:$0xff]  ;;  %v3269_v30 = vld [vmem:[#allocation2 + $0xc] sm:$0xff]  ;;  %v377_v32 = vadd.f32 %v361_v19, %v297_v6  ;;  %v441_v33 = vmul.f32 0.10777792, %v425_v20  ;;  %v641_v51 = vadd.f32 %v625_v36, %v474_v23  ;;  %v266_v55 = vld [vmem:[#allocation4 + $0x18] sm:$0x1] }
  0x32   :  { %v577_v41 = vadd.f32 %v3269_v30, %v553_v29  ;;  %v753_v43 = vld [vmem:[#allocation2 + $0x1] sm:$0xff]  ;;  %v739_v47 = vadd.f32 %v723_v8, %v675_v31  ;;  %v522_v44 = vmul.f32 0.08163802, %v506_v39  ;;  %210 = vst.msk [vmem:[#allocation2 + $0x3c] sm:$0x1] %vm64_vm1, %v202_v53  ;;  %v460_v6 = vadd.f32 %v3256_v56, %v380_v38  ;;  %s3176_s26 = smov 127  }
  0x33   :  { %v521_v40 = vmul.f32 0.08163802, %v505_v27  ;;  %v27_v46 = vld [vmem:[#allocation4 + $0x20] sm:$0xff]  ;;  %v457_v49 = vadd.f32 %v441_v33, %v377_v32  ;;  %v769_v58 = vadd.f32 %v753_v43, %v314_v2  ;;  %242 = vst.msk [vmem:[#allocation2 + $0x3d] sm:$0x1] %vm64_vm1, %v234_v54  ;;  %v28_v8 = vld [vmem:[#allocation4 + $0x28] sm:$0xff]  ;;  %v458_v11 = vadd.f32 %v442_v34, %v378_v57 }
  0x34   :  { %44 = vst.msk [vmem:[#allocation2 + $0x48] sm:$0xff] %vm39_vm0, %v27_v46  ;;  %v593_v50 = vmul.f32 0.055335034, %v577_v41  ;;  %v169_v59 = vld [vmem:[#allocation4 + $0xb] sm:$0x1]  ;;  %v3277_v60 = vadd.f32 %v787_v13, %v739_v47  ;;  %45 = vst.msk [vmem:[#allocation2 + $0x50] sm:$0xff] %vm39_vm0, %v28_v8  ;;  %v540_v23 = vadd.f32 %v3260_v4, %v460_v6 }
  0x35   :  { %274 = vst.msk [vmem:[#allocation2 + $0x3e] sm:$0x1] %vm64_vm1, %v266_v55  ;;  %v537_v61 = vadd.f32 %v521_v40, %v457_v49  ;;  %v657_v62 = vmul.f32 0.033562396, %v641_v51  ;;  %v721_v63 = vmul.f32 0.018215904, %v705_v52  ;;  %v538_v33 = vadd.f32 %v522_v44, %v458_v11 }
  0x36   :  { %177 = vst.msk [vmem:[#allocation2 + $0x1b] sm:$0x1] %vm64_vm1, %v169_v59  ;;  %v201_v0 = vld [vmem:[#allocation4 + $0xa] sm:$0x1]  ;;  %v785_v1 = vmul.f32 0.008846949, %v769_v58  ;;  %837 = vrot.lane.b32.xlu1 %v3277_v60, %s3169_s0 }
  0x37   :  { %209 = vst.msk [vmem:[#allocation2 + $0x1c] sm:$0x1] %vm64_vm1, %v201_v0  ;;  %v233_v5 = vld [vmem:[#allocation4 + $0x9] sm:$0x1]  ;;  %v265_v2 = vld [vmem:[#allocation4 + $0x8] sm:$0x1]  ;;  %v609_v7 = vadd.f32 %v593_v50, %v537_v61 }
  0x38   :  { %241 = vst.msk [vmem:[#allocation2 + $0x1d] sm:$0x1] %vm64_vm1, %v233_v5  ;;  %273 = vst.msk [vmem:[#allocation2 + $0x1e] sm:$0x1] %vm64_vm1, %v265_v2  ;;  %v58_v9 = vld [vmem:[#allocation4 + $0x21] sm:$0x1] }
  0x39   :  { %v75_v10 = vld [vmem:[#allocation4 + $0x2e] sm:$0x1]  ;;  %67 = vst.msk [vmem:[#allocation2 + $0x47] sm:$0x1] %vm64_vm1, %v58_v9  ;;  %v91_v56 = vld [vmem:[#allocation4 + $0x22] sm:$0x1]  ;;  %v673_v14 = vadd.f32 %v657_v62, %v609_v7 }
  0x3a   :  { %83 = vst.msk [vmem:[#allocation2 + $0x58] sm:$0x1] %vm64_vm1, %v75_v10  ;;  %v107_v12 = vld [vmem:[#allocation4 + $0x2d] sm:$0x1]  ;;  %v123_v13 = vld [vmem:[#allocation4 + $0x23] sm:$0x1] }
  0x3b   :  { %99 = vst.msk [vmem:[#allocation2 + $0x46] sm:$0x1] %vm64_vm1, %v91_v56  ;;  %115 = vst.msk [vmem:[#allocation2 + $0x59] sm:$0x1] %vm64_vm1, %v107_v12  ;;  %v139_v15 = vld [vmem:[#allocation4 + $0x2c] sm:$0x1]  ;;  %v737_v22 = vadd.f32 %v721_v63, %v673_v14 }
  0x3c   :  { %131 = vst.msk [vmem:[#allocation2 + $0x45] sm:$0x1] %vm64_vm1, %v123_v13  ;;  %v171_v17 = vld [vmem:[#allocation4 + $0x2b] sm:$0x1]  ;;  %v203_v18 = vld [vmem:[#allocation4 + $0x2a] sm:$0x1] }
  0x3d   :  { %v570_v19 = vld [vmem:[#allocation2 + $0x34] sm:$0xff]  ;;  %147 = vst.msk [vmem:[#allocation2 + $0x5a] sm:$0x1] %vm64_vm1, %v139_v15  ;;  %179 = vst.msk [vmem:[#allocation2 + $0x5b] sm:$0x1] %vm64_vm1, %v171_v17  ;;  %v3301_v37 = vadd.f32 %v785_v1, %v737_v22  ;;  %v285_v40 = vld [vmem:[#allocation2 + $0x48] sm:$0xff] }
  0x3e   :  { %211 = vst.msk [vmem:[#allocation2 + $0x5c] sm:$0x1] %vm64_vm1, %v203_v18  ;;  %v235_v20 = vld [vmem:[#allocation4 + $0x29] sm:$0x1]  ;;  %v267_v21 = vld [vmem:[#allocation4 + $0x28] sm:$0x1]  ;;  %v580_v25 = vadd.f32 %v570_v19, %v3253_v48 }
  0x3f   :  { %v634_v26 = vld [vmem:[#allocation2 + $0x35] sm:$0xff]  ;;  %243 = vst.msk [vmem:[#allocation2 + $0x5d] sm:$0x1] %vm64_vm1, %v235_v20  ;;  %275 = vst.msk [vmem:[#allocation2 + $0x5e] sm:$0x1] %vm64_vm1, %v267_v21  ;;  %833 = vrot.lane.b32.xlu0 %v3301_v37, %s3169_s0  ;;  %v333_v50 = vld [vmem:[#allocation2 + $0x49] sm:$0xff] }
  0x40   :  { %v698_v27 = vld [vmem:[#allocation2 + $0x36] sm:$0xff]  ;;  %v644_v31 = vadd.f32 %v634_v26, %v3250_v42  ;;  %v155_v36 = vld [vmem:[#allocation4 + $0x24] sm:$0x1]  ;;  %v596_v38 = vmul.f32 0.055335034, %v580_v25  ;;  %v317_v54 = vld [vmem:[#allocation2 + $0x47] sm:$0xff] }
  0x41   :  { %v762_v29 = vld [vmem:[#allocation2 + $0x37] sm:$0xff]  ;;  %v708_v32 = vadd.f32 %v698_v27, %v3247_v35  ;;  %163 = vst.msk [vmem:[#allocation2 + $0x44] sm:$0x1] %vm64_vm1, %v155_v36  ;;  %v301_v53 = vmul.f32 0.13459834, %v285_v40  ;;  %v3312_v55 = vld [vmem:[#allocation2 + $0x4f] sm:$0xff]  ;;  %v349_v63 = vadd.f32 %v333_v50, %v317_v54 }
  0x42   :  { %v569_v34 = vld [vmem:[#allocation2 + $0x14] sm:$0xff]  ;;  %v772_v4 = vadd.f32 %v762_v29, %v3244_v28  ;;  %v660_v43 = vmul.f32 0.033562396, %v644_v31  ;;  %v612_v35 = vadd.f32 %v596_v38, %v540_v23  ;;  %v397_v59 = vld [vmem:[#allocation2 + $0x46] sm:$0xff]  ;;  %v187_v31 = vld [vmem:[#allocation4 + $0x25] sm:$0x1] }
  0x43   :  { %v578_v48 = vadd.f32 %v569_v34, %v3269_v30  ;;  %v633_v39 = vld [vmem:[#allocation2 + $0x15] sm:$0xff]  ;;  %v724_v45 = vmul.f32 0.018215904, %v708_v32  ;;  %v477_v8 = vld [vmem:[#allocation2 + $0x45] sm:$0xff]  ;;  %v3317_v9 = vld [vmem:[#allocation2 + $0x4d] sm:$0xff]  ;;  %vm1141_vm6 = vcmask 203968  }
  0x44   :  { %v29_v41 = vld [vmem:[#allocation4 + $0x30] sm:$0xff]  ;;  %v642_v42 = vadd.f32 %v633_v39, %v3266_v24  ;;  %v676_v24 = vadd.f32 %v660_v43, %v612_v35  ;;  %v788_v57 = vmul.f32 0.008846949, %v772_v4  ;;  %v365_v10 = vmul.f32 0.12732457, %v349_v63  ;;  %s3177_s27 = smov 15  }
  0x45   :  { %46 = vst.msk [vmem:[#allocation2 + $0x68] sm:$0xff] %vm39_vm0, %v29_v41  ;;  %v594_v46 = vmul.f32 0.055335034, %v578_v48  ;;  %v697_v47 = vld [vmem:[#allocation2 + $0x16] sm:$0xff]  ;;  %v3315_v1 = vld [vmem:[#allocation2 + $0x4e] sm:$0xff]  ;;  %vm1206_vm7 = vcmask 39968  }
  0x46   :  { %v761_v28 = vld [vmem:[#allocation2 + $0x17] sm:$0xff]  ;;  %v658_v30 = vmul.f32 0.033562396, %v642_v42  ;;  %v706_v51 = vadd.f32 %v697_v47, %v3263_v16  ;;  %v413_v16 = vld [vmem:[#allocation2 + $0x4a] sm:$0xff]  ;;  %v740_v5 = vadd.f32 %v724_v45, %v676_v24  ;;  %v381_v22 = vadd.f32 %v365_v10, %v301_v53  ;;  %195 = vst.msk [vmem:[#allocation2 + $0x43] sm:$0x1] %vm64_vm1, %v187_v31 }
  0x47   :  { %v286_v49 = vld [vmem:[#allocation2 + $0x50] sm:$0xff]  ;;  %v770_v52 = vadd.f32 %v761_v28, %v3258_v3  ;;  %v610_v44 = vadd.f32 %v594_v46, %v538_v33  ;;  %v429_v7 = vadd.f32 %v413_v16, %v397_v59  ;;  %v219_v38 = vld [vmem:[#allocation4 + $0x26] sm:$0x1]  ;;  %v251_v4 = vld [vmem:[#allocation4 + $0x27] sm:$0x1]  ;;  %s3178_s28 = smov 125  }
  0x48   :  { %v334_v58 = vld [vmem:[#allocation2 + $0x51] sm:$0xff]  ;;  %v722_v61 = vmul.f32 0.018215904, %v706_v51  ;;  %v302_v62 = vmul.f32 0.13459834, %v286_v49  ;;  %v3320_v14 = vadd.f32 %v788_v57, %v740_v5  ;;  %v557_v43 = vld [vmem:[#allocation2 + $0x44] sm:$0xff] }
  0x49   :  { %v350_v0 = vadd.f32 %v334_v58, %v3312_v55  ;;  %v674_v3 = vadd.f32 %v658_v30, %v610_v44  ;;  %v786_v2 = vmul.f32 0.008846949, %v770_v52  ;;  %v414_v6 = vld [vmem:[#allocation2 + $0x52] sm:$0xff]  ;;  %v445_v17 = vmul.f32 0.10777792, %v429_v7  ;;  %s3179_s29 = smov 17  }
  0x4a   :  { %v430_v56 = vadd.f32 %v414_v6, %v3315_v1  ;;  %v493_v12 = vld [vmem:[#allocation2 + $0x4b] sm:$0xff]  ;;  %v494_v13 = vld [vmem:[#allocation2 + $0x53] sm:$0xff]  ;;  %839 = vrot.lane.b32.xlu1 %v3320_v14, %s3169_s0  ;;  %227 = vst.msk [vmem:[#allocation2 + $0x42] sm:$0x1] %vm64_vm1, %v219_v38  ;;  %259 = vst.msk [vmem:[#allocation2 + $0x41] sm:$0x1] %vm64_vm1, %v251_v4 }
  0x4b   :  { %v366_v11 = vmul.f32 0.12732457, %v350_v0  ;;  %v738_v15 = vadd.f32 %v722_v61, %v674_v3  ;;  %v509_v18 = vadd.f32 %v493_v12, %v477_v8  ;;  %v558_v19 = vld [vmem:[#allocation2 + $0x4c] sm:$0xff]  ;;  %v571_v20 = vld [vmem:[#allocation2 + $0x54] sm:$0xff]  ;;  %v510_v26 = vadd.f32 %v494_v13, %v3317_v9  ;;  %v76_v47 = vld [vmem:[#allocation4 + $0x3e] sm:$0x1] }
  0x4c   :  { %v635_v21 = vld [vmem:[#allocation2 + $0x55] sm:$0xff]  ;;  %v446_v25 = vmul.f32 0.10777792, %v430_v56  ;;  %v582_v34 = vadd.f32 %v571_v20, %v558_v19  ;;  %v461_v48 = vadd.f32 %v445_v17, %v381_v22  ;;  %v59_v42 = vld [vmem:[#allocation4 + $0x31] sm:$0x1]  ;;  %v581_v46 = vadd.f32 %v558_v19, %v557_v43  ;;  %v287_v63 = vld [vmem:[#allocation2 + $0x68] sm:$0xff] }
  0x4d   :  { %v382_v23 = vadd.f32 %v366_v11, %v302_v62  ;;  %v699_v27 = vld [vmem:[#allocation2 + $0x56] sm:$0xff]  ;;  %v3325_v32 = vadd.f32 %v786_v2, %v738_v15  ;;  %v525_v33 = vmul.f32 0.08163802, %v509_v18  ;;  %v646_v36 = vadd.f32 %v635_v21, %v493_v12  ;;  %68 = vst.msk [vmem:[#allocation2 + $0x67] sm:$0x1] %vm64_vm1, %v59_v42  ;;  %v627_v5 = vld [vmem:[#allocation2 + $0x43] sm:$0xff] }
  0x4e   :  { %v763_v29 = vld [vmem:[#allocation2 + $0x57] sm:$0xff]  ;;  %v526_v40 = vmul.f32 0.08163802, %v510_v26  ;;  %v710_v41 = vadd.f32 %v699_v27, %v413_v16  ;;  %v598_v35 = vmul.f32 0.055335034, %v582_v34  ;;  %v31_v2 = vld [vmem:[#allocation4 + $0x40] sm:$0xff]  ;;  %v645_v7 = vadd.f32 %v627_v5, %v3317_v9 }
  0x4f   :  { %v462_v39 = vadd.f32 %v446_v25, %v382_v23  ;;  %v30_v45 = vld [vmem:[#allocation4 + $0x38] sm:$0xff]  ;;  %835 = vrot.lane.b32.xlu0 %v3325_v32, %s3169_s0  ;;  %v662_v49 = vmul.f32 0.033562396, %v646_v36  ;;  %v774_v30 = vadd.f32 %v763_v29, %v333_v50  ;;  %84 = vst.msk [vmem:[#allocation2 + $0x78] sm:$0x1] %vm64_vm1, %v76_v47  ;;  %v541_v54 = vadd.f32 %v525_v33, %v461_v48  ;;  %s3180_s30 = smov 123  }
  0x50   :  { %47 = vst.msk [vmem:[#allocation2 + $0x70] sm:$0xff] %vm39_vm0, %v30_v45  ;;  %v92_v51 = vld [vmem:[#allocation4 + $0x32] sm:$0x1]  ;;  %v108_v52 = vld [vmem:[#allocation4 + $0x3d] sm:$0x1]  ;;  %48 = vst.msk [vmem:[#allocation2 + $0x88] sm:$0xff] %vm39_vm0, %v31_v2 }
  0x51   :  { %v542_v28 = vadd.f32 %v526_v40, %v462_v39  ;;  %v726_v53 = vmul.f32 0.018215904, %v710_v41  ;;  %v597_v24 = vmul.f32 0.055335034, %v581_v46  ;;  %100 = vst.msk [vmem:[#allocation2 + $0x66] sm:$0x1] %vm64_vm1, %v92_v51 }
  0x52   :  { %116 = vst.msk [vmem:[#allocation2 + $0x79] sm:$0x1] %vm64_vm1, %v108_v52  ;;  %v124_v57 = vld [vmem:[#allocation4 + $0x33] sm:$0x1]  ;;  %v140_v58 = vld [vmem:[#allocation4 + $0x3c] sm:$0x1] }
  0x53   :  { %v614_v44 = vadd.f32 %v598_v35, %v542_v28  ;;  %132 = vst.msk [vmem:[#allocation2 + $0x65] sm:$0x1] %vm64_vm1, %v124_v57  ;;  %v172_v59 = vld [vmem:[#allocation4 + $0x3b] sm:$0x1]  ;;  %v204_v61 = vld [vmem:[#allocation4 + $0x3a] sm:$0x1]  ;;  %v613_v6 = vadd.f32 %v597_v24, %v541_v54 }
  0x54   :  { %148 = vst.msk [vmem:[#allocation2 + $0x7a] sm:$0x1] %vm64_vm1, %v140_v58  ;;  %180 = vst.msk [vmem:[#allocation2 + $0x7b] sm:$0x1] %vm64_vm1, %v172_v59  ;;  %v236_v50 = vld [vmem:[#allocation4 + $0x39] sm:$0x1] }
  0x55   :  { %212 = vst.msk [vmem:[#allocation2 + $0x7c] sm:$0x1] %vm64_vm1, %v204_v61  ;;  %v268_v62 = vld [vmem:[#allocation4 + $0x38] sm:$0x1]  ;;  %v678_v0 = vadd.f32 %v662_v49, %v614_v44  ;;  %v790_v16 = vmul.f32 0.008846949, %v774_v30 }
  0x56   :  { %244 = vst.msk [vmem:[#allocation2 + $0x7d] sm:$0x1] %vm64_vm1, %v236_v50  ;;  %276 = vst.msk [vmem:[#allocation2 + $0x7e] sm:$0x1] %vm64_vm1, %v268_v62  ;;  %v156_v3 = vld [vmem:[#allocation4 + $0x34] sm:$0x1] }
  0x57   :  { %v691_v8 = vld [vmem:[#allocation2 + $0x42] sm:$0xff]  ;;  %164 = vst.msk [vmem:[#allocation2 + $0x64] sm:$0x1] %vm64_vm1, %v156_v3  ;;  %v188_v11 = vld [vmem:[#allocation4 + $0x35] sm:$0x1]  ;;  %v742_v56 = vadd.f32 %v726_v53, %v678_v0  ;;  %v415_v33 = vld [vmem:[#allocation2 + $0x6a] sm:$0xff] }
  0x58   :  { %v755_v10 = vld [vmem:[#allocation2 + $0x41] sm:$0xff]  ;;  %v709_v12 = vadd.f32 %v691_v8, %v3315_v1  ;;  %v288_v15 = vld [vmem:[#allocation2 + $0x70] sm:$0xff]  ;;  %196 = vst.msk [vmem:[#allocation2 + $0x63] sm:$0x1] %vm64_vm1, %v188_v11  ;;  %v661_v19 = vmul.f32 0.033562396, %v645_v7 }
  0x59   :  { %v773_v13 = vadd.f32 %v755_v10, %v3312_v55  ;;  %v319_v17 = vld [vmem:[#allocation2 + $0x67] sm:$0xff]  ;;  %v3348_v18 = vld [vmem:[#allocation2 + $0x6f] sm:$0xff]  ;;  %v303_v9 = vmul.f32 0.13459834, %v287_v63  ;;  %v3351_v22 = vadd.f32 %v790_v16, %v742_v56  ;;  %v304_v25 = vmul.f32 0.13459834, %v288_v15 }
  0x5a   :  { %v335_v20 = vld [vmem:[#allocation2 + $0x69] sm:$0xff]  ;;  %v336_v21 = vld [vmem:[#allocation2 + $0x71] sm:$0xff]  ;;  %v725_v23 = vmul.f32 0.018215904, %v709_v12  ;;  %v677_v1 = vadd.f32 %v661_v19, %v613_v6  ;;  %v60_v8 = vld [vmem:[#allocation4 + $0x41] sm:$0x1] }
  0x5b   :  { %v351_v26 = vadd.f32 %v335_v20, %v319_v17  ;;  %v399_v27 = vld [vmem:[#allocation2 + $0x66] sm:$0xff]  ;;  %v3353_v29 = vld [vmem:[#allocation2 + $0x6e] sm:$0xff]  ;;  %v789_v55 = vmul.f32 0.008846949, %v773_v13  ;;  %v352_v31 = vadd.f32 %v336_v21, %v3348_v18  ;;  %843 = vrot.lane.b32.xlu1 %v3351_v22, %s3169_s0  ;;  %v220_v59 = vld [vmem:[#allocation4 + $0x36] sm:$0x1] }
  0x5c   :  { %v416_v34 = vld [vmem:[#allocation2 + $0x72] sm:$0xff]  ;;  %v479_v36 = vld [vmem:[#allocation2 + $0x65] sm:$0xff]  ;;  %v431_v4 = vadd.f32 %v415_v33, %v399_v27  ;;  %v741_v43 = vadd.f32 %v725_v23, %v677_v1  ;;  %228 = vst.msk [vmem:[#allocation2 + $0x62] sm:$0x1] %vm64_vm1, %v220_v59  ;;  %v77_v10 = vld [vmem:[#allocation4 + $0x4e] sm:$0x1] }
  0x5d   :  { %v367_v38 = vmul.f32 0.12732457, %v351_v26  ;;  %v432_v48 = vadd.f32 %v416_v34, %v3353_v29  ;;  %v480_v39 = vld [vmem:[#allocation2 + $0x6d] sm:$0xff]  ;;  %v368_v45 = vmul.f32 0.12732457, %v352_v31  ;;  %v636_v28 = vld [vmem:[#allocation2 + $0x75] sm:$0xff] }
  0x5e   :  { %v495_v40 = vld [vmem:[#allocation2 + $0x6b] sm:$0xff]  ;;  %v496_v41 = vld [vmem:[#allocation2 + $0x73] sm:$0xff]  ;;  %v447_v30 = vmul.f32 0.10777792, %v431_v4  ;;  %v3359_v24 = vadd.f32 %v789_v55, %v741_v43  ;;  %69 = vst.msk [vmem:[#allocation2 + $0x87] sm:$0x1] %vm64_vm1, %v60_v8 }
  0x5f   :  { %v511_v42 = vadd.f32 %v495_v40, %v479_v36  ;;  %v512_v35 = vadd.f32 %v496_v41, %v480_v39  ;;  %v560_v46 = vld [vmem:[#allocation2 + $0x6c] sm:$0xff]  ;;  %v572_v47 = vld [vmem:[#allocation2 + $0x74] sm:$0xff]  ;;  %v383_v49 = vadd.f32 %v367_v38, %v303_v9  ;;  %v448_v51 = vmul.f32 0.10777792, %v432_v48  ;;  %v559_v16 = vld [vmem:[#allocation2 + $0x64] sm:$0xff]  ;;  %s3181_s2 = smov 19  }
  0x60   :  { %v584_v52 = vadd.f32 %v572_v47, %v560_v46  ;;  %v700_v53 = vld [vmem:[#allocation2 + $0x76] sm:$0xff]  ;;  %v384_v57 = vadd.f32 %v368_v45, %v304_v25  ;;  %v648_v62 = vadd.f32 %v636_v28, %v495_v40  ;;  %v628_v5 = vld [vmem:[#allocation2 + $0x63] sm:$0xff]  ;;  %841 = vrot.lane.b32.xlu0 %v3359_v24, %s3169_s0  ;;  %v583_v2 = vadd.f32 %v560_v46, %v559_v16  ;;  %v93_v13 = vld [vmem:[#allocation4 + $0x42] sm:$0x1]  ;;  %s3182_s3 = smov 121   ;;  %s3183_s4 = smov 21  }
  0x61   :  { %v764_v54 = vld [vmem:[#allocation2 + $0x77] sm:$0xff]  ;;  %v527_v44 = vmul.f32 0.08163802, %v511_v42  ;;  %v528_v58 = vmul.f32 0.08163802, %v512_v35  ;;  %v463_v61 = vadd.f32 %v447_v30, %v383_v49  ;;  %v712_v63 = vadd.f32 %v700_v53, %v415_v33  ;;  %v32_v7 = vld [vmem:[#allocation4 + $0x48] sm:$0xff] }
  0x62   :  { %v600_v50 = vmul.f32 0.055335034, %v584_v52  ;;  %v252_v0 = vld [vmem:[#allocation4 + $0x37] sm:$0x1]  ;;  %v464_v3 = vadd.f32 %v448_v51, %v384_v57  ;;  %v647_v6 = vadd.f32 %v628_v5, %v480_v39  ;;  %v664_v11 = vmul.f32 0.033562396, %v648_v62 }
  0x63   :  { %260 = vst.msk [vmem:[#allocation2 + $0x61] sm:$0x1] %vm64_vm1, %v252_v0  ;;  %v776_v56 = vadd.f32 %v764_v54, %v335_v20  ;;  %v543_v12 = vadd.f32 %v527_v44, %v463_v61  ;;  %85 = vst.msk [vmem:[#allocation2 + $0x98] sm:$0x1] %vm64_vm1, %v77_v10  ;;  %v728_v17 = vmul.f32 0.018215904, %v712_v63 }
  0x64   :  { %49 = vst.msk [vmem:[#allocation2 + $0x90] sm:$0xff] %vm39_vm0, %v32_v7  ;;  %v544_v15 = vadd.f32 %v528_v58, %v464_v3  ;;  %v599_v19 = vmul.f32 0.055335034, %v583_v2  ;;  %v663_v9 = vmul.f32 0.033562396, %v647_v6  ;;  %v289_v33 = vld [vmem:[#allocation2 + $0x88] sm:$0xff] }
  0x65   :  { %101 = vst.msk [vmem:[#allocation2 + $0x86] sm:$0x1] %vm64_vm1, %v93_v13  ;;  %v109_v21 = vld [vmem:[#allocation4 + $0x4d] sm:$0x1]  ;;  %v125_v23 = vld [vmem:[#allocation4 + $0x43] sm:$0x1] }
  0x66   :  { %v141_v25 = vld [vmem:[#allocation4 + $0x4c] sm:$0x1]  ;;  %v616_v26 = vadd.f32 %v600_v50, %v544_v15  ;;  %v615_v27 = vadd.f32 %v599_v19, %v543_v12  ;;  %117 = vst.msk [vmem:[#allocation2 + $0x99] sm:$0x1] %vm64_vm1, %v109_v21  ;;  %133 = vst.msk [vmem:[#allocation2 + $0x85] sm:$0x1] %vm64_vm1, %v125_v23 }
  0x67   :  { %149 = vst.msk [vmem:[#allocation2 + $0x9a] sm:$0x1] %vm64_vm1, %v141_v25  ;;  %v173_v20 = vld [vmem:[#allocation4 + $0x4b] sm:$0x1]  ;;  %v205_v1 = vld [vmem:[#allocation4 + $0x4a] sm:$0x1] }
  0x68   :  { %v237_v55 = vld [vmem:[#allocation4 + $0x49] sm:$0x1]  ;;  %181 = vst.msk [vmem:[#allocation2 + $0x9b] sm:$0x1] %vm64_vm1, %v173_v20  ;;  %213 = vst.msk [vmem:[#allocation2 + $0x9c] sm:$0x1] %vm64_vm1, %v205_v1  ;;  %v680_v36 = vadd.f32 %v664_v11, %v616_v26  ;;  %v679_v40 = vadd.f32 %v663_v9, %v615_v27 }
  0x69   :  { %245 = vst.msk [vmem:[#allocation2 + $0x9d] sm:$0x1] %vm64_vm1, %v237_v55  ;;  %v269_v31 = vld [vmem:[#allocation4 + $0x48] sm:$0x1]  ;;  %v157_v34 = vld [vmem:[#allocation4 + $0x44] sm:$0x1] }
  0x6a   :  { %v792_v38 = vmul.f32 0.008846949, %v776_v56  ;;  %v692_v4 = vld [vmem:[#allocation2 + $0x62] sm:$0xff]  ;;  %277 = vst.msk [vmem:[#allocation2 + $0x9e] sm:$0x1] %vm64_vm1, %v269_v31  ;;  %v33_v39 = vld [vmem:[#allocation4 + $0x50] sm:$0xff]  ;;  %v744_v35 = vadd.f32 %v728_v17, %v680_v36 }
  0x6b   :  { %165 = vst.msk [vmem:[#allocation2 + $0x84] sm:$0x1] %vm64_vm1, %v157_v34  ;;  %v189_v48 = vld [vmem:[#allocation4 + $0x45] sm:$0x1]  ;;  %v711_v41 = vadd.f32 %v692_v4, %v3353_v29  ;;  %v221_v45 = vld [vmem:[#allocation4 + $0x46] sm:$0x1] }
  0x6c   :  { %v756_v43 = vld [vmem:[#allocation2 + $0x61] sm:$0xff]  ;;  %197 = vst.msk [vmem:[#allocation2 + $0x83] sm:$0x1] %vm64_vm1, %v189_v48  ;;  %v290_v47 = vld [vmem:[#allocation2 + $0x90] sm:$0xff]  ;;  %v305_v28 = vmul.f32 0.13459834, %v289_v33  ;;  %v3385_v54 = vadd.f32 %v792_v38, %v744_v35 }
  0x6d   :  { %v253_v42 = vld [vmem:[#allocation4 + $0x47] sm:$0x1]  ;;  %50 = vst.msk [vmem:[#allocation2 + $0xa8] sm:$0xff] %vm39_vm0, %v33_v39  ;;  %v775_v46 = vadd.f32 %v756_v43, %v3348_v18  ;;  %v3381_v30 = vld [vmem:[#allocation2 + $0x8f] sm:$0xff]  ;;  %v727_v29 = vmul.f32 0.018215904, %v711_v41 }
  0x6e   :  { %v321_v49 = vld [vmem:[#allocation2 + $0x87] sm:$0xff]  ;;  %229 = vst.msk [vmem:[#allocation2 + $0x82] sm:$0x1] %vm64_vm1, %v221_v45  ;;  %261 = vst.msk [vmem:[#allocation2 + $0x81] sm:$0x1] %vm64_vm1, %v253_v42  ;;  %v338_v53 = vld [vmem:[#allocation2 + $0x91] sm:$0xff]  ;;  %847 = vrot.lane.b32.xlu1 %v3385_v54, %s3169_s0 }
  0x6f   :  { %v306_v51 = vmul.f32 0.13459834, %v290_v47  ;;  %v337_v52 = vld [vmem:[#allocation2 + $0x89] sm:$0xff]  ;;  %v791_v57 = vmul.f32 0.008846949, %v775_v46  ;;  %v354_v58 = vadd.f32 %v338_v53, %v3381_v30  ;;  %v743_v50 = vadd.f32 %v727_v29, %v679_v40  ;;  %v418_v62 = vld [vmem:[#allocation2 + $0x92] sm:$0xff] }
  0x70   :  { %v353_v44 = vadd.f32 %v337_v52, %v321_v49  ;;  %v401_v18 = vld [vmem:[#allocation2 + $0x86] sm:$0xff]  ;;  %v402_v59 = vld [vmem:[#allocation2 + $0x8e] sm:$0xff]  ;;  %v701_v23 = vld [vmem:[#allocation2 + $0x96] sm:$0xff]  ;;  %vm1271_vm8 = vcmask 212168   ;;  %vm1336_vm9 = vcmask 31768   ;;  %vm1401_vm10 = vcmask 220368  }
  0x71   :  { %v417_v61 = vld [vmem:[#allocation2 + $0x8a] sm:$0xff]  ;;  %v370_v3 = vmul.f32 0.12732457, %v354_v58  ;;  %v434_v2 = vadd.f32 %v418_v62, %v402_v59  ;;  %v498_v7 = vld [vmem:[#allocation2 + $0x93] sm:$0xff]  ;;  %v3390_v8 = vadd.f32 %v791_v57, %v743_v50  ;;  %v78_v42 = vld [vmem:[#allocation4 + $0x5e] sm:$0x1] }
  0x72   :  { %v433_v63 = vadd.f32 %v417_v61, %v401_v18  ;;  %v481_v0 = vld [vmem:[#allocation2 + $0x85] sm:$0xff]  ;;  %v482_v16 = vld [vmem:[#allocation2 + $0x8d] sm:$0xff]  ;;  %v369_v5 = vmul.f32 0.12732457, %v353_v44  ;;  %v637_v15 = vld [vmem:[#allocation2 + $0x95] sm:$0xff]  ;;  %v714_v55 = vadd.f32 %v701_v23, %v417_v61  ;;  %vm1466_vm11 = vcmask 23568  }
  0x73   :  { %v497_v6 = vld [vmem:[#allocation2 + $0x8b] sm:$0xff]  ;;  %v514_v56 = vadd.f32 %v498_v7, %v482_v16  ;;  %v573_v13 = vld [vmem:[#allocation2 + $0x94] sm:$0xff]  ;;  %v386_v19 = vadd.f32 %v370_v3, %v306_v51  ;;  %v450_v9 = vmul.f32 0.10777792, %v434_v2  ;;  %845 = vrot.lane.b32.xlu0 %v3390_v8, %s3169_s0  ;;  %v629_v31 = vld [vmem:[#allocation2 + $0x83] sm:$0xff]  ;;  %vm1531_vm12 = vcmask 228568  }
  0x74   :  { %v449_v10 = vmul.f32 0.10777792, %v433_v63  ;;  %v513_v11 = vadd.f32 %v497_v6, %v481_v0  ;;  %v562_v12 = vld [vmem:[#allocation2 + $0x8c] sm:$0xff]  ;;  %v385_v17 = vadd.f32 %v369_v5, %v305_v28  ;;  %v765_v25 = vld [vmem:[#allocation2 + $0x97] sm:$0xff]  ;;  %v561_v26 = vld [vmem:[#allocation2 + $0x84] sm:$0xff]  ;;  %v650_v1 = vadd.f32 %v637_v15, %v497_v6  ;;  %s3184_s5 = smov 126  }
  0x75   :  { %v586_v21 = vadd.f32 %v573_v13, %v562_v12  ;;  %v530_v20 = vmul.f32 0.08163802, %v514_v56  ;;  %v693_v33 = vld [vmem:[#allocation2 + $0x82] sm:$0xff]  ;;  %v466_v36 = vadd.f32 %v450_v9, %v386_v19  ;;  %v778_v4 = vadd.f32 %v765_v25, %v337_v52  ;;  %v34_v39 = vld [vmem:[#allocation4 + $0x58] sm:$0xff]  ;;  %v61_v40 = vld [vmem:[#allocation4 + $0x51] sm:$0x1] }
  0x76   :  { %v529_v27 = vmul.f32 0.08163802, %v513_v11  ;;  %v465_v34 = vadd.f32 %v449_v10, %v385_v17  ;;  %v757_v48 = vld [vmem:[#allocation2 + $0x81] sm:$0xff]  ;;  %v666_v41 = vmul.f32 0.033562396, %v650_v1  ;;  %v585_v43 = vadd.f32 %v562_v12, %v561_v26  ;;  %51 = vst.msk [vmem:[#allocation2 + $0xb0] sm:$0xff] %vm39_vm0, %v34_v39 }
  0x77   :  { %v602_v38 = vmul.f32 0.055335034, %v586_v21  ;;  %v649_v45 = vadd.f32 %v629_v31, %v482_v16  ;;  %70 = vst.msk [vmem:[#allocation2 + $0xa7] sm:$0x1] %vm64_vm1, %v61_v40  ;;  %v546_v35 = vadd.f32 %v530_v20, %v466_v36  ;;  %v730_v46 = vmul.f32 0.018215904, %v714_v55 }
  0x78   :  { %v545_v47 = vadd.f32 %v529_v27, %v465_v34  ;;  %v713_v28 = vadd.f32 %v693_v33, %v402_v59  ;;  %86 = vst.msk [vmem:[#allocation2 + $0xb8] sm:$0x1] %vm64_vm1, %v78_v42  ;;  %v94_v49 = vld [vmem:[#allocation4 + $0x52] sm:$0x1]  ;;  %v110_v29 = vld [vmem:[#allocation4 + $0x5d] sm:$0x1]  ;;  %v777_v53 = vadd.f32 %v757_v48, %v3381_v30 }
  0x79   :  { %v601_v51 = vmul.f32 0.055335034, %v585_v43  ;;  %v665_v52 = vmul.f32 0.033562396, %v649_v45  ;;  %102 = vst.msk [vmem:[#allocation2 + $0xa6] sm:$0x1] %vm64_vm1, %v94_v49  ;;  %v618_v44 = vadd.f32 %v602_v38, %v546_v35 }
  0x7a   :  { %118 = vst.msk [vmem:[#allocation2 + $0xb9] sm:$0x1] %vm64_vm1, %v110_v29  ;;  %v126_v57 = vld [vmem:[#allocation4 + $0x53] sm:$0x1]  ;;  %v794_v58 = vmul.f32 0.008846949, %v778_v4 }
  0x7b   :  { %134 = vst.msk [vmem:[#allocation2 + $0xa5] sm:$0x1] %vm64_vm1, %v126_v57  ;;  %v142_v18 = vld [vmem:[#allocation4 + $0x5c] sm:$0x1]  ;;  %v174_v61 = vld [vmem:[#allocation4 + $0x5b] sm:$0x1]  ;;  %v617_v59 = vadd.f32 %v601_v51, %v545_v47  ;;  %v682_v30 = vadd.f32 %v666_v41, %v618_v44 }
  0x7c   :  { %v729_v50 = vmul.f32 0.018215904, %v713_v28  ;;  %150 = vst.msk [vmem:[#allocation2 + $0xba] sm:$0x1] %vm64_vm1, %v142_v18  ;;  %182 = vst.msk [vmem:[#allocation2 + $0xbb] sm:$0x1] %vm64_vm1, %v174_v61 }
  0x7d   :  { %v206_v62 = vld [vmem:[#allocation4 + $0x5a] sm:$0x1]  ;;  %v238_v63 = vld [vmem:[#allocation4 + $0x59] sm:$0x1]  ;;  %v270_v0 = vld [vmem:[#allocation4 + $0x58] sm:$0x1]  ;;  %v681_v3 = vadd.f32 %v665_v52, %v617_v59  ;;  %v746_v10 = vadd.f32 %v730_v46, %v682_v30 }
  0x7e   :  { %214 = vst.msk [vmem:[#allocation2 + $0xbc] sm:$0x1] %vm64_vm1, %v206_v62  ;;  %246 = vst.msk [vmem:[#allocation2 + $0xbd] sm:$0x1] %vm64_vm1, %v238_v63  ;;  %v291_v16 = vld [vmem:[#allocation2 + $0xa8] sm:$0xff]  ;;  %v292_v11 = vld [vmem:[#allocation2 + $0xb0] sm:$0xff] }
  0x7f   :  { %v158_v5 = vld [vmem:[#allocation4 + $0x54] sm:$0x1]  ;;  %v793_v2 = vmul.f32 0.008846949, %v777_v53  ;;  %278 = vst.msk [vmem:[#allocation2 + $0xbe] sm:$0x1] %vm64_vm1, %v270_v0  ;;  %v745_v13 = vadd.f32 %v729_v50, %v681_v3  ;;  %v3411_v21 = vadd.f32 %v794_v58, %v746_v10 }
  0x80   :  { %166 = vst.msk [vmem:[#allocation2 + $0xa4] sm:$0x1] %vm64_vm1, %v158_v5  ;;  %v190_v6 = vld [vmem:[#allocation4 + $0x55] sm:$0x1]  ;;  %v222_v7 = vld [vmem:[#allocation4 + $0x56] sm:$0x1] }
  0x81   :  { %v323_v56 = vld [vmem:[#allocation2 + $0xa7] sm:$0xff]  ;;  %v3407_v12 = vld [vmem:[#allocation2 + $0xaf] sm:$0xff]  ;;  %198 = vst.msk [vmem:[#allocation2 + $0xa3] sm:$0x1] %vm64_vm1, %v190_v6  ;;  %230 = vst.msk [vmem:[#allocation2 + $0xa2] sm:$0x1] %vm64_vm1, %v222_v7  ;;  %v3414_v55 = vadd.f32 %v793_v2, %v745_v13  ;;  %851 = vrot.lane.b32.xlu1 %v3411_v21, %s3169_s0 }
  0x82   :  { %v307_v15 = vmul.f32 0.13459834, %v291_v16  ;;  %v339_v17 = vld [vmem:[#allocation2 + $0xa9] sm:$0xff]  ;;  %v340_v19 = vld [vmem:[#allocation2 + $0xb1] sm:$0xff]  ;;  %v308_v23 = vmul.f32 0.13459834, %v292_v11 }
  0x83   :  { %v404_v9 = vld [vmem:[#allocation2 + $0xae] sm:$0xff]  ;;  %v355_v25 = vadd.f32 %v339_v17, %v323_v56  ;;  %v356_v26 = vadd.f32 %v340_v19, %v3407_v12  ;;  %v403_v27 = vld [vmem:[#allocation2 + $0xa6] sm:$0xff]  ;;  %849 = vrot.lane.b32.xlu0 %v3414_v55, %s3169_s0  ;;  %v254_v53 = vld [vmem:[#allocation4 + $0x57] sm:$0x1]  ;;  %vm1596_vm13 = vcmask 15368   ;;  %vm1661_vm14 = vcmask 236768  }
  0x84   :  { %v419_v20 = vld [vmem:[#allocation2 + $0xaa] sm:$0xff]  ;;  %v420_v1 = vld [vmem:[#allocation2 + $0xb2] sm:$0xff]  ;;  %262 = vst.msk [vmem:[#allocation2 + $0xa1] sm:$0x1] %vm64_vm1, %v254_v53  ;;  %v35_v16 = vld [vmem:[#allocation4 + $0x60] sm:$0xff]  ;;  %vm1726_vm15 = vcmask 7168  }
  0x85   :  { %v435_v31 = vadd.f32 %v419_v20, %v403_v27  ;;  %v436_v33 = vadd.f32 %v420_v1, %v404_v9  ;;  %v483_v34 = vld [vmem:[#allocation2 + $0xa5] sm:$0xff]  ;;  %v484_v36 = vld [vmem:[#allocation2 + $0xad] sm:$0xff]  ;;  %v371_v4 = vmul.f32 0.12732457, %v355_v25  ;;  %v372_v48 = vmul.f32 0.12732457, %v356_v26 }
  0x86   :  { %v499_v38 = vld [vmem:[#allocation2 + $0xab] sm:$0xff]  ;;  %v500_v39 = vld [vmem:[#allocation2 + $0xb3] sm:$0xff]  ;;  %v62_v3 = vld [vmem:[#allocation4 + $0x61] sm:$0x1]  ;;  %52 = vst.msk [vmem:[#allocation2 + $0xc8] sm:$0xff] %vm39_vm0, %v35_v16  ;;  %s3185_s6 = smov 124  }
  0x87   :  { %v515_v40 = vadd.f32 %v499_v38, %v483_v34  ;;  %v564_v41 = vld [vmem:[#allocation2 + $0xac] sm:$0xff]  ;;  %v451_v43 = vmul.f32 0.10777792, %v435_v31  ;;  %v452_v45 = vmul.f32 0.10777792, %v436_v33  ;;  %v516_v42 = vadd.f32 %v500_v39, %v484_v36  ;;  %v574_v35 = vld [vmem:[#allocation2 + $0xb4] sm:$0xff] }
  0x88   :  { %v638_v46 = vld [vmem:[#allocation2 + $0xb5] sm:$0xff]  ;;  %v387_v47 = vadd.f32 %v371_v4, %v307_v15  ;;  %v388_v28 = vadd.f32 %v372_v48, %v308_v23  ;;  %v588_v29 = vadd.f32 %v574_v35, %v564_v41  ;;  %v563_v61 = vld [vmem:[#allocation2 + $0xa4] sm:$0xff]  ;;  %71 = vst.msk [vmem:[#allocation2 + $0xc7] sm:$0x1] %vm64_vm1, %v62_v3  ;;  %v95_v19 = vld [vmem:[#allocation4 + $0x62] sm:$0x1] }
  0x89   :  { %v531_v49 = vmul.f32 0.08163802, %v515_v40  ;;  %v702_v51 = vld [vmem:[#allocation2 + $0xb6] sm:$0xff]  ;;  %v532_v57 = vmul.f32 0.08163802, %v516_v42  ;;  %v652_v44 = vadd.f32 %v638_v46, %v499_v38  ;;  %v630_v59 = vld [vmem:[#allocation2 + $0xa3] sm:$0xff]  ;;  %v587_v0 = vadd.f32 %v564_v41, %v563_v61 }
  0x8a   :  { %v766_v52 = vld [vmem:[#allocation2 + $0xb7] sm:$0xff]  ;;  %v716_v58 = vadd.f32 %v702_v51, %v419_v20  ;;  %v694_v50 = vld [vmem:[#allocation2 + $0xa2] sm:$0xff]  ;;  %v467_v62 = vadd.f32 %v451_v43, %v387_v47  ;;  %v468_v63 = vadd.f32 %v452_v45, %v388_v28  ;;  %v604_v30 = vmul.f32 0.055335034, %v588_v29  ;;  %103 = vst.msk [vmem:[#allocation2 + $0xc6] sm:$0x1] %vm64_vm1, %v95_v19 }
  0x8b   :  { %v780_v18 = vadd.f32 %v766_v52, %v339_v17  ;;  %v36_v5 = vld [vmem:[#allocation4 + $0x68] sm:$0xff]  ;;  %v668_v2 = vmul.f32 0.033562396, %v652_v44  ;;  %v651_v10 = vadd.f32 %v630_v59, %v484_v36  ;;  %v603_v13 = vmul.f32 0.055335034, %v587_v0  ;;  %v37_v42 = vld [vmem:[#allocation4 + $0x70] sm:$0xff] }
  0x8c   :  { %v732_v6 = vmul.f32 0.018215904, %v716_v58  ;;  %53 = vst.msk [vmem:[#allocation2 + $0xd0] sm:$0xff] %vm39_vm0, %v36_v5  ;;  %v548_v11 = vadd.f32 %v532_v57, %v468_v63  ;;  %v547_v56 = vadd.f32 %v531_v49, %v467_v62  ;;  %v715_v15 = vadd.f32 %v694_v50, %v404_v9  ;;  %v79_v17 = vld [vmem:[#allocation4 + $0x6e] sm:$0x1]  ;;  %v758_v48 = vld [vmem:[#allocation2 + $0xa1] sm:$0xff] }
  0x8d   :  { %v796_v7 = vmul.f32 0.008846949, %v780_v18  ;;  %v667_v23 = vmul.f32 0.033562396, %v651_v10  ;;  %87 = vst.msk [vmem:[#allocation2 + $0xd8] sm:$0x1] %vm64_vm1, %v79_v17  ;;  %v779_v41 = vadd.f32 %v758_v48, %v3407_v12 }
  0x8e   :  { %v111_v25 = vld [vmem:[#allocation4 + $0x6d] sm:$0x1]  ;;  %v127_v26 = vld [vmem:[#allocation4 + $0x63] sm:$0x1]  ;;  %v620_v27 = vadd.f32 %v604_v30, %v548_v11  ;;  %v619_v20 = vadd.f32 %v603_v13, %v547_v56  ;;  %v731_v1 = vmul.f32 0.018215904, %v715_v15 }
  0x8f   :  { %119 = vst.msk [vmem:[#allocation2 + $0xd9] sm:$0x1] %vm64_vm1, %v111_v25  ;;  %135 = vst.msk [vmem:[#allocation2 + $0xc5] sm:$0x1] %vm64_vm1, %v127_v26  ;;  %v143_v31 = vld [vmem:[#allocation4 + $0x6c] sm:$0x1] }
  0x90   :  { %v175_v33 = vld [vmem:[#allocation4 + $0x6b] sm:$0x1]  ;;  %151 = vst.msk [vmem:[#allocation2 + $0xda] sm:$0x1] %vm64_vm1, %v143_v31  ;;  %v207_v9 = vld [vmem:[#allocation4 + $0x6a] sm:$0x1]  ;;  %v684_v38 = vadd.f32 %v668_v2, %v620_v27  ;;  %v683_v4 = vadd.f32 %v667_v23, %v619_v20 }
  0x91   :  { %183 = vst.msk [vmem:[#allocation2 + $0xdb] sm:$0x1] %vm64_vm1, %v175_v33  ;;  %v239_v34 = vld [vmem:[#allocation4 + $0x69] sm:$0x1]  ;;  %v271_v36 = vld [vmem:[#allocation4 + $0x68] sm:$0x1] }
  0x92   :  { %215 = vst.msk [vmem:[#allocation2 + $0xdc] sm:$0x1] %vm64_vm1, %v207_v9  ;;  %247 = vst.msk [vmem:[#allocation2 + $0xdd] sm:$0x1] %vm64_vm1, %v239_v34  ;;  %v159_v39 = vld [vmem:[#allocation4 + $0x64] sm:$0x1]  ;;  %v748_v35 = vadd.f32 %v732_v6, %v684_v38  ;;  %v747_v46 = vadd.f32 %v731_v1, %v683_v4 }
  0x93   :  { %279 = vst.msk [vmem:[#allocation2 + $0xde] sm:$0x1] %vm64_vm1, %v271_v36  ;;  %v191_v40 = vld [vmem:[#allocation4 + $0x65] sm:$0x1]  ;;  %167 = vst.msk [vmem:[#allocation2 + $0xc4] sm:$0x1] %vm64_vm1, %v159_v39 }
  0x94   :  { %199 = vst.msk [vmem:[#allocation2 + $0xc3] sm:$0x1] %vm64_vm1, %v191_v40  ;;  %v223_v43 = vld [vmem:[#allocation4 + $0x66] sm:$0x1]  ;;  %v255_v45 = vld [vmem:[#allocation4 + $0x67] sm:$0x1]  ;;  %v3439_v12 = vadd.f32 %v796_v7, %v748_v35 }
  0x95   :  { %v293_v47 = vld [vmem:[#allocation2 + $0xc8] sm:$0xff]  ;;  %v294_v28 = vld [vmem:[#allocation2 + $0xd0] sm:$0xff]  ;;  %231 = vst.msk [vmem:[#allocation2 + $0xc2] sm:$0x1] %vm64_vm1, %v223_v43  ;;  %263 = vst.msk [vmem:[#allocation2 + $0xc1] sm:$0x1] %vm64_vm1, %v255_v45 }
  0x96   :  { %v325_v49 = vld [vmem:[#allocation2 + $0xc7] sm:$0xff]  ;;  %54 = vst.msk [vmem:[#allocation2 + $0xe8] sm:$0xff] %vm39_vm0, %v37_v42  ;;  %v795_v29 = vmul.f32 0.008846949, %v779_v41  ;;  %v309_v51 = vmul.f32 0.13459834, %v293_v47  ;;  %855 = vrot.lane.b32.xlu1 %v3439_v12, %s3169_s0 }
  0x97   :  { %v326_v52 = vld [vmem:[#allocation2 + $0xcf] sm:$0xff]  ;;  %v310_v58 = vmul.f32 0.13459834, %v294_v28  ;;  %v405_v59 = vld [vmem:[#allocation2 + $0xc6] sm:$0xff]  ;;  %v38_v43 = vld [vmem:[#allocation4 + $0x78] sm:$0xff]  ;;  %s3186_s7 = smov 2  }
  0x98   :  { %v341_v53 = vld [vmem:[#allocation2 + $0xc9] sm:$0xff]  ;;  %v342_v57 = vld [vmem:[#allocation2 + $0xd1] sm:$0xff]  ;;  %v3441_v44 = vadd.f32 %v795_v29, %v747_v46  ;;  %55 = vst.msk [vmem:[#allocation2 + $0xf0] sm:$0xff] %vm39_vm0, %v38_v43  ;;  %v80_v47 = vld [vmem:[#allocation4 + $0x7e] sm:$0x1]  ;;  %s3187_s8 = smov 122  }
  0x99   :  { %v357_v18 = vadd.f32 %v341_v53, %v325_v49  ;;  %v358_v61 = vadd.f32 %v342_v57, %v326_v52  ;;  %v406_v50 = vld [vmem:[#allocation2 + $0xce] sm:$0xff]  ;;  %v485_v0 = vld [vmem:[#allocation2 + $0xc5] sm:$0xff]  ;;  %v703_v27 = vld [vmem:[#allocation2 + $0xd6] sm:$0xff]  ;;  %88 = vst.msk [vmem:[#allocation2 + $0xf8] sm:$0x1] %vm64_vm1, %v80_v47  ;;  %s3188_s9 = smov 120  }
  0x9a   :  { %v421_v62 = vld [vmem:[#allocation2 + $0xca] sm:$0xff]  ;;  %v422_v63 = vld [vmem:[#allocation2 + $0xd2] sm:$0xff]  ;;  %853 = vrot.lane.b32.xlu0 %v3441_v44, %s3169_s0  ;;  %s3189_s10 = smov 4   ;;  %s3190_s11 = smov 118  }
  0x9b   :  { %v437_v30 = vadd.f32 %v421_v62, %v405_v59  ;;  %v486_v16 = vld [vmem:[#allocation2 + $0xcd] sm:$0xff]  ;;  %v373_v5 = vmul.f32 0.12732457, %v357_v18  ;;  %v374_v3 = vmul.f32 0.12732457, %v358_v61  ;;  %v438_v2 = vadd.f32 %v422_v63, %v406_v50  ;;  %v639_v17 = vld [vmem:[#allocation2 + $0xd5] sm:$0xff] }
  0x9c   :  { %v501_v6 = vld [vmem:[#allocation2 + $0xcb] sm:$0xff]  ;;  %v502_v7 = vld [vmem:[#allocation2 + $0xd3] sm:$0xff]  ;;  %v718_v34 = vadd.f32 %v703_v27, %v421_v62  ;;  %v631_v36 = vld [vmem:[#allocation2 + $0xc3] sm:$0xff]  ;;  %s3191_s12 = smov 116   ;;  %s3192_s13 = smov 114  }
  0x9d   :  { %v453_v10 = vmul.f32 0.10777792, %v437_v30  ;;  %v517_v11 = vadd.f32 %v501_v6, %v485_v0  ;;  %v518_v56 = vadd.f32 %v502_v7, %v486_v16  ;;  %v566_v13 = vld [vmem:[#allocation2 + $0xcc] sm:$0xff]  ;;  %v575_v15 = vld [vmem:[#allocation2 + $0xd4] sm:$0xff]  ;;  %v389_v19 = vadd.f32 %v373_v5, %v309_v51  ;;  %v565_v1 = vld [vmem:[#allocation2 + $0xc4] sm:$0xff]  ;;  %s3193_s14 = smov 6  }
  0x9e   :  { %v390_v23 = vadd.f32 %v374_v3, %v310_v58  ;;  %v454_v25 = vmul.f32 0.10777792, %v438_v2  ;;  %v590_v26 = vadd.f32 %v575_v15, %v566_v13  ;;  %v767_v20 = vld [vmem:[#allocation2 + $0xd7] sm:$0xff]  ;;  %v654_v9 = vadd.f32 %v639_v17, %v501_v6  ;;  %v695_v38 = vld [vmem:[#allocation2 + $0xc2] sm:$0xff]  ;;  %v63_v45 = vld [vmem:[#allocation4 + $0x71] sm:$0x1] }
  0x9f   :  { %v533_v31 = vmul.f32 0.08163802, %v517_v11  ;;  %v534_v33 = vmul.f32 0.08163802, %v518_v56  ;;  %v469_v4 = vadd.f32 %v453_v10, %v389_v19  ;;  %v782_v40 = vadd.f32 %v767_v20, %v341_v53  ;;  %v759_v41 = vld [vmem:[#allocation2 + $0xc1] sm:$0xff]  ;;  %v296_v17 = vld [vmem:[#allocation2 + $0xf0] sm:$0xff] }
  0xa0   :  { %v470_v48 = vadd.f32 %v454_v25, %v390_v23  ;;  %v606_v39 = vmul.f32 0.055335034, %v590_v26  ;;  %v670_v42 = vmul.f32 0.033562396, %v654_v9  ;;  %v589_v35 = vadd.f32 %v566_v13, %v565_v1  ;;  %72 = vst.msk [vmem:[#allocation2 + $0xe7] sm:$0x1] %vm64_vm1, %v63_v45 }
  0xa1   :  { %v653_v46 = vadd.f32 %v631_v36, %v486_v16  ;;  %v734_v49 = vmul.f32 0.018215904, %v718_v34  ;;  %v549_v29 = vadd.f32 %v533_v31, %v469_v4  ;;  %v717_v51 = vadd.f32 %v695_v38, %v406_v50  ;;  %v96_v57 = vld [vmem:[#allocation4 + $0x72] sm:$0x1]  ;;  %v112_v58 = vld [vmem:[#allocation4 + $0x7d] sm:$0x1] }
  0xa2   :  { %v550_v28 = vadd.f32 %v534_v33, %v470_v48  ;;  %v605_v53 = vmul.f32 0.055335034, %v589_v35  ;;  %v781_v61 = vadd.f32 %v759_v41, %v326_v52  ;;  %104 = vst.msk [vmem:[#allocation2 + $0xe6] sm:$0x1] %vm64_vm1, %v96_v57  ;;  %120 = vst.msk [vmem:[#allocation2 + $0xf9] sm:$0x1] %vm64_vm1, %v112_v58 }
  0xa3   :  { %v669_v18 = vmul.f32 0.033562396, %v653_v46  ;;  %v128_v59 = vld [vmem:[#allocation4 + $0x73] sm:$0x1]  ;;  %v798_v63 = vmul.f32 0.008846949, %v782_v40 }
  0xa4   :  { %v622_v62 = vadd.f32 %v606_v39, %v550_v28  ;;  %136 = vst.msk [vmem:[#allocation2 + $0xe5] sm:$0x1] %vm64_vm1, %v128_v59  ;;  %v144_v30 = vld [vmem:[#allocation4 + $0x7c] sm:$0x1]  ;;  %v176_v0 = vld [vmem:[#allocation4 + $0x7b] sm:$0x1]  ;;  %v621_v16 = vadd.f32 %v605_v53, %v549_v29 }
  0xa5   :  { %v733_v50 = vmul.f32 0.018215904, %v717_v51  ;;  %152 = vst.msk [vmem:[#allocation2 + $0xfa] sm:$0x1] %vm64_vm1, %v144_v30  ;;  %184 = vst.msk [vmem:[#allocation2 + $0xfb] sm:$0x1] %vm64_vm1, %v176_v0 }
  0xa6   :  { %v208_v5 = vld [vmem:[#allocation4 + $0x7a] sm:$0x1]  ;;  %v240_v3 = vld [vmem:[#allocation4 + $0x79] sm:$0x1]  ;;  %v686_v52 = vadd.f32 %v670_v42, %v622_v62  ;;  %v272_v2 = vld [vmem:[#allocation4 + $0x78] sm:$0x1]  ;;  %v685_v10 = vadd.f32 %v669_v18, %v621_v16 }
  0xa7   :  { %216 = vst.msk [vmem:[#allocation2 + $0xfc] sm:$0x1] %vm64_vm1, %v208_v5  ;;  %248 = vst.msk [vmem:[#allocation2 + $0xfd] sm:$0x1] %vm64_vm1, %v240_v3  ;;  %v295_v6 = vld [vmem:[#allocation2 + $0xe8] sm:$0xff]  ;;  %v344_v20 = vld [vmem:[#allocation2 + $0xf1] sm:$0xff] }
  0xa8   :  { %v160_v7 = vld [vmem:[#allocation4 + $0x74] sm:$0x1]  ;;  %v797_v11 = vmul.f32 0.008846949, %v781_v61  ;;  %280 = vst.msk [vmem:[#allocation2 + $0xfe] sm:$0x1] %vm64_vm1, %v272_v2  ;;  %v750_v15 = vadd.f32 %v734_v49, %v686_v52  ;;  %v749_v25 = vadd.f32 %v733_v50, %v685_v10 }
  0xa9   :  { %168 = vst.msk [vmem:[#allocation2 + $0xe4] sm:$0x1] %vm64_vm1, %v160_v7  ;;  %v192_v56 = vld [vmem:[#allocation4 + $0x75] sm:$0x1]  ;;  %v224_v13 = vld [vmem:[#allocation4 + $0x76] sm:$0x1] }
  0xaa   :  { %v327_v19 = vld [vmem:[#allocation2 + $0xe7] sm:$0xff]  ;;  %v3459_v23 = vld [vmem:[#allocation2 + $0xef] sm:$0xff]  ;;  %200 = vst.msk [vmem:[#allocation2 + $0xe3] sm:$0x1] %vm64_vm1, %v192_v56  ;;  %232 = vst.msk [vmem:[#allocation2 + $0xe2] sm:$0x1] %vm64_vm1, %v224_v13  ;;  %v3463_v31 = vadd.f32 %v798_v63, %v750_v15  ;;  %v3466_v48 = vadd.f32 %v797_v11, %v749_v25 }
  0xab   :  { %v311_v26 = vmul.f32 0.13459834, %v295_v6  ;;  %v343_v27 = vld [vmem:[#allocation2 + $0xe9] sm:$0xff]  ;;  %v312_v33 = vmul.f32 0.13459834, %v296_v17  ;;  %v360_v34 = vadd.f32 %v344_v20, %v3459_v23  ;;  %v424_v4 = vld [vmem:[#allocation2 + $0xf2] sm:$0xff] }
  0xac   :  { %v408_v1 = vld [vmem:[#allocation2 + $0xee] sm:$0xff]  ;;  %v359_v9 = vadd.f32 %v343_v27, %v327_v19  ;;  %v407_v36 = vld [vmem:[#allocation2 + $0xe6] sm:$0xff]  ;;  %859 = vrot.lane.b32.xlu1 %v3463_v31, %s3169_s0  ;;  %857 = vrot.lane.b32.xlu0 %v3466_v48, %s3169_s0  ;;  %v256_v30 = vld [vmem:[#allocation4 + $0x77] sm:$0x1]  ;;  %s3194_s15 = smov [#allocation7]  }
  0xad   :  { %v423_v38 = vld [vmem:[#allocation2 + $0xea] sm:$0xff]  ;;  %v440_v40 = vadd.f32 %v424_v4, %v408_v1  ;;  %v376_v35 = vmul.f32 0.12732457, %v360_v34  ;;  %v504_v46 = vld [vmem:[#allocation2 + $0xf3] sm:$0xff]  ;;  %264 = vst.msk [vmem:[#allocation2 + $0xe1] sm:$0x1] %vm64_vm1, %v256_v30 }
  0xae   :  { %v439_v39 = vadd.f32 %v423_v38, %v407_v36  ;;  %v487_v41 = vld [vmem:[#allocation2 + $0xe5] sm:$0xff]  ;;  %v488_v43 = vld [vmem:[#allocation2 + $0xed] sm:$0xff]  ;;  %v375_v42 = vmul.f32 0.12732457, %v359_v9  ;;  %v640_v58 = vld [vmem:[#allocation2 + $0xf5] sm:$0xff]  ;;  %vm1791_vm1 = vcmask 244968  }
  0xaf   :  { %v503_v45 = vld [vmem:[#allocation2 + $0xeb] sm:$0xff]  ;;  %v456_v29 = vmul.f32 0.10777792, %v440_v40  ;;  %v520_v51 = vadd.f32 %v504_v46, %v488_v43  ;;  %v576_v57 = vld [vmem:[#allocation2 + $0xf4] sm:$0xff]  ;;  %v392_v18 = vadd.f32 %v376_v35, %v312_v33  ;;  %s3061_s18 = sshll.u32 %s3194_s15, 4  ;;  %s3062_s18 = int_to_ptr.vmem [resolvable:$true] %s3061_s18 }
  0xb0   :  { %v519_v47 = vadd.f32 %v503_v45, %v487_v41  ;;  %v568_v28 = vld [vmem:[#allocation2 + $0xec] sm:$0xff]  ;;  %v455_v49 = vmul.f32 0.10777792, %v439_v39  ;;  %v391_v53 = vadd.f32 %v375_v42, %v311_v26  ;;  %v704_v62 = vld [vmem:[#allocation2 + $0xf6] sm:$0xff]  ;;  %v656_v16 = vadd.f32 %v640_v58, %v503_v45  ;;  %v567_v5 = vld [vmem:[#allocation2 + $0xe4] sm:$0xff]  ;;  %s3140_s19 = scalar_lea.vmem %s3062_s18, 2048  ;;  %p3145_p9 = scmp.lt.s32.totalorder %s3062_s18, %s3062_s18 }
  0xb1   :  { %v592_v59 = vadd.f32 %v576_v57, %v568_v28  ;;  %v768_v63 = vld [vmem:[#allocation2 + $0xf7] sm:$0xff]  ;;  %v536_v0 = vmul.f32 0.08163802, %v520_v51  ;;  %v720_v50 = vadd.f32 %v704_v62, %v423_v38  ;;  %v632_v3 = vld [vmem:[#allocation2 + $0xe3] sm:$0xff]  ;;  %v472_v6 = vadd.f32 %v456_v29, %v392_v18  ;;  %p3141_p8 = scmp.ne.s32.totalorder %s3062_s18, %s3140_s19  ;;  %p3146_p10 = scmp.lt.s32.totalorder %s3140_s19, %s3140_s19 }
  0xb2   :  { %v535_v61 = vmul.f32 0.08163802, %v519_v47  ;;  %v696_v52 = vld [vmem:[#allocation2 + $0xe2] sm:$0xff]  ;;  %v471_v2 = vadd.f32 %v455_v49, %v391_v53  ;;  %v591_v10 = vadd.f32 %v568_v28, %v567_v5  ;;  %v672_v11 = vmul.f32 0.033562396, %v656_v16 }
  0xb3   :  { %v608_v7 = vmul.f32 0.055335034, %v592_v59  ;;  %v784_v56 = vadd.f32 %v768_v63, %v343_v27  ;;  %v655_v13 = vadd.f32 %v632_v3, %v488_v43  ;;  %v552_v15 = vadd.f32 %v536_v0, %v472_v6  ;;  %p3147_p11 = por %p3146_p10, %p3145_p9 }
  0xb4   :  { %v551_v17 = vadd.f32 %v535_v61, %v471_v2  ;;  %v607_v19 = vmul.f32 0.055335034, %v591_v10  ;;  %v719_v25 = vadd.f32 %v696_v52, %v408_v1  ;;  %v736_v33 = vmul.f32 0.018215904, %v720_v50  ;;  %v760_v39 = vld [vmem:[#allocation2 + $0xe1] sm:$0xff]  ;;  %v838_v1 = vpop.permute.xlu1 %837 }
  0xb5   :  { %v671_v26 = vmul.f32 0.033562396, %v655_v13  ;;  %v624_v20 = vadd.f32 %v608_v7, %v552_v15  ;;  %v800_v38 = vmul.f32 0.008846949, %v784_v56  ;;  %v783_v40 = vadd.f32 %v760_v39, %v3459_v23  ;;  %884 = vst.msk [vmem:[#allocation3 + $0x10] sm:$0xff] %vm881_vm2, %v838_v1  ;;  %v834_v23 = vpop.permute.xlu0 %833  ;;  %p3148_p12 = pnand %p3147_p11, %p3141_p8 }
  0xb6   :  { %v623_v9 = vadd.f32 %v607_v19, %v551_v17  ;;  %v735_v34 = vmul.f32 0.018215904, %v719_v25  ;;  %882 = vst.msk [vmem:[#allocation3] sm:$0xff] %vm881_vm2, %v834_v23 }
  0xb7   :  { %v688_v36 = vadd.f32 %v672_v11, %v624_v20  ;;  %v799_v42 = vmul.f32 0.008846949, %v783_v40 }
  0xb8   :  { %v687_v4 = vadd.f32 %v671_v26, %v623_v9 }
  0xb9   :  { %v752_v41 = vadd.f32 %v736_v33, %v688_v36 }
  0xba   :  { %v751_v45 = vadd.f32 %v735_v34, %v687_v4 }
  0xbb   :  { %v3474_v27 = vadd.f32 %v800_v38, %v752_v41 }
  0xbc   :  { %v3476_v43 = vadd.f32 %v799_v42, %v751_v45  ;;  %v840_v35 = vpop.permute.xlu1 %839 }
  0xbd   :  { %863 = vrot.lane.b32.xlu1 %v3474_v27, %s3169_s0  ;;  %885 = vst.msk [vmem:[#allocation3 + $0x18] sm:$0xff] %vm881_vm2, %v840_v35 }
  0xbe   :  { %861 = vrot.lane.b32.xlu0 %v3476_v43, %s3169_s0 }
  0xc1   :  { %900 = vrot.lane.b32.xlu1 %v3325_v32, %s3170_s20  ;;  %v836_v46 = vpop.permute.xlu0 %835 }
  0xc2   :  { %898 = vrot.lane.b32.xlu0 %v3301_v37, %s3170_s20  ;;  %883 = vst.msk [vmem:[#allocation3 + $0x8] sm:$0xff] %vm881_vm2, %v836_v46 }
  0xc5   :  { %904 = vrot.lane.b32.xlu1 %v3320_v14, %s3170_s20 }
  0xc6   :  { %902 = vrot.lane.b32.xlu0 %v3277_v60, %s3170_s20 }
  0xc9   :  { %908 = vrot.lane.b32.xlu1 %v3351_v22, %s3170_s20 }
  0xca   :  { %906 = vrot.lane.b32.xlu0 %v3359_v24, %s3170_s20 }
  0xcd   :  { %912 = vrot.lane.b32.xlu1 %v3385_v54, %s3170_s20  ;;  %v844_v47 = vpop.permute.xlu1 %843 }
  0xce   :  { %910 = vrot.lane.b32.xlu0 %v3390_v8, %s3170_s20  ;;  %887 = vst.msk [vmem:[#allocation3 + $0x28] sm:$0xff] %vm881_vm2, %v844_v47 }
  0xd1   :  { %916 = vrot.lane.b32.xlu1 %v3411_v21, %s3170_s20 }
  0xd2   :  { %914 = vrot.lane.b32.xlu0 %v3414_v55, %s3170_s20  ;;  %v842_v28 = vpop.permute.xlu0 %841 }
  0xd3   :  { %886 = vst.msk [vmem:[#allocation3 + $0x20] sm:$0xff] %vm881_vm2, %v842_v28 }
  0xd5   :  { %920 = vrot.lane.b32.xlu1 %v3439_v12, %s3170_s20 }
  0xd6   :  { %918 = vrot.lane.b32.xlu0 %v3441_v44, %s3170_s20 }
  0xd9   :  { %924 = vrot.lane.b32.xlu1 %v3463_v31, %s3170_s20 }
  0xda   :  { %922 = vrot.lane.b32.xlu0 %v3466_v48, %s3170_s20 }
  0xdd   :  { %928 = vrot.lane.b32.xlu1 %v3474_v27, %s3170_s20 }
  0xde   :  { %926 = vrot.lane.b32.xlu0 %v3476_v43, %s3170_s20 }
  0xe0   :  { %v848_v49 = vpop.permute.xlu1 %847 }
  0xe1   :  { %965 = vrot.lane.b32.xlu1 %v3325_v32, %s3171_s21  ;;  %889 = vst.msk [vmem:[#allocation3 + $0x38] sm:$0xff] %vm881_vm2, %v848_v49 }
  0xe2   :  { %963 = vrot.lane.b32.xlu0 %v3301_v37, %s3171_s21 }
  0xe5   :  { %969 = vrot.lane.b32.xlu1 %v3320_v14, %s3171_s21  ;;  %v846_v29 = vpop.permute.xlu0 %845 }
  0xe6   :  { %967 = vrot.lane.b32.xlu0 %v3277_v60, %s3171_s21  ;;  %888 = vst.msk [vmem:[#allocation3 + $0x30] sm:$0xff] %vm881_vm2, %v846_v29 }
  0xe9   :  { %973 = vrot.lane.b32.xlu1 %v3351_v22, %s3171_s21 }
  0xea   :  { %971 = vrot.lane.b32.xlu0 %v3359_v24, %s3171_s21 }
  0xed   :  { %977 = vrot.lane.b32.xlu1 %v3385_v54, %s3171_s21 }
  0xee   :  { %975 = vrot.lane.b32.xlu0 %v3390_v8, %s3171_s21 }
  0xf1   :  { %981 = vrot.lane.b32.xlu1 %v3411_v21, %s3171_s21 }
  0xf2   :  { %979 = vrot.lane.b32.xlu0 %v3414_v55, %s3171_s21 }
  0xf3   :  { %v852_v51 = vpop.permute.xlu1 %851 }
  0xf4   :  { %891 = vst.msk [vmem:[#allocation3 + $0x48] sm:$0xff] %vm881_vm2, %v852_v51 }
  0xf5   :  { %985 = vrot.lane.b32.xlu1 %v3439_v12, %s3171_s21  ;;  %v850_v57 = vpop.permute.xlu0 %849 }
  0xf6   :  { %983 = vrot.lane.b32.xlu0 %v3441_v44, %s3171_s21  ;;  %890 = vst.msk [vmem:[#allocation3 + $0x40] sm:$0xff] %vm881_vm2, %v850_v57 }
  0xf9   :  { %989 = vrot.lane.b32.xlu1 %v3463_v31, %s3171_s21 }
  0xfa   :  { %987 = vrot.lane.b32.xlu0 %v3466_v48, %s3171_s21 }
  0xfd   :  { %993 = vrot.lane.b32.xlu1 %v3474_v27, %s3171_s21 }
  0xfe   :  { %991 = vrot.lane.b32.xlu0 %v3476_v43, %s3171_s21 }
 0x101   :  { %1030 = vrot.lane.b32.xlu1 %v3325_v32, %s3172_s22 }
 0x102   :  { %1028 = vrot.lane.b32.xlu0 %v3301_v37, %s3172_s22 }
 0x105   :  { %1034 = vrot.lane.b32.xlu1 %v3320_v14, %s3172_s22 }
 0x106   :  { %1032 = vrot.lane.b32.xlu0 %v3277_v60, %s3172_s22 }
 0x108   :  { %v856_v58 = vpop.permute.xlu1 %855 }
 0x109   :  { %1038 = vrot.lane.b32.xlu1 %v3351_v22, %s3172_s22  ;;  %893 = vst.msk [vmem:[#allocation3 + $0x58] sm:$0xff] %vm881_vm2, %v856_v58 }
 0x10a   :  { %1036 = vrot.lane.b32.xlu0 %v3359_v24, %s3172_s22 }
 0x10c   :  { %v854_v53 = vpop.permute.xlu0 %853 }
 0x10d   :  { %1042 = vrot.lane.b32.xlu1 %v3385_v54, %s3172_s22  ;;  %892 = vst.msk [vmem:[#allocation3 + $0x50] sm:$0xff] %vm881_vm2, %v854_v53 }
 0x10e   :  { %1040 = vrot.lane.b32.xlu0 %v3390_v8, %s3172_s22 }
 0x111   :  { %1046 = vrot.lane.b32.xlu1 %v3411_v21, %s3172_s22 }
 0x112   :  { %1044 = vrot.lane.b32.xlu0 %v3414_v55, %s3172_s22 }
 0x115   :  { %1050 = vrot.lane.b32.xlu1 %v3439_v12, %s3172_s22 }
 0x116   :  { %1048 = vrot.lane.b32.xlu0 %v3441_v44, %s3172_s22 }
 0x119   :  { %1054 = vrot.lane.b32.xlu1 %v3463_v31, %s3172_s22 }
 0x11a   :  { %1052 = vrot.lane.b32.xlu0 %v3466_v48, %s3172_s22 }
 0x11d   :  { %1058 = vrot.lane.b32.xlu1 %v3474_v27, %s3172_s22 }
 0x11e   :  { %1056 = vrot.lane.b32.xlu0 %v3476_v43, %s3172_s22  ;;  %v860_v18 = vpop.permute.xlu1 %859  ;;  %v858_v61 = vpop.permute.xlu0 %857 }
 0x11f   :  { %895 = vst.msk [vmem:[#allocation3 + $0x68] sm:$0xff] %vm881_vm2, %v860_v18  ;;  %894 = vst.msk [vmem:[#allocation3 + $0x60] sm:$0xff] %vm881_vm2, %v858_v61 }
 0x121   :  { %1095 = vrot.lane.b32.xlu1 %v3325_v32, %s3173_s23 }
 0x122   :  { %1093 = vrot.lane.b32.xlu0 %v3301_v37, %s3173_s23 }
 0x125   :  { %1099 = vrot.lane.b32.xlu1 %v3320_v14, %s3173_s23 }
 0x126   :  { %1097 = vrot.lane.b32.xlu0 %v3277_v60, %s3173_s23 }
 0x129   :  { %1103 = vrot.lane.b32.xlu1 %v3351_v22, %s3173_s23 }
 0x12a   :  { %1101 = vrot.lane.b32.xlu0 %v3359_v24, %s3173_s23 }
 0x12d   :  { %1107 = vrot.lane.b32.xlu1 %v3385_v54, %s3173_s23 }
 0x12e   :  { %1105 = vrot.lane.b32.xlu0 %v3390_v8, %s3173_s23 }
 0x12f   :  { %v864_v59 = vpop.permute.xlu1 %863 }
 0x130   :  { %897 = vst.msk [vmem:[#allocation3 + $0x78] sm:$0xff] %vm881_vm2, %v864_v59  ;;  %v862_v62 = vpop.permute.xlu0 %861 }
 0x131   :  { %896 = vst.msk [vmem:[#allocation3 + $0x70] sm:$0xff] %vm881_vm2, %v862_v62  ;;  %1111 = vrot.lane.b32.xlu1 %v3411_v21, %s3173_s23 }
 0x132   :  { %1109 = vrot.lane.b32.xlu0 %v3414_v55, %s3173_s23 }
 0x133   :  { %v901_v63 = vpop.permute.xlu1 %900 }
 0x134   :  { %948 = vst.msk [vmem:[#allocation3 + $0x8] sm:$0xff] %vm946_vm3, %v901_v63  ;;  %v899_v30 = vpop.permute.xlu0 %898 }
 0x135   :  { %947 = vst.msk [vmem:[#allocation3] sm:$0xff] %vm946_vm3, %v899_v30  ;;  %1115 = vrot.lane.b32.xlu1 %v3439_v12, %s3173_s23 }
 0x136   :  { %1113 = vrot.lane.b32.xlu0 %v3441_v44, %s3173_s23 }
 0x137   :  { %v905_v0 = vpop.permute.xlu1 %904 }
 0x138   :  { %950 = vst.msk [vmem:[#allocation3 + $0x18] sm:$0xff] %vm946_vm3, %v905_v0  ;;  %v903_v16 = vpop.permute.xlu0 %902 }
 0x139   :  { %949 = vst.msk [vmem:[#allocation3 + $0x10] sm:$0xff] %vm946_vm3, %v903_v16  ;;  %1119 = vrot.lane.b32.xlu1 %v3463_v31, %s3173_s23 }
 0x13a   :  { %1117 = vrot.lane.b32.xlu0 %v3466_v48, %s3173_s23 }
 0x13b   :  { %v909_v50 = vpop.permute.xlu1 %908 }
 0x13c   :  { %952 = vst.msk [vmem:[#allocation3 + $0x28] sm:$0xff] %vm946_vm3, %v909_v50  ;;  %v907_v5 = vpop.permute.xlu0 %906 }
 0x13d   :  { %951 = vst.msk [vmem:[#allocation3 + $0x20] sm:$0xff] %vm946_vm3, %v907_v5  ;;  %1123 = vrot.lane.b32.xlu1 %v3474_v27, %s3173_s23 }
 0x13e   :  { %1121 = vrot.lane.b32.xlu0 %v3476_v43, %s3173_s23 }
 0x13f   :  { %v913_v3 = vpop.permute.xlu1 %912 }
 0x140   :  { %954 = vst.msk [vmem:[#allocation3 + $0x38] sm:$0xff] %vm946_vm3, %v913_v3  ;;  %v911_v52 = vpop.permute.xlu0 %910 }
 0x141   :  { %953 = vst.msk [vmem:[#allocation3 + $0x30] sm:$0xff] %vm946_vm3, %v911_v52  ;;  %1160 = vrot.lane.b32.xlu1 %v3325_v32, %s3174_s24 }
 0x142   :  { %1158 = vrot.lane.b32.xlu0 %v3301_v37, %s3174_s24 }
 0x143   :  { %v917_v2 = vpop.permute.xlu1 %916 }
 0x144   :  { %956 = vst.msk [vmem:[#allocation3 + $0x48] sm:$0xff] %vm946_vm3, %v917_v2  ;;  %v915_v6 = vpop.permute.xlu0 %914 }
 0x145   :  { %955 = vst.msk [vmem:[#allocation3 + $0x40] sm:$0xff] %vm946_vm3, %v915_v6  ;;  %1164 = vrot.lane.b32.xlu1 %v3320_v14, %s3174_s24 }
 0x146   :  { %1162 = vrot.lane.b32.xlu0 %v3277_v60, %s3174_s24 }
 0x147   :  { %v921_v7 = vpop.permute.xlu1 %920 }
 0x148   :  { %958 = vst.msk [vmem:[#allocation3 + $0x58] sm:$0xff] %vm946_vm3, %v921_v7  ;;  %v919_v10 = vpop.permute.xlu0 %918 }
 0x149   :  { %957 = vst.msk [vmem:[#allocation3 + $0x50] sm:$0xff] %vm946_vm3, %v919_v10  ;;  %1168 = vrot.lane.b32.xlu1 %v3351_v22, %s3174_s24 }
 0x14a   :  { %1166 = vrot.lane.b32.xlu0 %v3359_v24, %s3174_s24 }
 0x14b   :  { %v925_v11 = vpop.permute.xlu1 %924 }
 0x14c   :  { %960 = vst.msk [vmem:[#allocation3 + $0x68] sm:$0xff] %vm946_vm3, %v925_v11  ;;  %v923_v56 = vpop.permute.xlu0 %922 }
 0x14d   :  { %959 = vst.msk [vmem:[#allocation3 + $0x60] sm:$0xff] %vm946_vm3, %v923_v56  ;;  %1172 = vrot.lane.b32.xlu1 %v3385_v54, %s3174_s24 }
 0x14e   :  { %1170 = vrot.lane.b32.xlu0 %v3390_v8, %s3174_s24 }
 0x14f   :  { %v929_v13 = vpop.permute.xlu1 %928 }
 0x150   :  { %962 = vst.msk [vmem:[#allocation3 + $0x78] sm:$0xff] %vm946_vm3, %v929_v13  ;;  %v927_v15 = vpop.permute.xlu0 %926 }
 0x151   :  { %961 = vst.msk [vmem:[#allocation3 + $0x70] sm:$0xff] %vm946_vm3, %v927_v15  ;;  %1176 = vrot.lane.b32.xlu1 %v3411_v21, %s3174_s24 }
 0x152   :  { %1174 = vrot.lane.b32.xlu0 %v3414_v55, %s3174_s24 }
 0x153   :  { %v966_v17 = vpop.permute.xlu1 %965 }
 0x154   :  { %1013 = vst.msk [vmem:[#allocation3 + $0x8] sm:$0xff] %vm1011_vm4, %v966_v17  ;;  %v964_v19 = vpop.permute.xlu0 %963 }
 0x155   :  { %1012 = vst.msk [vmem:[#allocation3] sm:$0xff] %vm1011_vm4, %v964_v19  ;;  %1180 = vrot.lane.b32.xlu1 %v3439_v12, %s3174_s24 }
 0x156   :  { %1178 = vrot.lane.b32.xlu0 %v3441_v44, %s3174_s24 }
 0x157   :  { %v970_v25 = vpop.permute.xlu1 %969 }
 0x158   :  { %1015 = vst.msk [vmem:[#allocation3 + $0x18] sm:$0xff] %vm1011_vm4, %v970_v25  ;;  %v968_v26 = vpop.permute.xlu0 %967 }
 0x159   :  { %1014 = vst.msk [vmem:[#allocation3 + $0x10] sm:$0xff] %vm1011_vm4, %v968_v26  ;;  %1184 = vrot.lane.b32.xlu1 %v3463_v31, %s3174_s24 }
 0x15a   :  { %1182 = vrot.lane.b32.xlu0 %v3466_v48, %s3174_s24 }
 0x15b   :  { %v974_v20 = vpop.permute.xlu1 %973 }
 0x15c   :  { %1017 = vst.msk [vmem:[#allocation3 + $0x28] sm:$0xff] %vm1011_vm4, %v974_v20  ;;  %v972_v33 = vpop.permute.xlu0 %971 }
 0x15d   :  { %1016 = vst.msk [vmem:[#allocation3 + $0x20] sm:$0xff] %vm1011_vm4, %v972_v33  ;;  %1188 = vrot.lane.b32.xlu1 %v3474_v27, %s3174_s24 }
 0x15e   :  { %1186 = vrot.lane.b32.xlu0 %v3476_v43, %s3174_s24 }
 0x15f   :  { %v978_v9 = vpop.permute.xlu1 %977 }
 0x160   :  { %1019 = vst.msk [vmem:[#allocation3 + $0x38] sm:$0xff] %vm1011_vm4, %v978_v9  ;;  %v976_v34 = vpop.permute.xlu0 %975 }
 0x161   :  { %1018 = vst.msk [vmem:[#allocation3 + $0x30] sm:$0xff] %vm1011_vm4, %v976_v34  ;;  %1225 = vrot.lane.b32.xlu1 %v3325_v32, %s3175_s25 }
 0x162   :  { %1223 = vrot.lane.b32.xlu0 %v3301_v37, %s3175_s25 }
 0x163   :  { %v982_v36 = vpop.permute.xlu1 %981 }
 0x164   :  { %1021 = vst.msk [vmem:[#allocation3 + $0x48] sm:$0xff] %vm1011_vm4, %v982_v36  ;;  %v980_v38 = vpop.permute.xlu0 %979 }
 0x165   :  { %1020 = vst.msk [vmem:[#allocation3 + $0x40] sm:$0xff] %vm1011_vm4, %v980_v38  ;;  %1229 = vrot.lane.b32.xlu1 %v3320_v14, %s3175_s25 }
 0x166   :  { %1227 = vrot.lane.b32.xlu0 %v3277_v60, %s3175_s25 }
 0x167   :  { %v986_v4 = vpop.permute.xlu1 %985 }
 0x168   :  { %1023 = vst.msk [vmem:[#allocation3 + $0x58] sm:$0xff] %vm1011_vm4, %v986_v4  ;;  %v984_v39 = vpop.permute.xlu0 %983 }
 0x169   :  { %1022 = vst.msk [vmem:[#allocation3 + $0x50] sm:$0xff] %vm1011_vm4, %v984_v39  ;;  %1233 = vrot.lane.b32.xlu1 %v3351_v22, %s3175_s25 }
 0x16a   :  { %1231 = vrot.lane.b32.xlu0 %v3359_v24, %s3175_s25 }
 0x16b   :  { %v990_v40 = vpop.permute.xlu1 %989 }
 0x16c   :  { %1025 = vst.msk [vmem:[#allocation3 + $0x68] sm:$0xff] %vm1011_vm4, %v990_v40  ;;  %v988_v41 = vpop.permute.xlu0 %987 }
 0x16d   :  { %1024 = vst.msk [vmem:[#allocation3 + $0x60] sm:$0xff] %vm1011_vm4, %v988_v41  ;;  %1237 = vrot.lane.b32.xlu1 %v3385_v54, %s3175_s25 }
 0x16e   :  { %1235 = vrot.lane.b32.xlu0 %v3390_v8, %s3175_s25 }
 0x16f   :  { %v994_v45 = vpop.permute.xlu1 %993 }
 0x170   :  { %1027 = vst.msk [vmem:[#allocation3 + $0x78] sm:$0xff] %vm1011_vm4, %v994_v45  ;;  %v992_v42 = vpop.permute.xlu0 %991 }
 0x171   :  { %1026 = vst.msk [vmem:[#allocation3 + $0x70] sm:$0xff] %vm1011_vm4, %v992_v42  ;;  %1241 = vrot.lane.b32.xlu1 %v3411_v21, %s3175_s25 }
 0x172   :  { %1239 = vrot.lane.b32.xlu0 %v3414_v55, %s3175_s25 }
 0x173   :  { %v1031_v1 = vpop.permute.xlu1 %1030 }
 0x174   :  { %1078 = vst.msk [vmem:[#allocation3 + $0x8] sm:$0xff] %vm1076_vm5, %v1031_v1  ;;  %v1029_v23 = vpop.permute.xlu0 %1028 }
 0x175   :  { %1077 = vst.msk [vmem:[#allocation3] sm:$0xff] %vm1076_vm5, %v1029_v23  ;;  %1245 = vrot.lane.b32.xlu1 %v3439_v12, %s3175_s25 }
 0x176   :  { %1243 = vrot.lane.b32.xlu0 %v3441_v44, %s3175_s25 }
 0x177   :  { %v1035_v35 = vpop.permute.xlu1 %1034 }
 0x178   :  { %1080 = vst.msk [vmem:[#allocation3 + $0x18] sm:$0xff] %vm1076_vm5, %v1035_v35  ;;  %v1033_v46 = vpop.permute.xlu0 %1032 }
 0x179   :  { %1079 = vst.msk [vmem:[#allocation3 + $0x10] sm:$0xff] %vm1076_vm5, %v1033_v46  ;;  %1249 = vrot.lane.b32.xlu1 %v3463_v31, %s3175_s25 }
 0x17a   :  { %1247 = vrot.lane.b32.xlu0 %v3466_v48, %s3175_s25 }
 0x17b   :  { %v1039_v47 = vpop.permute.xlu1 %1038 }
 0x17c   :  { %1082 = vst.msk [vmem:[#allocation3 + $0x28] sm:$0xff] %vm1076_vm5, %v1039_v47  ;;  %v1037_v28 = vpop.permute.xlu0 %1036 }
 0x17d   :  { %1081 = vst.msk [vmem:[#allocation3 + $0x20] sm:$0xff] %vm1076_vm5, %v1037_v28  ;;  %1253 = vrot.lane.b32.xlu1 %v3474_v27, %s3175_s25 }
 0x17e   :  { %1251 = vrot.lane.b32.xlu0 %v3476_v43, %s3175_s25 }
 0x17f   :  { %v1043_v49 = vpop.permute.xlu1 %1042 }
 0x180   :  { %1084 = vst.msk [vmem:[#allocation3 + $0x38] sm:$0xff] %vm1076_vm5, %v1043_v49  ;;  %v1041_v29 = vpop.permute.xlu0 %1040 }
 0x181   :  { %1083 = vst.msk [vmem:[#allocation3 + $0x30] sm:$0xff] %vm1076_vm5, %v1041_v29  ;;  %1290 = vrot.lane.b32.xlu1 %v3325_v32, %s3176_s26 }
 0x182   :  { %1288 = vrot.lane.b32.xlu0 %v3301_v37, %s3176_s26 }
 0x183   :  { %v1047_v51 = vpop.permute.xlu1 %1046 }
 0x184   :  { %1086 = vst.msk [vmem:[#allocation3 + $0x48] sm:$0xff] %vm1076_vm5, %v1047_v51  ;;  %v1045_v57 = vpop.permute.xlu0 %1044 }
 0x185   :  { %1085 = vst.msk [vmem:[#allocation3 + $0x40] sm:$0xff] %vm1076_vm5, %v1045_v57  ;;  %1294 = vrot.lane.b32.xlu1 %v3320_v14, %s3176_s26 }
 0x186   :  { %1292 = vrot.lane.b32.xlu0 %v3277_v60, %s3176_s26 }
 0x187   :  { %v1051_v58 = vpop.permute.xlu1 %1050 }
 0x188   :  { %1088 = vst.msk [vmem:[#allocation3 + $0x58] sm:$0xff] %vm1076_vm5, %v1051_v58  ;;  %v1049_v53 = vpop.permute.xlu0 %1048 }
 0x189   :  { %1087 = vst.msk [vmem:[#allocation3 + $0x50] sm:$0xff] %vm1076_vm5, %v1049_v53  ;;  %1298 = vrot.lane.b32.xlu1 %v3351_v22, %s3176_s26 }
 0x18a   :  { %1296 = vrot.lane.b32.xlu0 %v3359_v24, %s3176_s26 }
 0x18b   :  { %v1055_v18 = vpop.permute.xlu1 %1054 }
 0x18c   :  { %1090 = vst.msk [vmem:[#allocation3 + $0x68] sm:$0xff] %vm1076_vm5, %v1055_v18  ;;  %v1053_v61 = vpop.permute.xlu0 %1052 }
 0x18d   :  { %1089 = vst.msk [vmem:[#allocation3 + $0x60] sm:$0xff] %vm1076_vm5, %v1053_v61  ;;  %1302 = vrot.lane.b32.xlu1 %v3385_v54, %s3176_s26 }
 0x18e   :  { %1300 = vrot.lane.b32.xlu0 %v3390_v8, %s3176_s26 }
 0x18f   :  { %v1059_v59 = vpop.permute.xlu1 %1058 }
 0x190   :  { %1092 = vst.msk [vmem:[#allocation3 + $0x78] sm:$0xff] %vm1076_vm5, %v1059_v59  ;;  %v1057_v62 = vpop.permute.xlu0 %1056 }
 0x191   :  { %1091 = vst.msk [vmem:[#allocation3 + $0x70] sm:$0xff] %vm1076_vm5, %v1057_v62  ;;  %1306 = vrot.lane.b32.xlu1 %v3411_v21, %s3176_s26 }
 0x192   :  { %1304 = vrot.lane.b32.xlu0 %v3414_v55, %s3176_s26 }
 0x193   :  { %v1096_v63 = vpop.permute.xlu1 %1095 }
 0x194   :  { %1143 = vst.msk [vmem:[#allocation3 + $0x8] sm:$0xff] %vm1141_vm6, %v1096_v63  ;;  %v1094_v30 = vpop.permute.xlu0 %1093 }
 0x195   :  { %1142 = vst.msk [vmem:[#allocation3] sm:$0xff] %vm1141_vm6, %v1094_v30  ;;  %1310 = vrot.lane.b32.xlu1 %v3439_v12, %s3176_s26 }
 0x196   :  { %1308 = vrot.lane.b32.xlu0 %v3441_v44, %s3176_s26 }
 0x197   :  { %v1100_v0 = vpop.permute.xlu1 %1099 }
 0x198   :  { %1145 = vst.msk [vmem:[#allocation3 + $0x18] sm:$0xff] %vm1141_vm6, %v1100_v0  ;;  %v1098_v16 = vpop.permute.xlu0 %1097 }
 0x199   :  { %1144 = vst.msk [vmem:[#allocation3 + $0x10] sm:$0xff] %vm1141_vm6, %v1098_v16  ;;  %1314 = vrot.lane.b32.xlu1 %v3463_v31, %s3176_s26 }
 0x19a   :  { %1312 = vrot.lane.b32.xlu0 %v3466_v48, %s3176_s26 }
 0x19b   :  { %v1104_v50 = vpop.permute.xlu1 %1103 }
 0x19c   :  { %1147 = vst.msk [vmem:[#allocation3 + $0x28] sm:$0xff] %vm1141_vm6, %v1104_v50  ;;  %v1102_v5 = vpop.permute.xlu0 %1101 }
 0x19d   :  { %1146 = vst.msk [vmem:[#allocation3 + $0x20] sm:$0xff] %vm1141_vm6, %v1102_v5  ;;  %1318 = vrot.lane.b32.xlu1 %v3474_v27, %s3176_s26 }
 0x19e   :  { %1316 = vrot.lane.b32.xlu0 %v3476_v43, %s3176_s26 }
 0x19f   :  { %v1108_v3 = vpop.permute.xlu1 %1107 }
 0x1a0   :  { %1149 = vst.msk [vmem:[#allocation3 + $0x38] sm:$0xff] %vm1141_vm6, %v1108_v3  ;;  %v1106_v52 = vpop.permute.xlu0 %1105 }
 0x1a1   :  { %1148 = vst.msk [vmem:[#allocation3 + $0x30] sm:$0xff] %vm1141_vm6, %v1106_v52  ;;  %1355 = vrot.lane.b32.xlu1 %v3325_v32, %s3177_s27 }
 0x1a2   :  { %1353 = vrot.lane.b32.xlu0 %v3301_v37, %s3177_s27 }
 0x1a3   :  { %v1112_v2 = vpop.permute.xlu1 %1111 }
 0x1a4   :  { %1151 = vst.msk [vmem:[#allocation3 + $0x48] sm:$0xff] %vm1141_vm6, %v1112_v2  ;;  %v1110_v6 = vpop.permute.xlu0 %1109 }
 0x1a5   :  { %1150 = vst.msk [vmem:[#allocation3 + $0x40] sm:$0xff] %vm1141_vm6, %v1110_v6  ;;  %1359 = vrot.lane.b32.xlu1 %v3320_v14, %s3177_s27 }
 0x1a6   :  { %1357 = vrot.lane.b32.xlu0 %v3277_v60, %s3177_s27 }
 0x1a7   :  { %v1116_v7 = vpop.permute.xlu1 %1115 }
 0x1a8   :  { %1153 = vst.msk [vmem:[#allocation3 + $0x58] sm:$0xff] %vm1141_vm6, %v1116_v7  ;;  %v1114_v10 = vpop.permute.xlu0 %1113 }
 0x1a9   :  { %1152 = vst.msk [vmem:[#allocation3 + $0x50] sm:$0xff] %vm1141_vm6, %v1114_v10  ;;  %1363 = vrot.lane.b32.xlu1 %v3351_v22, %s3177_s27 }
 0x1aa   :  { %1361 = vrot.lane.b32.xlu0 %v3359_v24, %s3177_s27 }
 0x1ab   :  { %v1120_v11 = vpop.permute.xlu1 %1119 }
 0x1ac   :  { %1155 = vst.msk [vmem:[#allocation3 + $0x68] sm:$0xff] %vm1141_vm6, %v1120_v11  ;;  %v1118_v56 = vpop.permute.xlu0 %1117 }
 0x1ad   :  { %1154 = vst.msk [vmem:[#allocation3 + $0x60] sm:$0xff] %vm1141_vm6, %v1118_v56  ;;  %1367 = vrot.lane.b32.xlu1 %v3385_v54, %s3177_s27 }
 0x1ae   :  { %1365 = vrot.lane.b32.xlu0 %v3390_v8, %s3177_s27 }
 0x1af   :  { %v1124_v13 = vpop.permute.xlu1 %1123 }
 0x1b0   :  { %1157 = vst.msk [vmem:[#allocation3 + $0x78] sm:$0xff] %vm1141_vm6, %v1124_v13  ;;  %v1122_v15 = vpop.permute.xlu0 %1121 }
 0x1b1   :  { %1156 = vst.msk [vmem:[#allocation3 + $0x70] sm:$0xff] %vm1141_vm6, %v1122_v15  ;;  %1371 = vrot.lane.b32.xlu1 %v3411_v21, %s3177_s27 }
 0x1b2   :  { %1369 = vrot.lane.b32.xlu0 %v3414_v55, %s3177_s27 }
 0x1b3   :  { %v1161_v17 = vpop.permute.xlu1 %1160 }
 0x1b4   :  { %1208 = vst.msk [vmem:[#allocation3 + $0x8] sm:$0xff] %vm1206_vm7, %v1161_v17  ;;  %v1159_v19 = vpop.permute.xlu0 %1158 }
 0x1b5   :  { %1207 = vst.msk [vmem:[#allocation3] sm:$0xff] %vm1206_vm7, %v1159_v19  ;;  %1375 = vrot.lane.b32.xlu1 %v3439_v12, %s3177_s27 }
 0x1b6   :  { %1373 = vrot.lane.b32.xlu0 %v3441_v44, %s3177_s27 }
 0x1b7   :  { %v1165_v25 = vpop.permute.xlu1 %1164 }
 0x1b8   :  { %1210 = vst.msk [vmem:[#allocation3 + $0x18] sm:$0xff] %vm1206_vm7, %v1165_v25  ;;  %v1163_v26 = vpop.permute.xlu0 %1162 }
 0x1b9   :  { %1209 = vst.msk [vmem:[#allocation3 + $0x10] sm:$0xff] %vm1206_vm7, %v1163_v26  ;;  %1379 = vrot.lane.b32.xlu1 %v3463_v31, %s3177_s27 }
 0x1ba   :  { %1377 = vrot.lane.b32.xlu0 %v3466_v48, %s3177_s27 }
 0x1bb   :  { %v1169_v20 = vpop.permute.xlu1 %1168 }
 0x1bc   :  { %1212 = vst.msk [vmem:[#allocation3 + $0x28] sm:$0xff] %vm1206_vm7, %v1169_v20  ;;  %v1167_v33 = vpop.permute.xlu0 %1166 }
 0x1bd   :  { %1211 = vst.msk [vmem:[#allocation3 + $0x20] sm:$0xff] %vm1206_vm7, %v1167_v33  ;;  %1383 = vrot.lane.b32.xlu1 %v3474_v27, %s3177_s27 }
 0x1be   :  { %1381 = vrot.lane.b32.xlu0 %v3476_v43, %s3177_s27 }
 0x1bf   :  { %v1173_v9 = vpop.permute.xlu1 %1172 }
 0x1c0   :  { %1214 = vst.msk [vmem:[#allocation3 + $0x38] sm:$0xff] %vm1206_vm7, %v1173_v9  ;;  %v1171_v34 = vpop.permute.xlu0 %1170 }
 0x1c1   :  { %1213 = vst.msk [vmem:[#allocation3 + $0x30] sm:$0xff] %vm1206_vm7, %v1171_v34  ;;  %1420 = vrot.lane.b32.xlu1 %v3325_v32, %s3178_s28 }
 0x1c2   :  { %1418 = vrot.lane.b32.xlu0 %v3301_v37, %s3178_s28 }
 0x1c3   :  { %v1177_v36 = vpop.permute.xlu1 %1176 }
 0x1c4   :  { %1216 = vst.msk [vmem:[#allocation3 + $0x48] sm:$0xff] %vm1206_vm7, %v1177_v36  ;;  %v1175_v38 = vpop.permute.xlu0 %1174 }
 0x1c5   :  { %1215 = vst.msk [vmem:[#allocation3 + $0x40] sm:$0xff] %vm1206_vm7, %v1175_v38  ;;  %1424 = vrot.lane.b32.xlu1 %v3320_v14, %s3178_s28 }
 0x1c6   :  { %1422 = vrot.lane.b32.xlu0 %v3277_v60, %s3178_s28 }
 0x1c7   :  { %v1181_v4 = vpop.permute.xlu1 %1180 }
 0x1c8   :  { %1218 = vst.msk [vmem:[#allocation3 + $0x58] sm:$0xff] %vm1206_vm7, %v1181_v4  ;;  %v1179_v39 = vpop.permute.xlu0 %1178 }
 0x1c9   :  { %1217 = vst.msk [vmem:[#allocation3 + $0x50] sm:$0xff] %vm1206_vm7, %v1179_v39  ;;  %1428 = vrot.lane.b32.xlu1 %v3351_v22, %s3178_s28 }
 0x1ca   :  { %1426 = vrot.lane.b32.xlu0 %v3359_v24, %s3178_s28 }
 0x1cb   :  { %v1185_v40 = vpop.permute.xlu1 %1184 }
 0x1cc   :  { %1220 = vst.msk [vmem:[#allocation3 + $0x68] sm:$0xff] %vm1206_vm7, %v1185_v40  ;;  %v1183_v41 = vpop.permute.xlu0 %1182 }
 0x1cd   :  { %1219 = vst.msk [vmem:[#allocation3 + $0x60] sm:$0xff] %vm1206_vm7, %v1183_v41  ;;  %1432 = vrot.lane.b32.xlu1 %v3385_v54, %s3178_s28 }
 0x1ce   :  { %1430 = vrot.lane.b32.xlu0 %v3390_v8, %s3178_s28 }
 0x1cf   :  { %v1189_v45 = vpop.permute.xlu1 %1188 }
 0x1d0   :  { %1222 = vst.msk [vmem:[#allocation3 + $0x78] sm:$0xff] %vm1206_vm7, %v1189_v45  ;;  %v1187_v42 = vpop.permute.xlu0 %1186 }
 0x1d1   :  { %1221 = vst.msk [vmem:[#allocation3 + $0x70] sm:$0xff] %vm1206_vm7, %v1187_v42  ;;  %1436 = vrot.lane.b32.xlu1 %v3411_v21, %s3178_s28 }
 0x1d2   :  { %1434 = vrot.lane.b32.xlu0 %v3414_v55, %s3178_s28 }
 0x1d3   :  { %v1226_v1 = vpop.permute.xlu1 %1225 }
 0x1d4   :  { %1273 = vst.msk [vmem:[#allocation3 + $0x8] sm:$0xff] %vm1271_vm8, %v1226_v1  ;;  %v1224_v23 = vpop.permute.xlu0 %1223 }
 0x1d5   :  { %1272 = vst.msk [vmem:[#allocation3] sm:$0xff] %vm1271_vm8, %v1224_v23  ;;  %1440 = vrot.lane.b32.xlu1 %v3439_v12, %s3178_s28 }
 0x1d6   :  { %1438 = vrot.lane.b32.xlu0 %v3441_v44, %s3178_s28 }
 0x1d7   :  { %v1230_v35 = vpop.permute.xlu1 %1229 }
 0x1d8   :  { %1275 = vst.msk [vmem:[#allocation3 + $0x18] sm:$0xff] %vm1271_vm8, %v1230_v35  ;;  %v1228_v46 = vpop.permute.xlu0 %1227 }
 0x1d9   :  { %1274 = vst.msk [vmem:[#allocation3 + $0x10] sm:$0xff] %vm1271_vm8, %v1228_v46  ;;  %1444 = vrot.lane.b32.xlu1 %v3463_v31, %s3178_s28 }
 0x1da   :  { %1442 = vrot.lane.b32.xlu0 %v3466_v48, %s3178_s28 }
 0x1db   :  { %v1234_v47 = vpop.permute.xlu1 %1233 }
 0x1dc   :  { %1277 = vst.msk [vmem:[#allocation3 + $0x28] sm:$0xff] %vm1271_vm8, %v1234_v47  ;;  %v1232_v28 = vpop.permute.xlu0 %1231 }
 0x1dd   :  { %1276 = vst.msk [vmem:[#allocation3 + $0x20] sm:$0xff] %vm1271_vm8, %v1232_v28  ;;  %1448 = vrot.lane.b32.xlu1 %v3474_v27, %s3178_s28 }
 0x1de   :  { %1446 = vrot.lane.b32.xlu0 %v3476_v43, %s3178_s28 }
 0x1df   :  { %v1238_v49 = vpop.permute.xlu1 %1237 }
 0x1e0   :  { %1279 = vst.msk [vmem:[#allocation3 + $0x38] sm:$0xff] %vm1271_vm8, %v1238_v49  ;;  %v1236_v29 = vpop.permute.xlu0 %1235 }
 0x1e1   :  { %1278 = vst.msk [vmem:[#allocation3 + $0x30] sm:$0xff] %vm1271_vm8, %v1236_v29  ;;  %1485 = vrot.lane.b32.xlu1 %v3325_v32, %s3179_s29 }
 0x1e2   :  { %1483 = vrot.lane.b32.xlu0 %v3301_v37, %s3179_s29 }
 0x1e3   :  { %v1242_v51 = vpop.permute.xlu1 %1241 }
 0x1e4   :  { %1281 = vst.msk [vmem:[#allocation3 + $0x48] sm:$0xff] %vm1271_vm8, %v1242_v51  ;;  %v1240_v57 = vpop.permute.xlu0 %1239 }
 0x1e5   :  { %1280 = vst.msk [vmem:[#allocation3 + $0x40] sm:$0xff] %vm1271_vm8, %v1240_v57  ;;  %1489 = vrot.lane.b32.xlu1 %v3320_v14, %s3179_s29 }
 0x1e6   :  { %1487 = vrot.lane.b32.xlu0 %v3277_v60, %s3179_s29 }
 0x1e7   :  { %v1246_v58 = vpop.permute.xlu1 %1245 }
 0x1e8   :  { %1283 = vst.msk [vmem:[#allocation3 + $0x58] sm:$0xff] %vm1271_vm8, %v1246_v58  ;;  %v1244_v53 = vpop.permute.xlu0 %1243 }
 0x1e9   :  { %1282 = vst.msk [vmem:[#allocation3 + $0x50] sm:$0xff] %vm1271_vm8, %v1244_v53  ;;  %1493 = vrot.lane.b32.xlu1 %v3351_v22, %s3179_s29 }
 0x1ea   :  { %1491 = vrot.lane.b32.xlu0 %v3359_v24, %s3179_s29 }
 0x1eb   :  { %v1250_v18 = vpop.permute.xlu1 %1249 }
 0x1ec   :  { %1285 = vst.msk [vmem:[#allocation3 + $0x68] sm:$0xff] %vm1271_vm8, %v1250_v18  ;;  %v1248_v61 = vpop.permute.xlu0 %1247 }
 0x1ed   :  { %1284 = vst.msk [vmem:[#allocation3 + $0x60] sm:$0xff] %vm1271_vm8, %v1248_v61  ;;  %1497 = vrot.lane.b32.xlu1 %v3385_v54, %s3179_s29 }
 0x1ee   :  { %1495 = vrot.lane.b32.xlu0 %v3390_v8, %s3179_s29 }
 0x1ef   :  { %v1254_v59 = vpop.permute.xlu1 %1253 }
 0x1f0   :  { %1287 = vst.msk [vmem:[#allocation3 + $0x78] sm:$0xff] %vm1271_vm8, %v1254_v59  ;;  %v1252_v62 = vpop.permute.xlu0 %1251 }
 0x1f1   :  { %1286 = vst.msk [vmem:[#allocation3 + $0x70] sm:$0xff] %vm1271_vm8, %v1252_v62  ;;  %1501 = vrot.lane.b32.xlu1 %v3411_v21, %s3179_s29 }
 0x1f2   :  { %1499 = vrot.lane.b32.xlu0 %v3414_v55, %s3179_s29 }
 0x1f3   :  { %v1291_v63 = vpop.permute.xlu1 %1290 }
 0x1f4   :  { %1338 = vst.msk [vmem:[#allocation3 + $0x8] sm:$0xff] %vm1336_vm9, %v1291_v63  ;;  %v1289_v30 = vpop.permute.xlu0 %1288 }
 0x1f5   :  { %1337 = vst.msk [vmem:[#allocation3] sm:$0xff] %vm1336_vm9, %v1289_v30  ;;  %1505 = vrot.lane.b32.xlu1 %v3439_v12, %s3179_s29 }
 0x1f6   :  { %1503 = vrot.lane.b32.xlu0 %v3441_v44, %s3179_s29 }
 0x1f7   :  { %v1295_v0 = vpop.permute.xlu1 %1294 }
 0x1f8   :  { %1340 = vst.msk [vmem:[#allocation3 + $0x18] sm:$0xff] %vm1336_vm9, %v1295_v0  ;;  %v1293_v16 = vpop.permute.xlu0 %1292 }
 0x1f9   :  { %1339 = vst.msk [vmem:[#allocation3 + $0x10] sm:$0xff] %vm1336_vm9, %v1293_v16  ;;  %1509 = vrot.lane.b32.xlu1 %v3463_v31, %s3179_s29 }
 0x1fa   :  { %1507 = vrot.lane.b32.xlu0 %v3466_v48, %s3179_s29 }
 0x1fb   :  { %v1299_v50 = vpop.permute.xlu1 %1298 }
 0x1fc   :  { %1342 = vst.msk [vmem:[#allocation3 + $0x28] sm:$0xff] %vm1336_vm9, %v1299_v50  ;;  %v1297_v5 = vpop.permute.xlu0 %1296 }
 0x1fd   :  { %1341 = vst.msk [vmem:[#allocation3 + $0x20] sm:$0xff] %vm1336_vm9, %v1297_v5  ;;  %1513 = vrot.lane.b32.xlu1 %v3474_v27, %s3179_s29 }
 0x1fe   :  { %1511 = vrot.lane.b32.xlu0 %v3476_v43, %s3179_s29 }
 0x1ff   :  { %v1303_v3 = vpop.permute.xlu1 %1302 }
 0x200   :  { %1344 = vst.msk [vmem:[#allocation3 + $0x38] sm:$0xff] %vm1336_vm9, %v1303_v3  ;;  %v1301_v52 = vpop.permute.xlu0 %1300 }
 0x201   :  { %1343 = vst.msk [vmem:[#allocation3 + $0x30] sm:$0xff] %vm1336_vm9, %v1301_v52  ;;  %1550 = vrot.lane.b32.xlu1 %v3325_v32, %s3180_s30 }
 0x202   :  { %1548 = vrot.lane.b32.xlu0 %v3301_v37, %s3180_s30 }
 0x203   :  { %v1307_v2 = vpop.permute.xlu1 %1306 }
 0x204   :  { %1346 = vst.msk [vmem:[#allocation3 + $0x48] sm:$0xff] %vm1336_vm9, %v1307_v2  ;;  %v1305_v6 = vpop.permute.xlu0 %1304 }
 0x205   :  { %1345 = vst.msk [vmem:[#allocation3 + $0x40] sm:$0xff] %vm1336_vm9, %v1305_v6  ;;  %1554 = vrot.lane.b32.xlu1 %v3320_v14, %s3180_s30 }
 0x206   :  { %1552 = vrot.lane.b32.xlu0 %v3277_v60, %s3180_s30 }
 0x207   :  { %v1311_v7 = vpop.permute.xlu1 %1310 }
 0x208   :  { %1348 = vst.msk [vmem:[#allocation3 + $0x58] sm:$0xff] %vm1336_vm9, %v1311_v7  ;;  %v1309_v10 = vpop.permute.xlu0 %1308 }
 0x209   :  { %1347 = vst.msk [vmem:[#allocation3 + $0x50] sm:$0xff] %vm1336_vm9, %v1309_v10  ;;  %1558 = vrot.lane.b32.xlu1 %v3351_v22, %s3180_s30 }
 0x20a   :  { %1556 = vrot.lane.b32.xlu0 %v3359_v24, %s3180_s30 }
 0x20b   :  { %v1315_v11 = vpop.permute.xlu1 %1314 }
 0x20c   :  { %1350 = vst.msk [vmem:[#allocation3 + $0x68] sm:$0xff] %vm1336_vm9, %v1315_v11  ;;  %v1313_v56 = vpop.permute.xlu0 %1312 }
 0x20d   :  { %1349 = vst.msk [vmem:[#allocation3 + $0x60] sm:$0xff] %vm1336_vm9, %v1313_v56  ;;  %1562 = vrot.lane.b32.xlu1 %v3385_v54, %s3180_s30 }
 0x20e   :  { %1560 = vrot.lane.b32.xlu0 %v3390_v8, %s3180_s30 }
 0x20f   :  { %v1319_v13 = vpop.permute.xlu1 %1318 }
 0x210   :  { %1352 = vst.msk [vmem:[#allocation3 + $0x78] sm:$0xff] %vm1336_vm9, %v1319_v13  ;;  %v1317_v15 = vpop.permute.xlu0 %1316 }
 0x211   :  { %1351 = vst.msk [vmem:[#allocation3 + $0x70] sm:$0xff] %vm1336_vm9, %v1317_v15  ;;  %1566 = vrot.lane.b32.xlu1 %v3411_v21, %s3180_s30 }
 0x212   :  { %1564 = vrot.lane.b32.xlu0 %v3414_v55, %s3180_s30 }
 0x213   :  { %v1356_v17 = vpop.permute.xlu1 %1355 }
 0x214   :  { %1403 = vst.msk [vmem:[#allocation3 + $0x8] sm:$0xff] %vm1401_vm10, %v1356_v17  ;;  %v1354_v19 = vpop.permute.xlu0 %1353 }
 0x215   :  { %1402 = vst.msk [vmem:[#allocation3] sm:$0xff] %vm1401_vm10, %v1354_v19  ;;  %1570 = vrot.lane.b32.xlu1 %v3439_v12, %s3180_s30 }
 0x216   :  { %1568 = vrot.lane.b32.xlu0 %v3441_v44, %s3180_s30 }
 0x217   :  { %v1360_v25 = vpop.permute.xlu1 %1359 }
 0x218   :  { %1405 = vst.msk [vmem:[#allocation3 + $0x18] sm:$0xff] %vm1401_vm10, %v1360_v25  ;;  %v1358_v26 = vpop.permute.xlu0 %1357 }
 0x219   :  { %1404 = vst.msk [vmem:[#allocation3 + $0x10] sm:$0xff] %vm1401_vm10, %v1358_v26  ;;  %1574 = vrot.lane.b32.xlu1 %v3463_v31, %s3180_s30 }
 0x21a   :  { %1572 = vrot.lane.b32.xlu0 %v3466_v48, %s3180_s30 }
 0x21b   :  { %v1364_v20 = vpop.permute.xlu1 %1363 }
 0x21c   :  { %1407 = vst.msk [vmem:[#allocation3 + $0x28] sm:$0xff] %vm1401_vm10, %v1364_v20  ;;  %v1362_v33 = vpop.permute.xlu0 %1361 }
 0x21d   :  { %1406 = vst.msk [vmem:[#allocation3 + $0x20] sm:$0xff] %vm1401_vm10, %v1362_v33  ;;  %1578 = vrot.lane.b32.xlu1 %v3474_v27, %s3180_s30 }
 0x21e   :  { %1576 = vrot.lane.b32.xlu0 %v3476_v43, %s3180_s30 }
 0x21f   :  { %v1368_v9 = vpop.permute.xlu1 %1367 }
 0x220   :  { %1409 = vst.msk [vmem:[#allocation3 + $0x38] sm:$0xff] %vm1401_vm10, %v1368_v9  ;;  %v1366_v34 = vpop.permute.xlu0 %1365 }
 0x221   :  { %1408 = vst.msk [vmem:[#allocation3 + $0x30] sm:$0xff] %vm1401_vm10, %v1366_v34  ;;  %1615 = vrot.lane.b32.xlu1 %v3325_v32, %s3181_s2 }
 0x222   :  { %1613 = vrot.lane.b32.xlu0 %v3301_v37, %s3181_s2 }
 0x223   :  { %v1372_v36 = vpop.permute.xlu1 %1371 }
 0x224   :  { %1411 = vst.msk [vmem:[#allocation3 + $0x48] sm:$0xff] %vm1401_vm10, %v1372_v36  ;;  %v1370_v38 = vpop.permute.xlu0 %1369 }
 0x225   :  { %1410 = vst.msk [vmem:[#allocation3 + $0x40] sm:$0xff] %vm1401_vm10, %v1370_v38  ;;  %1619 = vrot.lane.b32.xlu1 %v3320_v14, %s3181_s2 }
 0x226   :  { %1617 = vrot.lane.b32.xlu0 %v3277_v60, %s3181_s2 }
 0x227   :  { %v1376_v4 = vpop.permute.xlu1 %1375 }
 0x228   :  { %1413 = vst.msk [vmem:[#allocation3 + $0x58] sm:$0xff] %vm1401_vm10, %v1376_v4  ;;  %v1374_v39 = vpop.permute.xlu0 %1373 }
 0x229   :  { %1412 = vst.msk [vmem:[#allocation3 + $0x50] sm:$0xff] %vm1401_vm10, %v1374_v39  ;;  %1623 = vrot.lane.b32.xlu1 %v3351_v22, %s3181_s2 }
 0x22a   :  { %1621 = vrot.lane.b32.xlu0 %v3359_v24, %s3181_s2 }
 0x22b   :  { %v1380_v40 = vpop.permute.xlu1 %1379 }
 0x22c   :  { %1415 = vst.msk [vmem:[#allocation3 + $0x68] sm:$0xff] %vm1401_vm10, %v1380_v40  ;;  %v1378_v41 = vpop.permute.xlu0 %1377 }
 0x22d   :  { %1414 = vst.msk [vmem:[#allocation3 + $0x60] sm:$0xff] %vm1401_vm10, %v1378_v41  ;;  %1627 = vrot.lane.b32.xlu1 %v3385_v54, %s3181_s2 }
 0x22e   :  { %1625 = vrot.lane.b32.xlu0 %v3390_v8, %s3181_s2 }
 0x22f   :  { %v1384_v45 = vpop.permute.xlu1 %1383 }
 0x230   :  { %1417 = vst.msk [vmem:[#allocation3 + $0x78] sm:$0xff] %vm1401_vm10, %v1384_v45  ;;  %v1382_v42 = vpop.permute.xlu0 %1381 }
 0x231   :  { %1416 = vst.msk [vmem:[#allocation3 + $0x70] sm:$0xff] %vm1401_vm10, %v1382_v42  ;;  %1631 = vrot.lane.b32.xlu1 %v3411_v21, %s3181_s2 }
 0x232   :  { %1629 = vrot.lane.b32.xlu0 %v3414_v55, %s3181_s2 }
 0x233   :  { %v1421_v1 = vpop.permute.xlu1 %1420 }
 0x234   :  { %1468 = vst.msk [vmem:[#allocation3 + $0x8] sm:$0xff] %vm1466_vm11, %v1421_v1  ;;  %v1419_v23 = vpop.permute.xlu0 %1418 }
 0x235   :  { %1467 = vst.msk [vmem:[#allocation3] sm:$0xff] %vm1466_vm11, %v1419_v23  ;;  %1635 = vrot.lane.b32.xlu1 %v3439_v12, %s3181_s2 }
 0x236   :  { %1633 = vrot.lane.b32.xlu0 %v3441_v44, %s3181_s2 }
 0x237   :  { %v1425_v35 = vpop.permute.xlu1 %1424 }
 0x238   :  { %1470 = vst.msk [vmem:[#allocation3 + $0x18] sm:$0xff] %vm1466_vm11, %v1425_v35  ;;  %v1423_v46 = vpop.permute.xlu0 %1422 }
 0x239   :  { %1469 = vst.msk [vmem:[#allocation3 + $0x10] sm:$0xff] %vm1466_vm11, %v1423_v46  ;;  %1639 = vrot.lane.b32.xlu1 %v3463_v31, %s3181_s2 }
 0x23a   :  { %1637 = vrot.lane.b32.xlu0 %v3466_v48, %s3181_s2 }
 0x23b   :  { %v1429_v47 = vpop.permute.xlu1 %1428 }
 0x23c   :  { %1472 = vst.msk [vmem:[#allocation3 + $0x28] sm:$0xff] %vm1466_vm11, %v1429_v47  ;;  %v1427_v28 = vpop.permute.xlu0 %1426 }
 0x23d   :  { %1471 = vst.msk [vmem:[#allocation3 + $0x20] sm:$0xff] %vm1466_vm11, %v1427_v28  ;;  %1643 = vrot.lane.b32.xlu1 %v3474_v27, %s3181_s2 }
 0x23e   :  { %1641 = vrot.lane.b32.xlu0 %v3476_v43, %s3181_s2 }
 0x23f   :  { %v1433_v49 = vpop.permute.xlu1 %1432 }
 0x240   :  { %1474 = vst.msk [vmem:[#allocation3 + $0x38] sm:$0xff] %vm1466_vm11, %v1433_v49  ;;  %v1431_v29 = vpop.permute.xlu0 %1430 }
 0x241   :  { %1473 = vst.msk [vmem:[#allocation3 + $0x30] sm:$0xff] %vm1466_vm11, %v1431_v29  ;;  %1680 = vrot.lane.b32.xlu1 %v3325_v32, %s3182_s3 }
 0x242   :  { %1678 = vrot.lane.b32.xlu0 %v3301_v37, %s3182_s3 }
 0x243   :  { %v1437_v51 = vpop.permute.xlu1 %1436 }
 0x244   :  { %1476 = vst.msk [vmem:[#allocation3 + $0x48] sm:$0xff] %vm1466_vm11, %v1437_v51  ;;  %v1435_v57 = vpop.permute.xlu0 %1434 }
 0x245   :  { %1475 = vst.msk [vmem:[#allocation3 + $0x40] sm:$0xff] %vm1466_vm11, %v1435_v57  ;;  %1684 = vrot.lane.b32.xlu1 %v3320_v14, %s3182_s3 }
 0x246   :  { %1682 = vrot.lane.b32.xlu0 %v3277_v60, %s3182_s3 }
 0x247   :  { %v1441_v58 = vpop.permute.xlu1 %1440 }
 0x248   :  { %1478 = vst.msk [vmem:[#allocation3 + $0x58] sm:$0xff] %vm1466_vm11, %v1441_v58  ;;  %v1439_v53 = vpop.permute.xlu0 %1438 }
 0x249   :  { %1477 = vst.msk [vmem:[#allocation3 + $0x50] sm:$0xff] %vm1466_vm11, %v1439_v53  ;;  %1688 = vrot.lane.b32.xlu1 %v3351_v22, %s3182_s3 }
 0x24a   :  { %1686 = vrot.lane.b32.xlu0 %v3359_v24, %s3182_s3 }
 0x24b   :  { %v1445_v18 = vpop.permute.xlu1 %1444 }
 0x24c   :  { %1480 = vst.msk [vmem:[#allocation3 + $0x68] sm:$0xff] %vm1466_vm11, %v1445_v18  ;;  %v1443_v61 = vpop.permute.xlu0 %1442 }
 0x24d   :  { %1479 = vst.msk [vmem:[#allocation3 + $0x60] sm:$0xff] %vm1466_vm11, %v1443_v61  ;;  %1692 = vrot.lane.b32.xlu1 %v3385_v54, %s3182_s3 }
 0x24e   :  { %1690 = vrot.lane.b32.xlu0 %v3390_v8, %s3182_s3 }
 0x24f   :  { %v1449_v59 = vpop.permute.xlu1 %1448 }
 0x250   :  { %1482 = vst.msk [vmem:[#allocation3 + $0x78] sm:$0xff] %vm1466_vm11, %v1449_v59  ;;  %v1447_v62 = vpop.permute.xlu0 %1446 }
 0x251   :  { %1481 = vst.msk [vmem:[#allocation3 + $0x70] sm:$0xff] %vm1466_vm11, %v1447_v62  ;;  %1696 = vrot.lane.b32.xlu1 %v3411_v21, %s3182_s3 }
 0x252   :  { %1694 = vrot.lane.b32.xlu0 %v3414_v55, %s3182_s3 }
 0x253   :  { %v1486_v63 = vpop.permute.xlu1 %1485 }
 0x254   :  { %1533 = vst.msk [vmem:[#allocation3 + $0x8] sm:$0xff] %vm1531_vm12, %v1486_v63  ;;  %v1484_v30 = vpop.permute.xlu0 %1483 }
 0x255   :  { %1532 = vst.msk [vmem:[#allocation3] sm:$0xff] %vm1531_vm12, %v1484_v30  ;;  %1700 = vrot.lane.b32.xlu1 %v3439_v12, %s3182_s3 }
 0x256   :  { %1698 = vrot.lane.b32.xlu0 %v3441_v44, %s3182_s3 }
 0x257   :  { %v1490_v0 = vpop.permute.xlu1 %1489 }
 0x258   :  { %1535 = vst.msk [vmem:[#allocation3 + $0x18] sm:$0xff] %vm1531_vm12, %v1490_v0  ;;  %v1488_v16 = vpop.permute.xlu0 %1487 }
 0x259   :  { %1534 = vst.msk [vmem:[#allocation3 + $0x10] sm:$0xff] %vm1531_vm12, %v1488_v16  ;;  %1704 = vrot.lane.b32.xlu1 %v3463_v31, %s3182_s3 }
 0x25a   :  { %1702 = vrot.lane.b32.xlu0 %v3466_v48, %s3182_s3 }
 0x25b   :  { %v1494_v50 = vpop.permute.xlu1 %1493 }
 0x25c   :  { %1537 = vst.msk [vmem:[#allocation3 + $0x28] sm:$0xff] %vm1531_vm12, %v1494_v50  ;;  %v1492_v5 = vpop.permute.xlu0 %1491 }
 0x25d   :  { %1536 = vst.msk [vmem:[#allocation3 + $0x20] sm:$0xff] %vm1531_vm12, %v1492_v5  ;;  %1708 = vrot.lane.b32.xlu1 %v3474_v27, %s3182_s3 }
 0x25e   :  { %1706 = vrot.lane.b32.xlu0 %v3476_v43, %s3182_s3 }
 0x25f   :  { %v1498_v3 = vpop.permute.xlu1 %1497 }
 0x260   :  { %1539 = vst.msk [vmem:[#allocation3 + $0x38] sm:$0xff] %vm1531_vm12, %v1498_v3  ;;  %v1496_v52 = vpop.permute.xlu0 %1495 }
 0x261   :  { %1538 = vst.msk [vmem:[#allocation3 + $0x30] sm:$0xff] %vm1531_vm12, %v1496_v52  ;;  %1745 = vrot.lane.b32.xlu1 %v3325_v32, %s3183_s4 }
 0x262   :  { %1743 = vrot.lane.b32.xlu0 %v3301_v37, %s3183_s4 }
 0x263   :  { %v1502_v2 = vpop.permute.xlu1 %1501 }
 0x264   :  { %1541 = vst.msk [vmem:[#allocation3 + $0x48] sm:$0xff] %vm1531_vm12, %v1502_v2  ;;  %v1500_v6 = vpop.permute.xlu0 %1499 }
 0x265   :  { %1540 = vst.msk [vmem:[#allocation3 + $0x40] sm:$0xff] %vm1531_vm12, %v1500_v6  ;;  %1749 = vrot.lane.b32.xlu1 %v3320_v14, %s3183_s4 }
 0x266   :  { %1747 = vrot.lane.b32.xlu0 %v3277_v60, %s3183_s4 }
 0x267   :  { %v1506_v7 = vpop.permute.xlu1 %1505 }
 0x268   :  { %1543 = vst.msk [vmem:[#allocation3 + $0x58] sm:$0xff] %vm1531_vm12, %v1506_v7  ;;  %v1504_v10 = vpop.permute.xlu0 %1503 }
 0x269   :  { %1542 = vst.msk [vmem:[#allocation3 + $0x50] sm:$0xff] %vm1531_vm12, %v1504_v10  ;;  %1753 = vrot.lane.b32.xlu1 %v3351_v22, %s3183_s4 }
 0x26a   :  { %1751 = vrot.lane.b32.xlu0 %v3359_v24, %s3183_s4 }
 0x26b   :  { %v1510_v37 = vpop.permute.xlu1 %1509 }
 0x26c   :  { %1545 = vst.msk [vmem:[#allocation3 + $0x68] sm:$0xff] %vm1531_vm12, %v1510_v37  ;;  %v1508_v32 = vpop.permute.xlu0 %1507 }
 0x26d   :  { %1544 = vst.msk [vmem:[#allocation3 + $0x60] sm:$0xff] %vm1531_vm12, %v1508_v32  ;;  %1757 = vrot.lane.b32.xlu1 %v3385_v54, %s3183_s4 }
 0x26e   :  { %1755 = vrot.lane.b32.xlu0 %v3390_v8, %s3183_s4 }
 0x26f   :  { %v1514_v60 = vpop.permute.xlu1 %1513 }
 0x270   :  { %1547 = vst.msk [vmem:[#allocation3 + $0x78] sm:$0xff] %vm1531_vm12, %v1514_v60  ;;  %v1512_v14 = vpop.permute.xlu0 %1511 }
 0x271   :  { %1546 = vst.msk [vmem:[#allocation3 + $0x70] sm:$0xff] %vm1531_vm12, %v1512_v14  ;;  %1761 = vrot.lane.b32.xlu1 %v3411_v21, %s3183_s4 }
 0x272   :  { %1759 = vrot.lane.b32.xlu0 %v3414_v55, %s3183_s4 }
 0x273   :  { %v1551_v22 = vpop.permute.xlu1 %1550 }
 0x274   :  { %1598 = vst.msk [vmem:[#allocation3 + $0x8] sm:$0xff] %vm1596_vm13, %v1551_v22  ;;  %v1549_v24 = vpop.permute.xlu0 %1548 }
 0x275   :  { %1597 = vst.msk [vmem:[#allocation3] sm:$0xff] %vm1596_vm13, %v1549_v24  ;;  %1765 = vrot.lane.b32.xlu1 %v3439_v12, %s3183_s4 }
 0x276   :  { %1763 = vrot.lane.b32.xlu0 %v3441_v44, %s3183_s4 }
 0x277   :  { %v1555_v54 = vpop.permute.xlu1 %1554 }
 0x278   :  { %1600 = vst.msk [vmem:[#allocation3 + $0x18] sm:$0xff] %vm1596_vm13, %v1555_v54  ;;  %v1553_v8 = vpop.permute.xlu0 %1552 }
 0x279   :  { %1599 = vst.msk [vmem:[#allocation3 + $0x10] sm:$0xff] %vm1596_vm13, %v1553_v8  ;;  %1769 = vrot.lane.b32.xlu1 %v3463_v31, %s3183_s4 }
 0x27a   :  { %1767 = vrot.lane.b32.xlu0 %v3466_v48, %s3183_s4 }
 0x27b   :  { %v1559_v21 = vpop.permute.xlu1 %1558 }
 0x27c   :  { %1602 = vst.msk [vmem:[#allocation3 + $0x28] sm:$0xff] %vm1596_vm13, %v1559_v21  ;;  %v1557_v55 = vpop.permute.xlu0 %1556 }
 0x27d   :  { %1601 = vst.msk [vmem:[#allocation3 + $0x20] sm:$0xff] %vm1596_vm13, %v1557_v55  ;;  %1773 = vrot.lane.b32.xlu1 %v3474_v27, %s3183_s4 }
 0x27e   :  { %1771 = vrot.lane.b32.xlu0 %v3476_v43, %s3183_s4 }
 0x27f   :  { %v1563_v12 = vpop.permute.xlu1 %1562 }
 0x280   :  { %1604 = vst.msk [vmem:[#allocation3 + $0x38] sm:$0xff] %vm1596_vm13, %v1563_v12  ;;  %v1561_v44 = vpop.permute.xlu0 %1560 }
 0x281   :  { %1603 = vst.msk [vmem:[#allocation3 + $0x30] sm:$0xff] %vm1596_vm13, %v1561_v44 }
 0x283   :  { %v1567_v31 = vpop.permute.xlu1 %1566 }
 0x284   :  { %1606 = vst.msk [vmem:[#allocation3 + $0x48] sm:$0xff] %vm1596_vm13, %v1567_v31  ;;  %v1565_v48 = vpop.permute.xlu0 %1564 }
 0x285   :  { %1605 = vst.msk [vmem:[#allocation3 + $0x40] sm:$0xff] %vm1596_vm13, %v1565_v48 }
 0x287   :  { %v1571_v11 = vpop.permute.xlu1 %1570 }
 0x288   :  { %1608 = vst.msk [vmem:[#allocation3 + $0x58] sm:$0xff] %vm1596_vm13, %v1571_v11  ;;  %v1569_v56 = vpop.permute.xlu0 %1568 }
 0x289   :  { %1607 = vst.msk [vmem:[#allocation3 + $0x50] sm:$0xff] %vm1596_vm13, %v1569_v56 }
 0x28b   :  { %v1575_v27 = vpop.permute.xlu1 %1574 }
 0x28c   :  { %1610 = vst.msk [vmem:[#allocation3 + $0x68] sm:$0xff] %vm1596_vm13, %v1575_v27  ;;  %v1573_v43 = vpop.permute.xlu0 %1572 }
 0x28d   :  { %1609 = vst.msk [vmem:[#allocation3 + $0x60] sm:$0xff] %vm1596_vm13, %v1573_v43 }
 0x28f   :  { %v1579_v13 = vpop.permute.xlu1 %1578 }
 0x290   :  { %1612 = vst.msk [vmem:[#allocation3 + $0x78] sm:$0xff] %vm1596_vm13, %v1579_v13  ;;  %v1577_v15 = vpop.permute.xlu0 %1576 }
 0x291   :  { %1611 = vst.msk [vmem:[#allocation3 + $0x70] sm:$0xff] %vm1596_vm13, %v1577_v15 }
 0x293   :  { %v1616_v17 = vpop.permute.xlu1 %1615 }
 0x294   :  { %1663 = vst.msk [vmem:[#allocation3 + $0x8] sm:$0xff] %vm1661_vm14, %v1616_v17  ;;  %v1614_v19 = vpop.permute.xlu0 %1613 }
 0x295   :  { %1662 = vst.msk [vmem:[#allocation3] sm:$0xff] %vm1661_vm14, %v1614_v19 }
 0x297   :  { %v1620_v25 = vpop.permute.xlu1 %1619 }
 0x298   :  { %1665 = vst.msk [vmem:[#allocation3 + $0x18] sm:$0xff] %vm1661_vm14, %v1620_v25  ;;  %v1618_v26 = vpop.permute.xlu0 %1617 }
 0x299   :  { %1664 = vst.msk [vmem:[#allocation3 + $0x10] sm:$0xff] %vm1661_vm14, %v1618_v26 }
 0x29b   :  { %v1624_v20 = vpop.permute.xlu1 %1623 }
 0x29c   :  { %1667 = vst.msk [vmem:[#allocation3 + $0x28] sm:$0xff] %vm1661_vm14, %v1624_v20  ;;  %v1622_v33 = vpop.permute.xlu0 %1621 }
 0x29d   :  { %1666 = vst.msk [vmem:[#allocation3 + $0x20] sm:$0xff] %vm1661_vm14, %v1622_v33 }
 0x29f   :  { %v1628_v9 = vpop.permute.xlu1 %1627 }
 0x2a0   :  { %1669 = vst.msk [vmem:[#allocation3 + $0x38] sm:$0xff] %vm1661_vm14, %v1628_v9  ;;  %v1626_v34 = vpop.permute.xlu0 %1625 }
 0x2a1   :  { %1668 = vst.msk [vmem:[#allocation3 + $0x30] sm:$0xff] %vm1661_vm14, %v1626_v34 }
 0x2a3   :  { %v1632_v36 = vpop.permute.xlu1 %1631 }
 0x2a4   :  { %1671 = vst.msk [vmem:[#allocation3 + $0x48] sm:$0xff] %vm1661_vm14, %v1632_v36  ;;  %v1630_v38 = vpop.permute.xlu0 %1629 }
 0x2a5   :  { %1670 = vst.msk [vmem:[#allocation3 + $0x40] sm:$0xff] %vm1661_vm14, %v1630_v38 }
 0x2a7   :  { %v1636_v4 = vpop.permute.xlu1 %1635 }
 0x2a8   :  { %1673 = vst.msk [vmem:[#allocation3 + $0x58] sm:$0xff] %vm1661_vm14, %v1636_v4  ;;  %v1634_v39 = vpop.permute.xlu0 %1633 }
 0x2a9   :  { %1672 = vst.msk [vmem:[#allocation3 + $0x50] sm:$0xff] %vm1661_vm14, %v1634_v39 }
 0x2ab   :  { %v1640_v40 = vpop.permute.xlu1 %1639 }
 0x2ac   :  { %1675 = vst.msk [vmem:[#allocation3 + $0x68] sm:$0xff] %vm1661_vm14, %v1640_v40  ;;  %v1638_v41 = vpop.permute.xlu0 %1637 }
 0x2ad   :  { %1674 = vst.msk [vmem:[#allocation3 + $0x60] sm:$0xff] %vm1661_vm14, %v1638_v41 }
 0x2af   :  { %v1644_v45 = vpop.permute.xlu1 %1643 }
 0x2b0   :  { %1677 = vst.msk [vmem:[#allocation3 + $0x78] sm:$0xff] %vm1661_vm14, %v1644_v45  ;;  %v1642_v42 = vpop.permute.xlu0 %1641 }
 0x2b1   :  { %1676 = vst.msk [vmem:[#allocation3 + $0x70] sm:$0xff] %vm1661_vm14, %v1642_v42 }
 0x2b3   :  { %v1681_v1 = vpop.permute.xlu1 %1680 }
 0x2b4   :  { %1728 = vst.msk [vmem:[#allocation3 + $0x8] sm:$0xff] %vm1726_vm15, %v1681_v1  ;;  %v1679_v23 = vpop.permute.xlu0 %1678 }
 0x2b5   :  { %1727 = vst.msk [vmem:[#allocation3] sm:$0xff] %vm1726_vm15, %v1679_v23 }
 0x2b7   :  { %v1685_v35 = vpop.permute.xlu1 %1684 }
 0x2b8   :  { %1730 = vst.msk [vmem:[#allocation3 + $0x18] sm:$0xff] %vm1726_vm15, %v1685_v35  ;;  %v1683_v46 = vpop.permute.xlu0 %1682 }
 0x2b9   :  { %1729 = vst.msk [vmem:[#allocation3 + $0x10] sm:$0xff] %vm1726_vm15, %v1683_v46 }
 0x2bb   :  { %v1689_v47 = vpop.permute.xlu1 %1688 }
 0x2bc   :  { %1732 = vst.msk [vmem:[#allocation3 + $0x28] sm:$0xff] %vm1726_vm15, %v1689_v47  ;;  %v1687_v28 = vpop.permute.xlu0 %1686 }
 0x2bd   :  { %1731 = vst.msk [vmem:[#allocation3 + $0x20] sm:$0xff] %vm1726_vm15, %v1687_v28 }
 0x2bf   :  { %v1693_v49 = vpop.permute.xlu1 %1692 }
 0x2c0   :  { %1734 = vst.msk [vmem:[#allocation3 + $0x38] sm:$0xff] %vm1726_vm15, %v1693_v49  ;;  %v1691_v29 = vpop.permute.xlu0 %1690 }
 0x2c1   :  { %1733 = vst.msk [vmem:[#allocation3 + $0x30] sm:$0xff] %vm1726_vm15, %v1691_v29 }
 0x2c3   :  { %v1697_v51 = vpop.permute.xlu1 %1696 }
 0x2c4   :  { %1736 = vst.msk [vmem:[#allocation3 + $0x48] sm:$0xff] %vm1726_vm15, %v1697_v51  ;;  %v1695_v57 = vpop.permute.xlu0 %1694 }
 0x2c5   :  { %1735 = vst.msk [vmem:[#allocation3 + $0x40] sm:$0xff] %vm1726_vm15, %v1695_v57 }
 0x2c7   :  { %v1701_v58 = vpop.permute.xlu1 %1700 }
 0x2c8   :  { %1738 = vst.msk [vmem:[#allocation3 + $0x58] sm:$0xff] %vm1726_vm15, %v1701_v58  ;;  %v1699_v53 = vpop.permute.xlu0 %1698 }
 0x2c9   :  { %1737 = vst.msk [vmem:[#allocation3 + $0x50] sm:$0xff] %vm1726_vm15, %v1699_v53 }
 0x2cb   :  { %v1705_v18 = vpop.permute.xlu1 %1704 }
 0x2cc   :  { %1740 = vst.msk [vmem:[#allocation3 + $0x68] sm:$0xff] %vm1726_vm15, %v1705_v18  ;;  %v1703_v61 = vpop.permute.xlu0 %1702 }
 0x2cd   :  { %1739 = vst.msk [vmem:[#allocation3 + $0x60] sm:$0xff] %vm1726_vm15, %v1703_v61 }
 0x2cf   :  { %v1709_v59 = vpop.permute.xlu1 %1708 }
 0x2d0   :  { %1742 = vst.msk [vmem:[#allocation3 + $0x78] sm:$0xff] %vm1726_vm15, %v1709_v59  ;;  %v1707_v62 = vpop.permute.xlu0 %1706 }
 0x2d1   :  { %1741 = vst.msk [vmem:[#allocation3 + $0x70] sm:$0xff] %vm1726_vm15, %v1707_v62 }
 0x2d3   :  { %v1746_v63 = vpop.permute.xlu1 %1745 }
 0x2d4   :  { %1793 = vst.msk [vmem:[#allocation3 + $0x8] sm:$0xff] %vm1791_vm1, %v1746_v63  ;;  %v1744_v30 = vpop.permute.xlu0 %1743 }
 0x2d5   :  { %1792 = vst.msk [vmem:[#allocation3] sm:$0xff] %vm1791_vm1, %v1744_v30 }
 0x2d7   :  { %v1750_v0 = vpop.permute.xlu1 %1749 }
 0x2d8   :  { %1795 = vst.msk [vmem:[#allocation3 + $0x18] sm:$0xff] %vm1791_vm1, %v1750_v0  ;;  %v1748_v16 = vpop.permute.xlu0 %1747 }
 0x2d9   :  { %1794 = vst.msk [vmem:[#allocation3 + $0x10] sm:$0xff] %vm1791_vm1, %v1748_v16 }
 0x2db   :  { %v4142_v50 = vld [vmem:[#allocation3 + $0x8] sm:$0xff]  ;;  %v1754_v5 = vpop.permute.xlu1 %1753 }
 0x2dc   :  { %v4144_v3 = vld [vmem:[#allocation3] sm:$0xff]  ;;  %1797 = vst.msk [vmem:[#allocation3 + $0x28] sm:$0xff] %vm1791_vm1, %v1754_v5  ;;  %v1752_v52 = vpop.permute.xlu0 %1751  ;;  %1858 = vrot.lane.b32.xlu1 %v4142_v50, %s3184_s5 }
 0x2dd   :  { %1796 = vst.msk [vmem:[#allocation3 + $0x20] sm:$0xff] %vm1791_vm1, %v1752_v52  ;;  %1856 = vrot.lane.b32.xlu0 %v4144_v3, %s3184_s5 }
 0x2df   :  { %v4152_v2 = vld [vmem:[#allocation3 + $0x18] sm:$0xff]  ;;  %v1758_v6 = vpop.permute.xlu1 %1757 }
 0x2e0   :  { %v4154_v7 = vld [vmem:[#allocation3 + $0x10] sm:$0xff]  ;;  %1799 = vst.msk [vmem:[#allocation3 + $0x38] sm:$0xff] %vm1791_vm1, %v1758_v6  ;;  %v1756_v10 = vpop.permute.xlu0 %1755  ;;  %1862 = vrot.lane.b32.xlu1 %v4152_v2, %s3184_s5 }
 0x2e1   :  { %1798 = vst.msk [vmem:[#allocation3 + $0x30] sm:$0xff] %vm1791_vm1, %v1756_v10  ;;  %1860 = vrot.lane.b32.xlu0 %v4154_v7, %s3184_s5 }
 0x2e3   :  { %v4162_v37 = vld [vmem:[#allocation3 + $0x28] sm:$0xff]  ;;  %v1762_v32 = vpop.permute.xlu1 %1761 }
 0x2e4   :  { %v4164_v60 = vld [vmem:[#allocation3 + $0x20] sm:$0xff]  ;;  %1801 = vst.msk [vmem:[#allocation3 + $0x48] sm:$0xff] %vm1791_vm1, %v1762_v32  ;;  %v1760_v14 = vpop.permute.xlu0 %1759  ;;  %1866 = vrot.lane.b32.xlu1 %v4162_v37, %s3184_s5 }
 0x2e5   :  { %1800 = vst.msk [vmem:[#allocation3 + $0x40] sm:$0xff] %vm1791_vm1, %v1760_v14  ;;  %1864 = vrot.lane.b32.xlu0 %v4164_v60, %s3184_s5 }
 0x2e7   :  { %v4172_v22 = vld [vmem:[#allocation3 + $0x38] sm:$0xff]  ;;  %v1766_v24 = vpop.permute.xlu1 %1765 }
 0x2e8   :  { %v4174_v54 = vld [vmem:[#allocation3 + $0x30] sm:$0xff]  ;;  %1803 = vst.msk [vmem:[#allocation3 + $0x58] sm:$0xff] %vm1791_vm1, %v1766_v24  ;;  %v1764_v8 = vpop.permute.xlu0 %1763  ;;  %1870 = vrot.lane.b32.xlu1 %v4172_v22, %s3184_s5 }
 0x2e9   :  { %1802 = vst.msk [vmem:[#allocation3 + $0x50] sm:$0xff] %vm1791_vm1, %v1764_v8  ;;  %1868 = vrot.lane.b32.xlu0 %v4174_v54, %s3184_s5 }
 0x2eb   :  { %v4182_v21 = vld [vmem:[#allocation3 + $0x48] sm:$0xff]  ;;  %v1770_v55 = vpop.permute.xlu1 %1769 }
 0x2ec   :  { %v4184_v12 = vld [vmem:[#allocation3 + $0x40] sm:$0xff]  ;;  %1805 = vst.msk [vmem:[#allocation3 + $0x68] sm:$0xff] %vm1791_vm1, %v1770_v55  ;;  %v1768_v44 = vpop.permute.xlu0 %1767  ;;  %1874 = vrot.lane.b32.xlu1 %v4182_v21, %s3184_s5 }
 0x2ed   :  { %1804 = vst.msk [vmem:[#allocation3 + $0x60] sm:$0xff] %vm1791_vm1, %v1768_v44  ;;  %1872 = vrot.lane.b32.xlu0 %v4184_v12, %s3184_s5 }
 0x2ef   :  { %v4192_v31 = vld [vmem:[#allocation3 + $0x58] sm:$0xff]  ;;  %v1774_v48 = vpop.permute.xlu1 %1773 }
 0x2f0   :  { %v4194_v11 = vld [vmem:[#allocation3 + $0x50] sm:$0xff]  ;;  %1807 = vst.msk [vmem:[#allocation3 + $0x78] sm:$0xff] %vm1791_vm1, %v1774_v48  ;;  %v1772_v56 = vpop.permute.xlu0 %1771  ;;  %1878 = vrot.lane.b32.xlu1 %v4192_v31, %s3184_s5 }
 0x2f1   :  { %1806 = vst.msk [vmem:[#allocation3 + $0x70] sm:$0xff] %vm1791_vm1, %v1772_v56  ;;  %1876 = vrot.lane.b32.xlu0 %v4194_v11, %s3184_s5 }
 0x2f3   :  { %v4202_v27 = vld [vmem:[#allocation3 + $0x68] sm:$0xff] }
 0x2f4   :  { %v4204_v43 = vld [vmem:[#allocation3 + $0x60] sm:$0xff]  ;;  %1882 = vrot.lane.b32.xlu1 %v4202_v27, %s3184_s5 }
 0x2f5   :  { %1880 = vrot.lane.b32.xlu0 %v4204_v43, %s3184_s5 }
 0x2f7   :  { %v4210_v13 = vld [vmem:[#allocation3 + $0x78] sm:$0xff] }
 0x2f8   :  { %v4212_v15 = vld [vmem:[#allocation3 + $0x70] sm:$0xff]  ;;  %1886 = vrot.lane.b32.xlu1 %v4210_v13, %s3184_s5 }
 0x2f9   :  { %1884 = vrot.lane.b32.xlu0 %v4212_v15, %s3184_s5 }
 0x34e   :  { %v1859_v17 = vpop.permute.xlu1 %1858 }
 0x34f   :  { %v1905_v19 = vadd.f32 %v1859_v17, %v4142_v50  ;;  %v1857_v25 = vpop.permute.xlu0 %1856 }
 0x350   :  { %v1904_v26 = vadd.f32 %v1857_v25, %v4144_v3 }
 0x351   :  { %v1921_v20 = vmul.f32 0.12732457, %v1905_v19 }
 0x352   :  { %v1920_v33 = vmul.f32 0.12732457, %v1904_v26  ;;  %v1863_v9 = vpop.permute.xlu1 %1862 }
 0x353   :  { %v1907_v34 = vadd.f32 %v1863_v9, %v4152_v2  ;;  %v1861_v36 = vpop.permute.xlu0 %1860  ;;  %1954 = vrot.lane.b32.xlu1 %v1921_v20, %s3174_s24 }
 0x354   :  { %v1906_v38 = vadd.f32 %v1861_v36, %v4154_v7  ;;  %1952 = vrot.lane.b32.xlu0 %v1920_v33, %s3174_s24 }
 0x355   :  { %v1923_v4 = vmul.f32 0.12732457, %v1907_v34 }
 0x356   :  { %v1922_v39 = vmul.f32 0.12732457, %v1906_v38  ;;  %v1867_v40 = vpop.permute.xlu1 %1866 }
 0x357   :  { %v1909_v41 = vadd.f32 %v1867_v40, %v4162_v37  ;;  %v1865_v45 = vpop.permute.xlu0 %1864  ;;  %1958 = vrot.lane.b32.xlu1 %v1923_v4, %s3174_s24 }
 0x358   :  { %v1908_v42 = vadd.f32 %v1865_v45, %v4164_v60  ;;  %1956 = vrot.lane.b32.xlu0 %v1922_v39, %s3174_s24 }
 0x359   :  { %v1925_v1 = vmul.f32 0.12732457, %v1909_v41 }
 0x35a   :  { %v1924_v23 = vmul.f32 0.12732457, %v1908_v42  ;;  %v1871_v35 = vpop.permute.xlu1 %1870 }
 0x35b   :  { %v1911_v46 = vadd.f32 %v1871_v35, %v4172_v22  ;;  %v1869_v47 = vpop.permute.xlu0 %1868  ;;  %1962 = vrot.lane.b32.xlu1 %v1925_v1, %s3174_s24 }
 0x35c   :  { %v1910_v28 = vadd.f32 %v1869_v47, %v4174_v54  ;;  %1960 = vrot.lane.b32.xlu0 %v1924_v23, %s3174_s24 }
 0x35d   :  { %v1927_v49 = vmul.f32 0.12732457, %v1911_v46 }
 0x35e   :  { %v1926_v29 = vmul.f32 0.12732457, %v1910_v28  ;;  %v1875_v51 = vpop.permute.xlu1 %1874 }
 0x35f   :  { %v1913_v57 = vadd.f32 %v1875_v51, %v4182_v21  ;;  %v1873_v58 = vpop.permute.xlu0 %1872  ;;  %1966 = vrot.lane.b32.xlu1 %v1927_v49, %s3174_s24 }
 0x360   :  { %v1912_v53 = vadd.f32 %v1873_v58, %v4184_v12  ;;  %1964 = vrot.lane.b32.xlu0 %v1926_v29, %s3174_s24 }
 0x361   :  { %v1929_v18 = vmul.f32 0.12732457, %v1913_v57 }
 0x362   :  { %v1928_v61 = vmul.f32 0.12732457, %v1912_v53  ;;  %v1879_v59 = vpop.permute.xlu1 %1878 }
 0x363   :  { %v1915_v62 = vadd.f32 %v1879_v59, %v4192_v31  ;;  %v1877_v63 = vpop.permute.xlu0 %1876  ;;  %1970 = vrot.lane.b32.xlu1 %v1929_v18, %s3174_s24 }
 0x364   :  { %v1914_v30 = vadd.f32 %v1877_v63, %v4194_v11  ;;  %1968 = vrot.lane.b32.xlu0 %v1928_v61, %s3174_s24 }
 0x365   :  { %v1931_v0 = vmul.f32 0.12732457, %v1915_v62 }
 0x366   :  { %v1930_v16 = vmul.f32 0.12732457, %v1914_v30  ;;  %v1883_v5 = vpop.permute.xlu1 %1882 }
 0x367   :  { %v1917_v52 = vadd.f32 %v1883_v5, %v4202_v27  ;;  %v1881_v6 = vpop.permute.xlu0 %1880  ;;  %1974 = vrot.lane.b32.xlu1 %v1931_v0, %s3174_s24 }
 0x368   :  { %v1916_v10 = vadd.f32 %v1881_v6, %v4204_v43  ;;  %1972 = vrot.lane.b32.xlu0 %v1930_v16, %s3174_s24 }
 0x369   :  { %v1933_v32 = vmul.f32 0.12732457, %v1917_v52 }
 0x36a   :  { %v1932_v14 = vmul.f32 0.12732457, %v1916_v10  ;;  %v1887_v24 = vpop.permute.xlu1 %1886 }
 0x36b   :  { %v1919_v8 = vadd.f32 %v1887_v24, %v4210_v13  ;;  %v1885_v55 = vpop.permute.xlu0 %1884  ;;  %1978 = vrot.lane.b32.xlu1 %v1933_v32, %s3174_s24 }
 0x36c   :  { %v1918_v44 = vadd.f32 %v1885_v55, %v4212_v15  ;;  %1976 = vrot.lane.b32.xlu0 %v1932_v14, %s3174_s24 }
 0x36d   :  { %v1935_v48 = vmul.f32 0.12732457, %v1919_v8 }
 0x36e   :  { %v1934_v56 = vmul.f32 0.12732457, %v1918_v44 }
 0x36f   :  { %1982 = vrot.lane.b32.xlu1 %v1935_v48, %s3174_s24 }
 0x370   :  { %1980 = vrot.lane.b32.xlu0 %v1934_v56, %s3174_s24 }
 0x373   :  { %2018 = vrot.lane.b32.xlu1 %v4142_v50, %s3185_s6 }
 0x374   :  { %2016 = vrot.lane.b32.xlu0 %v4144_v3, %s3185_s6 }
 0x377   :  { %2022 = vrot.lane.b32.xlu1 %v4152_v2, %s3185_s6 }
 0x378   :  { %2020 = vrot.lane.b32.xlu0 %v4154_v7, %s3185_s6 }
 0x37b   :  { %2026 = vrot.lane.b32.xlu1 %v4162_v37, %s3185_s6 }
 0x37c   :  { %2024 = vrot.lane.b32.xlu0 %v4164_v60, %s3185_s6 }
 0x37f   :  { %2030 = vrot.lane.b32.xlu1 %v4172_v22, %s3185_s6 }
 0x380   :  { %2028 = vrot.lane.b32.xlu0 %v4174_v54, %s3185_s6 }
 0x383   :  { %2034 = vrot.lane.b32.xlu1 %v4182_v21, %s3185_s6 }
 0x384   :  { %2032 = vrot.lane.b32.xlu0 %v4184_v12, %s3185_s6 }
 0x387   :  { %2038 = vrot.lane.b32.xlu1 %v4192_v31, %s3185_s6 }
 0x388   :  { %2036 = vrot.lane.b32.xlu0 %v4194_v11, %s3185_s6 }
 0x38b   :  { %2042 = vrot.lane.b32.xlu1 %v4202_v27, %s3185_s6 }
 0x38c   :  { %2040 = vrot.lane.b32.xlu0 %v4204_v43, %s3185_s6 }
 0x38f   :  { %2046 = vrot.lane.b32.xlu1 %v4210_v13, %s3185_s6 }
 0x390   :  { %2044 = vrot.lane.b32.xlu0 %v4212_v15, %s3185_s6 }
 0x3c5   :  { %v4266_v17 = vpop.permute.xlu1 %1954 }
 0x3c6   :  { %v4268_v19 = vpop.permute.xlu0 %1952 }
 0x3c9   :  { %v4270_v25 = vpop.permute.xlu1 %1958 }
 0x3ca   :  { %v4272_v26 = vpop.permute.xlu0 %1956 }
 0x3cd   :  { %v4274_v20 = vpop.permute.xlu1 %1962 }
 0x3ce   :  { %v4276_v33 = vpop.permute.xlu0 %1960 }
 0x3d1   :  { %v4278_v9 = vpop.permute.xlu1 %1966 }
 0x3d2   :  { %v4280_v34 = vpop.permute.xlu0 %1964 }
 0x3d5   :  { %v4282_v36 = vpop.permute.xlu1 %1970 }
 0x3d6   :  { %4918 = vst [vmem:[#allocation10_spill] sm:$0xff] %v4282_v36  ;;  %v4284_v38 = vpop.permute.xlu0 %1968 }
 0x3d9   :  { %v4286_v4 = vpop.permute.xlu1 %1974 }
 0x3da   :  { %4919 = vst [vmem:[#allocation11_spill] sm:$0xff] %v4286_v4  ;;  %v4288_v39 = vpop.permute.xlu0 %1972 }
 0x3db   :  { %4920 = vst [vmem:[#allocation12_spill] sm:$0xff] %v4288_v39 }
 0x3dd   :  { %v4290_v40 = vpop.permute.xlu1 %1978 }
 0x3de   :  { %4921 = vst [vmem:[#allocation13_spill] sm:$0xff] %v4290_v40  ;;  %v4292_v41 = vpop.permute.xlu0 %1976 }
 0x3df   :  { %4922 = vst [vmem:[#allocation14_spill] sm:$0xff] %v4292_v41 }
 0x3e1   :  { %v4294_v45 = vpop.permute.xlu1 %1982 }
 0x3e2   :  { %4923 = vst [vmem:[#allocation15_spill] sm:$0xff] %v4294_v45  ;;  %v4296_v42 = vpop.permute.xlu0 %1980 }
 0x3e3   :  { %4924 = vst [vmem:[#allocation16_spill] sm:$0xff] %v4296_v42 }
 0x3e5   :  { %v2019_v1 = vpop.permute.xlu1 %2018 }
 0x3e6   :  { %v2065_v23 = vadd.f32 %v2019_v1, %v4142_v50  ;;  %v2017_v35 = vpop.permute.xlu0 %2016 }
 0x3e7   :  { %v2064_v46 = vadd.f32 %v2017_v35, %v4144_v3 }
 0x3e8   :  { %v2081_v47 = vmul.f32 0.10777792, %v2065_v23 }
 0x3e9   :  { %v2080_v28 = vmul.f32 0.10777792, %v2064_v46  ;;  %v2023_v49 = vpop.permute.xlu1 %2022 }
 0x3ea   :  { %v2067_v29 = vadd.f32 %v2023_v49, %v4152_v2  ;;  %v2021_v51 = vpop.permute.xlu0 %2020  ;;  %2114 = vrot.lane.b32.xlu1 %v2081_v47, %s3186_s7 }
 0x3eb   :  { %v2066_v57 = vadd.f32 %v2021_v51, %v4154_v7  ;;  %2112 = vrot.lane.b32.xlu0 %v2080_v28, %s3186_s7 }
 0x3ec   :  { %v2083_v58 = vmul.f32 0.10777792, %v2067_v29 }
 0x3ed   :  { %v2082_v53 = vmul.f32 0.10777792, %v2066_v57  ;;  %v2027_v18 = vpop.permute.xlu1 %2026 }
 0x3ee   :  { %v2069_v61 = vadd.f32 %v2027_v18, %v4162_v37  ;;  %v2025_v59 = vpop.permute.xlu0 %2024  ;;  %2118 = vrot.lane.b32.xlu1 %v2083_v58, %s3186_s7 }
 0x3ef   :  { %v2068_v62 = vadd.f32 %v2025_v59, %v4164_v60  ;;  %2116 = vrot.lane.b32.xlu0 %v2082_v53, %s3186_s7 }
 0x3f0   :  { %v2085_v63 = vmul.f32 0.10777792, %v2069_v61 }
 0x3f1   :  { %v2084_v30 = vmul.f32 0.10777792, %v2068_v62  ;;  %v2031_v0 = vpop.permute.xlu1 %2030 }
 0x3f2   :  { %v2071_v16 = vadd.f32 %v2031_v0, %v4172_v22  ;;  %v2029_v5 = vpop.permute.xlu0 %2028  ;;  %2122 = vrot.lane.b32.xlu1 %v2085_v63, %s3186_s7 }
 0x3f3   :  { %v2070_v52 = vadd.f32 %v2029_v5, %v4174_v54  ;;  %2120 = vrot.lane.b32.xlu0 %v2084_v30, %s3186_s7 }
 0x3f4   :  { %v2087_v6 = vmul.f32 0.10777792, %v2071_v16 }
 0x3f5   :  { %v2086_v10 = vmul.f32 0.10777792, %v2070_v52  ;;  %v2035_v32 = vpop.permute.xlu1 %2034 }
 0x3f6   :  { %v2073_v14 = vadd.f32 %v2035_v32, %v4182_v21  ;;  %v2033_v24 = vpop.permute.xlu0 %2032  ;;  %2126 = vrot.lane.b32.xlu1 %v2087_v6, %s3186_s7 }
 0x3f7   :  { %v2072_v8 = vadd.f32 %v2033_v24, %v4184_v12  ;;  %2124 = vrot.lane.b32.xlu0 %v2086_v10, %s3186_s7 }
 0x3f8   :  { %v2089_v55 = vmul.f32 0.10777792, %v2073_v14 }
 0x3f9   :  { %v2088_v44 = vmul.f32 0.10777792, %v2072_v8  ;;  %v2039_v48 = vpop.permute.xlu1 %2038 }
 0x3fa   :  { %v2075_v56 = vadd.f32 %v2039_v48, %v4192_v31  ;;  %v2037_v1 = vpop.permute.xlu0 %2036  ;;  %2130 = vrot.lane.b32.xlu1 %v2089_v55, %s3186_s7 }
 0x3fb   :  { %v2074_v23 = vadd.f32 %v2037_v1, %v4194_v11  ;;  %2128 = vrot.lane.b32.xlu0 %v2088_v44, %s3186_s7 }
 0x3fc   :  { %v2091_v35 = vmul.f32 0.10777792, %v2075_v56 }
 0x3fd   :  { %v2090_v46 = vmul.f32 0.10777792, %v2074_v23  ;;  %v2043_v47 = vpop.permute.xlu1 %2042 }
 0x3fe   :  { %v2077_v28 = vadd.f32 %v2043_v47, %v4202_v27  ;;  %v2041_v49 = vpop.permute.xlu0 %2040  ;;  %2134 = vrot.lane.b32.xlu1 %v2091_v35, %s3186_s7 }
 0x3ff   :  { %v2076_v29 = vadd.f32 %v2041_v49, %v4204_v43  ;;  %2132 = vrot.lane.b32.xlu0 %v2090_v46, %s3186_s7 }
 0x400   :  { %v2093_v51 = vmul.f32 0.10777792, %v2077_v28 }
 0x401   :  { %v2092_v57 = vmul.f32 0.10777792, %v2076_v29  ;;  %v2047_v58 = vpop.permute.xlu1 %2046 }
 0x402   :  { %v2079_v53 = vadd.f32 %v2047_v58, %v4210_v13  ;;  %v2045_v18 = vpop.permute.xlu0 %2044  ;;  %2138 = vrot.lane.b32.xlu1 %v2093_v51, %s3186_s7 }
 0x403   :  { %v2078_v61 = vadd.f32 %v2045_v18, %v4212_v15  ;;  %2136 = vrot.lane.b32.xlu0 %v2092_v57, %s3186_s7 }
 0x404   :  { %v2095_v59 = vmul.f32 0.10777792, %v2079_v53 }
 0x405   :  { %v2094_v62 = vmul.f32 0.10777792, %v2078_v61 }
 0x406   :  { %2142 = vrot.lane.b32.xlu1 %v2095_v59, %s3186_s7 }
 0x407   :  { %2140 = vrot.lane.b32.xlu0 %v2094_v62, %s3186_s7 }
 0x40a   :  { %2178 = vrot.lane.b32.xlu1 %v4142_v50, %s3187_s8 }
 0x40b   :  { %2176 = vrot.lane.b32.xlu0 %v4144_v3, %s3187_s8 }
 0x40e   :  { %2182 = vrot.lane.b32.xlu1 %v4152_v2, %s3187_s8 }
 0x40f   :  { %2180 = vrot.lane.b32.xlu0 %v4154_v7, %s3187_s8 }
 0x412   :  { %2186 = vrot.lane.b32.xlu1 %v4162_v37, %s3187_s8 }
 0x413   :  { %2184 = vrot.lane.b32.xlu0 %v4164_v60, %s3187_s8 }
 0x416   :  { %2190 = vrot.lane.b32.xlu1 %v4172_v22, %s3187_s8 }
 0x417   :  { %2188 = vrot.lane.b32.xlu0 %v4174_v54, %s3187_s8 }
 0x41a   :  { %2194 = vrot.lane.b32.xlu1 %v4182_v21, %s3187_s8 }
 0x41b   :  { %2192 = vrot.lane.b32.xlu0 %v4184_v12, %s3187_s8 }
 0x41e   :  { %2198 = vrot.lane.b32.xlu1 %v4192_v31, %s3187_s8 }
 0x41f   :  { %2196 = vrot.lane.b32.xlu0 %v4194_v11, %s3187_s8 }
 0x422   :  { %2202 = vrot.lane.b32.xlu1 %v4202_v27, %s3187_s8 }
 0x423   :  { %2200 = vrot.lane.b32.xlu0 %v4204_v43, %s3187_s8 }
 0x426   :  { %2206 = vrot.lane.b32.xlu1 %v4210_v13, %s3187_s8 }
 0x427   :  { %2204 = vrot.lane.b32.xlu0 %v4212_v15, %s3187_s8 }
 0x45c   :  { %v4346_v63 = vpop.permute.xlu1 %2114 }
 0x45d   :  { %v4348_v30 = vpop.permute.xlu0 %2112 }
 0x460   :  { %v4350_v0 = vpop.permute.xlu1 %2118 }
 0x461   :  { %v4352_v16 = vpop.permute.xlu0 %2116 }
 0x464   :  { %v4354_v5 = vpop.permute.xlu1 %2122 }
 0x465   :  { %v4356_v52 = vpop.permute.xlu0 %2120 }
 0x468   :  { %v4358_v6 = vpop.permute.xlu1 %2126 }
 0x469   :  { %4925 = vst [vmem:[#allocation17_spill] sm:$0xff] %v4358_v6  ;;  %v4360_v10 = vpop.permute.xlu0 %2124 }
 0x46c   :  { %v4362_v32 = vpop.permute.xlu1 %2130 }
 0x46d   :  { %4926 = vst [vmem:[#allocation18_spill] sm:$0xff] %v4362_v32  ;;  %v4364_v14 = vpop.permute.xlu0 %2128 }
 0x470   :  { %v4366_v24 = vpop.permute.xlu1 %2134 }
 0x471   :  { %4927 = vst [vmem:[#allocation19_spill] sm:$0xff] %v4366_v24  ;;  %v4368_v8 = vpop.permute.xlu0 %2132 }
 0x472   :  { %4928 = vst [vmem:[#allocation20_spill] sm:$0xff] %v4368_v8 }
 0x474   :  { %v4370_v55 = vpop.permute.xlu1 %2138 }
 0x475   :  { %4929 = vst [vmem:[#allocation21_spill] sm:$0xff] %v4370_v55  ;;  %v4372_v44 = vpop.permute.xlu0 %2136 }
 0x476   :  { %4930 = vst [vmem:[#allocation22_spill] sm:$0xff] %v4372_v44 }
 0x478   :  { %v4374_v48 = vpop.permute.xlu1 %2142 }
 0x479   :  { %4931 = vst [vmem:[#allocation23_spill] sm:$0xff] %v4374_v48  ;;  %v4376_v56 = vpop.permute.xlu0 %2140 }
 0x47a   :  { %4932 = vst [vmem:[#allocation24_spill] sm:$0xff] %v4376_v56 }
 0x47c   :  { %v2179_v1 = vpop.permute.xlu1 %2178 }
 0x47d   :  { %v2225_v23 = vadd.f32 %v2179_v1, %v4142_v50  ;;  %v2177_v35 = vpop.permute.xlu0 %2176 }
 0x47e   :  { %v2224_v46 = vadd.f32 %v2177_v35, %v4144_v3 }
 0x47f   :  { %v2241_v47 = vmul.f32 0.08163802, %v2225_v23 }
 0x480   :  { %v2240_v28 = vmul.f32 0.08163802, %v2224_v46  ;;  %v2183_v49 = vpop.permute.xlu1 %2182 }
 0x481   :  { %v2227_v29 = vadd.f32 %v2183_v49, %v4152_v2  ;;  %v2181_v51 = vpop.permute.xlu0 %2180  ;;  %2274 = vrot.lane.b32.xlu1 %v2241_v47, %s3172_s22 }
 0x482   :  { %v2226_v57 = vadd.f32 %v2181_v51, %v4154_v7  ;;  %2272 = vrot.lane.b32.xlu0 %v2240_v28, %s3172_s22 }
 0x483   :  { %v2243_v58 = vmul.f32 0.08163802, %v2227_v29 }
 0x484   :  { %v2242_v53 = vmul.f32 0.08163802, %v2226_v57  ;;  %v2187_v18 = vpop.permute.xlu1 %2186 }
 0x485   :  { %v2229_v61 = vadd.f32 %v2187_v18, %v4162_v37  ;;  %v2185_v59 = vpop.permute.xlu0 %2184  ;;  %2278 = vrot.lane.b32.xlu1 %v2243_v58, %s3172_s22 }
 0x486   :  { %v2228_v62 = vadd.f32 %v2185_v59, %v4164_v60  ;;  %2276 = vrot.lane.b32.xlu0 %v2242_v53, %s3172_s22 }
 0x487   :  { %v2245_v1 = vmul.f32 0.08163802, %v2229_v61 }
 0x488   :  { %v2244_v23 = vmul.f32 0.08163802, %v2228_v62  ;;  %v2191_v35 = vpop.permute.xlu1 %2190 }
 0x489   :  { %v2231_v46 = vadd.f32 %v2191_v35, %v4172_v22  ;;  %v2189_v47 = vpop.permute.xlu0 %2188  ;;  %2282 = vrot.lane.b32.xlu1 %v2245_v1, %s3172_s22 }
 0x48a   :  { %v2230_v28 = vadd.f32 %v2189_v47, %v4174_v54  ;;  %2280 = vrot.lane.b32.xlu0 %v2244_v23, %s3172_s22 }
 0x48b   :  { %v2247_v49 = vmul.f32 0.08163802, %v2231_v46 }
 0x48c   :  { %v2246_v29 = vmul.f32 0.08163802, %v2230_v28  ;;  %v2195_v51 = vpop.permute.xlu1 %2194 }
 0x48d   :  { %v2233_v57 = vadd.f32 %v2195_v51, %v4182_v21  ;;  %v2193_v58 = vpop.permute.xlu0 %2192  ;;  %2286 = vrot.lane.b32.xlu1 %v2247_v49, %s3172_s22 }
 0x48e   :  { %v2232_v53 = vadd.f32 %v2193_v58, %v4184_v12  ;;  %2284 = vrot.lane.b32.xlu0 %v2246_v29, %s3172_s22 }
 0x48f   :  { %v2249_v18 = vmul.f32 0.08163802, %v2233_v57 }
 0x490   :  { %v2248_v61 = vmul.f32 0.08163802, %v2232_v53  ;;  %v2199_v59 = vpop.permute.xlu1 %2198 }
 0x491   :  { %v2235_v62 = vadd.f32 %v2199_v59, %v4192_v31  ;;  %v2197_v1 = vpop.permute.xlu0 %2196  ;;  %2290 = vrot.lane.b32.xlu1 %v2249_v18, %s3172_s22 }
 0x492   :  { %v2234_v23 = vadd.f32 %v2197_v1, %v4194_v11  ;;  %2288 = vrot.lane.b32.xlu0 %v2248_v61, %s3172_s22 }
 0x493   :  { %v2251_v35 = vmul.f32 0.08163802, %v2235_v62 }
 0x494   :  { %v2250_v46 = vmul.f32 0.08163802, %v2234_v23  ;;  %v2203_v47 = vpop.permute.xlu1 %2202 }
 0x495   :  { %v2237_v28 = vadd.f32 %v2203_v47, %v4202_v27  ;;  %v2201_v49 = vpop.permute.xlu0 %2200  ;;  %2294 = vrot.lane.b32.xlu1 %v2251_v35, %s3172_s22 }
 0x496   :  { %v2236_v29 = vadd.f32 %v2201_v49, %v4204_v43  ;;  %2292 = vrot.lane.b32.xlu0 %v2250_v46, %s3172_s22 }
 0x497   :  { %v2253_v51 = vmul.f32 0.08163802, %v2237_v28 }
 0x498   :  { %v2252_v57 = vmul.f32 0.08163802, %v2236_v29  ;;  %v2207_v58 = vpop.permute.xlu1 %2206 }
 0x499   :  { %v2239_v53 = vadd.f32 %v2207_v58, %v4210_v13  ;;  %v2205_v18 = vpop.permute.xlu0 %2204  ;;  %2298 = vrot.lane.b32.xlu1 %v2253_v51, %s3172_s22 }
 0x49a   :  { %v2238_v61 = vadd.f32 %v2205_v18, %v4212_v15  ;;  %2296 = vrot.lane.b32.xlu0 %v2252_v57, %s3172_s22 }
 0x49b   :  { %v2255_v59 = vmul.f32 0.08163802, %v2239_v53 }
 0x49c   :  { %v2254_v62 = vmul.f32 0.08163802, %v2238_v61 }
 0x49d   :  { %2302 = vrot.lane.b32.xlu1 %v2255_v59, %s3172_s22 }
 0x49e   :  { %2300 = vrot.lane.b32.xlu0 %v2254_v62, %s3172_s22 }
 0x4a1   :  { %2338 = vrot.lane.b32.xlu1 %v4142_v50, %s3188_s9 }
 0x4a2   :  { %2336 = vrot.lane.b32.xlu0 %v4144_v3, %s3188_s9 }
 0x4a5   :  { %2342 = vrot.lane.b32.xlu1 %v4152_v2, %s3188_s9 }
 0x4a6   :  { %2340 = vrot.lane.b32.xlu0 %v4154_v7, %s3188_s9 }
 0x4a9   :  { %2346 = vrot.lane.b32.xlu1 %v4162_v37, %s3188_s9 }
 0x4aa   :  { %2344 = vrot.lane.b32.xlu0 %v4164_v60, %s3188_s9 }
 0x4ad   :  { %2350 = vrot.lane.b32.xlu1 %v4172_v22, %s3188_s9 }
 0x4ae   :  { %2348 = vrot.lane.b32.xlu0 %v4174_v54, %s3188_s9 }
 0x4b1   :  { %2354 = vrot.lane.b32.xlu1 %v4182_v21, %s3188_s9 }
 0x4b2   :  { %2352 = vrot.lane.b32.xlu0 %v4184_v12, %s3188_s9 }
 0x4b5   :  { %2358 = vrot.lane.b32.xlu1 %v4192_v31, %s3188_s9 }
 0x4b6   :  { %2356 = vrot.lane.b32.xlu0 %v4194_v11, %s3188_s9 }
 0x4b9   :  { %2362 = vrot.lane.b32.xlu1 %v4202_v27, %s3188_s9 }
 0x4ba   :  { %2360 = vrot.lane.b32.xlu0 %v4204_v43, %s3188_s9 }
 0x4bd   :  { %2366 = vrot.lane.b32.xlu1 %v4210_v13, %s3188_s9 }
 0x4be   :  { %2364 = vrot.lane.b32.xlu0 %v4212_v15, %s3188_s9 }
 0x4f3   :  { %v4426_v1 = vpop.permute.xlu1 %2274 }
 0x4f4   :  { %v4428_v23 = vpop.permute.xlu0 %2272 }
 0x4f7   :  { %v4430_v35 = vpop.permute.xlu1 %2278 }
 0x4f8   :  { %v4432_v46 = vpop.permute.xlu0 %2276 }
 0x4fb   :  { %v4434_v47 = vpop.permute.xlu1 %2282 }
 0x4fc   :  { %v4436_v28 = vpop.permute.xlu0 %2280 }
 0x4ff   :  { %v4438_v49 = vpop.permute.xlu1 %2286 }
 0x500   :  { %4933 = vst [vmem:[#allocation25_spill] sm:$0xff] %v4438_v49  ;;  %v4440_v29 = vpop.permute.xlu0 %2284 }
 0x503   :  { %v4442_v51 = vpop.permute.xlu1 %2290 }
 0x504   :  { %4934 = vst [vmem:[#allocation26_spill] sm:$0xff] %v4442_v51  ;;  %v4444_v57 = vpop.permute.xlu0 %2288 }
 0x505   :  { %4935 = vst [vmem:[#allocation27_spill] sm:$0xff] %v4444_v57 }
 0x507   :  { %v4446_v58 = vpop.permute.xlu1 %2294 }
 0x508   :  { %4936 = vst [vmem:[#allocation28_spill] sm:$0xff] %v4446_v58  ;;  %v4448_v53 = vpop.permute.xlu0 %2292 }
 0x509   :  { %4937 = vst [vmem:[#allocation29_spill] sm:$0xff] %v4448_v53 }
 0x50b   :  { %v4450_v18 = vpop.permute.xlu1 %2298 }
 0x50c   :  { %4938 = vst [vmem:[#allocation30_spill] sm:$0xff] %v4450_v18  ;;  %v4452_v61 = vpop.permute.xlu0 %2296 }
 0x50d   :  { %4939 = vst [vmem:[#allocation31_spill] sm:$0xff] %v4452_v61 }
 0x50f   :  { %v4454_v59 = vpop.permute.xlu1 %2302 }
 0x510   :  { %4940 = vst [vmem:[#allocation32_spill] sm:$0xff] %v4454_v59  ;;  %v4456_v62 = vpop.permute.xlu0 %2300 }
 0x511   :  { %4941 = vst [vmem:[#allocation33_spill] sm:$0xff] %v4456_v62 }
 0x513   :  { %v2339_v48 = vpop.permute.xlu1 %2338 }
 0x514   :  { %v2385_v45 = vadd.f32 %v2339_v48, %v4142_v50  ;;  %v2337_v55 = vpop.permute.xlu0 %2336 }
 0x515   :  { %v2384_v56 = vadd.f32 %v2337_v55, %v4144_v3 }
 0x516   :  { %v2401_v40 = vmul.f32 0.055335034, %v2385_v45 }
 0x517   :  { %v2400_v42 = vmul.f32 0.055335034, %v2384_v56  ;;  %v2343_v24 = vpop.permute.xlu1 %2342 }
 0x518   :  { %v2387_v58 = vadd.f32 %v2343_v24, %v4152_v2  ;;  %v2341_v44 = vpop.permute.xlu0 %2340  ;;  %2434 = vrot.lane.b32.xlu1 %v2401_v40, %s3189_s10 }
 0x519   :  { %v2386_v18 = vadd.f32 %v2341_v44, %v4154_v7  ;;  %2432 = vrot.lane.b32.xlu0 %v2400_v42, %s3189_s10 }
 0x51a   :  { %v2403_v59 = vmul.f32 0.055335034, %v2387_v58 }
 0x51b   :  { %v2402_v62 = vmul.f32 0.055335034, %v2386_v18  ;;  %v2347_v61 = vpop.permute.xlu1 %2346 }
 0x51c   :  { %v2389_v48 = vadd.f32 %v2347_v61, %v4162_v37  ;;  %v2345_v51 = vpop.permute.xlu0 %2344  ;;  %2438 = vrot.lane.b32.xlu1 %v2403_v59, %s3189_s10 }
 0x51d   :  { %v2388_v45 = vadd.f32 %v2345_v51, %v4164_v60  ;;  %2436 = vrot.lane.b32.xlu0 %v2402_v62, %s3189_s10 }
 0x51e   :  { %v2405_v24 = vmul.f32 0.055335034, %v2389_v48 }
 0x51f   :  { %v2404_v55 = vmul.f32 0.055335034, %v2388_v45  ;;  %v2351_v56 = vpop.permute.xlu1 %2350 }
 0x520   :  { %v2391_v40 = vadd.f32 %v2351_v56, %v4172_v22  ;;  %v2349_v44 = vpop.permute.xlu0 %2348  ;;  %2442 = vrot.lane.b32.xlu1 %v2405_v24, %s3189_s10 }
 0x521   :  { %v2390_v42 = vadd.f32 %v2349_v44, %v4174_v54  ;;  %2440 = vrot.lane.b32.xlu0 %v2404_v55, %s3189_s10 }
 0x522   :  { %v2407_v58 = vmul.f32 0.055335034, %v2391_v40 }
 0x523   :  { %v2406_v18 = vmul.f32 0.055335034, %v2390_v42  ;;  %v2355_v61 = vpop.permute.xlu1 %2354 }
 0x524   :  { %v2393_v59 = vadd.f32 %v2355_v61, %v4182_v21  ;;  %v2353_v51 = vpop.permute.xlu0 %2352  ;;  %2446 = vrot.lane.b32.xlu1 %v2407_v58, %s3189_s10 }
 0x525   :  { %v2392_v62 = vadd.f32 %v2353_v51, %v4184_v12  ;;  %2444 = vrot.lane.b32.xlu0 %v2406_v18, %s3189_s10 }
 0x526   :  { %v2409_v48 = vmul.f32 0.055335034, %v2393_v59 }
 0x527   :  { %v2408_v45 = vmul.f32 0.055335034, %v2392_v62  ;;  %v2359_v56 = vpop.permute.xlu1 %2358 }
 0x528   :  { %v2395_v24 = vadd.f32 %v2359_v56, %v4192_v31  ;;  %v2357_v44 = vpop.permute.xlu0 %2356  ;;  %2450 = vrot.lane.b32.xlu1 %v2409_v48, %s3189_s10 }
 0x529   :  { %v2394_v55 = vadd.f32 %v2357_v44, %v4194_v11  ;;  %2448 = vrot.lane.b32.xlu0 %v2408_v45, %s3189_s10 }
 0x52a   :  { %v2411_v40 = vmul.f32 0.055335034, %v2395_v24 }
 0x52b   :  { %v2410_v42 = vmul.f32 0.055335034, %v2394_v55  ;;  %v2363_v61 = vpop.permute.xlu1 %2362 }
 0x52c   :  { %v2397_v58 = vadd.f32 %v2363_v61, %v4202_v27  ;;  %v2361_v51 = vpop.permute.xlu0 %2360  ;;  %2454 = vrot.lane.b32.xlu1 %v2411_v40, %s3189_s10 }
 0x52d   :  { %v2396_v18 = vadd.f32 %v2361_v51, %v4204_v43  ;;  %2452 = vrot.lane.b32.xlu0 %v2410_v42, %s3189_s10 }
 0x52e   :  { %v2413_v59 = vmul.f32 0.055335034, %v2397_v58 }
 0x52f   :  { %v2412_v62 = vmul.f32 0.055335034, %v2396_v18  ;;  %v2367_v56 = vpop.permute.xlu1 %2366 }
 0x530   :  { %v2399_v48 = vadd.f32 %v2367_v56, %v4210_v13  ;;  %v2365_v44 = vpop.permute.xlu0 %2364  ;;  %2458 = vrot.lane.b32.xlu1 %v2413_v59, %s3189_s10 }
 0x531   :  { %v2398_v45 = vadd.f32 %v2365_v44, %v4212_v15  ;;  %2456 = vrot.lane.b32.xlu0 %v2412_v62, %s3189_s10 }
 0x532   :  { %v2415_v24 = vmul.f32 0.055335034, %v2399_v48 }
 0x533   :  { %v2414_v55 = vmul.f32 0.055335034, %v2398_v45 }
 0x534   :  { %2462 = vrot.lane.b32.xlu1 %v2415_v24, %s3189_s10 }
 0x535   :  { %2460 = vrot.lane.b32.xlu0 %v2414_v55, %s3189_s10 }
 0x538   :  { %2498 = vrot.lane.b32.xlu1 %v4142_v50, %s3190_s11 }
 0x539   :  { %2496 = vrot.lane.b32.xlu0 %v4144_v3, %s3190_s11 }
 0x53c   :  { %2502 = vrot.lane.b32.xlu1 %v4152_v2, %s3190_s11 }
 0x53d   :  { %2500 = vrot.lane.b32.xlu0 %v4154_v7, %s3190_s11 }
 0x540   :  { %2506 = vrot.lane.b32.xlu1 %v4162_v37, %s3190_s11 }
 0x541   :  { %2504 = vrot.lane.b32.xlu0 %v4164_v60, %s3190_s11 }
 0x544   :  { %2510 = vrot.lane.b32.xlu1 %v4172_v22, %s3190_s11 }
 0x545   :  { %2508 = vrot.lane.b32.xlu0 %v4174_v54, %s3190_s11 }
 0x548   :  { %2514 = vrot.lane.b32.xlu1 %v4182_v21, %s3190_s11 }
 0x549   :  { %2512 = vrot.lane.b32.xlu0 %v4184_v12, %s3190_s11 }
 0x54c   :  { %2518 = vrot.lane.b32.xlu1 %v4192_v31, %s3190_s11 }
 0x54d   :  { %2516 = vrot.lane.b32.xlu0 %v4194_v11, %s3190_s11 }
 0x550   :  { %2522 = vrot.lane.b32.xlu1 %v4202_v27, %s3190_s11 }
 0x551   :  { %2520 = vrot.lane.b32.xlu0 %v4204_v43, %s3190_s11 }
 0x554   :  { %2526 = vrot.lane.b32.xlu1 %v4210_v13, %s3190_s11 }
 0x555   :  { %2524 = vrot.lane.b32.xlu0 %v4212_v15, %s3190_s11 }
 0x58a   :  { %v4506_v40 = vpop.permute.xlu1 %2434 }
 0x58b   :  { %v4508_v42 = vpop.permute.xlu0 %2432 }
 0x58e   :  { %v4510_v61 = vpop.permute.xlu1 %2438 }
 0x58f   :  { %v4512_v58 = vpop.permute.xlu0 %2436 }
 0x592   :  { %v4514_v51 = vpop.permute.xlu1 %2442 }
 0x593   :  { %4942 = vst [vmem:[#allocation34_spill] sm:$0xff] %v4514_v51  ;;  %v4516_v18 = vpop.permute.xlu0 %2440 }
 0x596   :  { %v4518_v59 = vpop.permute.xlu1 %2446 }
 0x597   :  { %4943 = vst [vmem:[#allocation35_spill] sm:$0xff] %v4518_v59  ;;  %v4520_v62 = vpop.permute.xlu0 %2444 }
 0x598   :  { %4944 = vst [vmem:[#allocation36_spill] sm:$0xff] %v4520_v62 }
 0x59a   :  { %v4522_v56 = vpop.permute.xlu1 %2450 }
 0x59b   :  { %4945 = vst [vmem:[#allocation37_spill] sm:$0xff] %v4522_v56  ;;  %v4524_v48 = vpop.permute.xlu0 %2448 }
 0x59c   :  { %4946 = vst [vmem:[#allocation38_spill] sm:$0xff] %v4524_v48 }
 0x59e   :  { %v4526_v44 = vpop.permute.xlu1 %2454 }
 0x59f   :  { %4947 = vst [vmem:[#allocation39_spill] sm:$0xff] %v4526_v44  ;;  %v4528_v45 = vpop.permute.xlu0 %2452 }
 0x5a0   :  { %4948 = vst [vmem:[#allocation40_spill] sm:$0xff] %v4528_v45 }
 0x5a2   :  { %v4530_v24 = vpop.permute.xlu1 %2458 }
 0x5a3   :  { %4949 = vst [vmem:[#allocation41_spill] sm:$0xff] %v4530_v24  ;;  %v4532_v55 = vpop.permute.xlu0 %2456 }
 0x5a4   :  { %4950 = vst [vmem:[#allocation42_spill] sm:$0xff] %v4532_v55 }
 0x5a6   :  { %v4534_v4 = vpop.permute.xlu1 %2462 }
 0x5a7   :  { %4951 = vst [vmem:[#allocation43_spill] sm:$0xff] %v4534_v4  ;;  %v4536_v53 = vpop.permute.xlu0 %2460 }
 0x5a8   :  { %4952 = vst [vmem:[#allocation44_spill] sm:$0xff] %v4536_v53 }
 0x5aa   :  { %v2499_v41 = vpop.permute.xlu1 %2498 }
 0x5ab   :  { %v2545_v59 = vadd.f32 %v2499_v41, %v4142_v50  ;;  %v2497_v32 = vpop.permute.xlu0 %2496 }
 0x5ac   :  { %v2544_v56 = vadd.f32 %v2497_v32, %v4144_v3 }
 0x5ad   :  { %v2561_v8 = vmul.f32 0.033562396, %v2545_v59 }
 0x5ae   :  { %v2560_v48 = vmul.f32 0.033562396, %v2544_v56  ;;  %v2503_v49 = vpop.permute.xlu1 %2502 }
 0x5af   :  { %v2547_v44 = vadd.f32 %v2503_v49, %v4152_v2  ;;  %v2501_v45 = vpop.permute.xlu0 %2500  ;;  %2594 = vrot.lane.b32.xlu1 %v2561_v8, %s3170_s20 }
 0x5b0   :  { %v2546_v24 = vadd.f32 %v2501_v45, %v4154_v7  ;;  %2592 = vrot.lane.b32.xlu0 %v2560_v48, %s3170_s20 }
 0x5b1   :  { %v2563_v4 = vmul.f32 0.033562396, %v2547_v44 }
 0x5b2   :  { %v2562_v53 = vmul.f32 0.033562396, %v2546_v24 }
 0x5b3   :  { %v2505_v55 = vpop.permute.xlu0 %2504  ;;  %2598 = vrot.lane.b32.xlu1 %v2563_v4, %s3170_s20  ;;  %v2507_v4 = vpop.permute.xlu1 %2506 }
 0x5b4   :  { %v2548_v41 = vadd.f32 %v2505_v55, %v4164_v60  ;;  %2596 = vrot.lane.b32.xlu0 %v2562_v53, %s3170_s20 }
 0x5b6   :  { %v2564_v32 = vmul.f32 0.033562396, %v2548_v41 }
 0x5b7   :  { %2656 = vrot.lane.b32.xlu1 %v4144_v3, %s3191_s12  ;;  %v2509_v8 = vpop.permute.xlu0 %2508 }
 0x5b8   :  { %2600 = vrot.lane.b32.xlu0 %v2564_v32, %s3170_s20  ;;  %v2550_v53 = vadd.f32 %v2509_v8, %v4174_v54 }
 0x5bb   :  { %2660 = vrot.lane.b32.xlu1 %v4154_v7, %s3191_s12 }
 0x5bc   :  { %2658 = vrot.lane.b32.xlu0 %v4142_v50, %s3191_s12 }
 0x5bf   :  { %2664 = vrot.lane.b32.xlu1 %v4164_v60, %s3191_s12 }
 0x5c0   :  { %2662 = vrot.lane.b32.xlu0 %v4152_v2, %s3191_s12 }
 0x5c3   :  { %2668 = vrot.lane.b32.xlu1 %v4174_v54, %s3191_s12 }
 0x5c4   :  { %2666 = vrot.lane.b32.xlu0 %v4162_v37, %s3191_s12 }
 0x5c7   :  { %2672 = vrot.lane.b32.xlu1 %v4184_v12, %s3191_s12 }
 0x5c8   :  { %2670 = vrot.lane.b32.xlu0 %v4172_v22, %s3191_s12 }
 0x5cb   :  { %2676 = vrot.lane.b32.xlu1 %v4194_v11, %s3191_s12 }
 0x5cc   :  { %2674 = vrot.lane.b32.xlu0 %v4182_v21, %s3191_s12 }
 0x5cf   :  { %2680 = vrot.lane.b32.xlu1 %v4204_v43, %s3191_s12 }
 0x5d0   :  { %2678 = vrot.lane.b32.xlu0 %v4192_v31, %s3191_s12 }
 0x5d3   :  { %2684 = vrot.lane.b32.xlu1 %v4212_v15, %s3191_s12 }
 0x5d4   :  { %2682 = vrot.lane.b32.xlu0 %v4202_v27, %s3191_s12 }
 0x5d7   :  { %2816 = vrot.lane.b32.xlu1 %v4144_v3, %s3192_s13  ;;  %v2511_v3 = vpop.permute.xlu1 %2510 }
 0x5d8   :  { %2686 = vrot.lane.b32.xlu0 %v4210_v13, %s3191_s12  ;;  %v2551_v49 = vadd.f32 %v2511_v3, %v4172_v22 }
 0x5da   :  { %v2567_v48 = vmul.f32 0.033562396, %v2551_v49 }
 0x5db   :  { %2820 = vrot.lane.b32.xlu1 %v4154_v7, %s3192_s13  ;;  %v2513_v7 = vpop.permute.xlu0 %2512 }
 0x5dc   :  { %2818 = vrot.lane.b32.xlu0 %v4142_v50, %s3192_s13  ;;  %v2515_v50 = vpop.permute.xlu1 %2514  ;;  %v2552_v45 = vadd.f32 %v2513_v7, %v4184_v12 }
 0x5dd   :  { %v2553_v44 = vadd.f32 %v2515_v50, %v4182_v21 }
 0x5de   :  { %v2568_v41 = vmul.f32 0.033562396, %v2552_v45  ;;  %v4615_v45 = vld [vmem:[#allocation3 + $0x10] sm:$0xff] }
 0x5df   :  { %2824 = vrot.lane.b32.xlu1 %v4164_v60, %s3192_s13  ;;  %v2517_v56 = vpop.permute.xlu0 %2516 }
 0x5e0   :  { %2822 = vrot.lane.b32.xlu0 %v4152_v2, %s3192_s13  ;;  %v2549_v2 = vadd.f32 %v2507_v4, %v4162_v37  ;;  %v2519_v59 = vpop.permute.xlu1 %2518  ;;  %v2554_v32 = vadd.f32 %v2517_v56, %v4194_v11 }
 0x5e2   :  { %v2565_v60 = vmul.f32 0.033562396, %v2549_v2 }
 0x5e3   :  { %2828 = vrot.lane.b32.xlu1 %v4174_v54, %s3192_s13  ;;  %v2555_v54 = vadd.f32 %v2519_v59, %v4192_v31  ;;  %v2521_v55 = vpop.permute.xlu0 %2520 }
 0x5e4   :  { %2826 = vrot.lane.b32.xlu0 %v4162_v37, %s3192_s13  ;;  %v2566_v37 = vmul.f32 0.033562396, %v2550_v53  ;;  %v2523_v24 = vpop.permute.xlu1 %2522  ;;  %v2556_v3 = vadd.f32 %v2521_v55, %v4204_v43 }
 0x5e5   :  { %v2557_v4 = vadd.f32 %v2523_v24, %v4202_v27 }
 0x5e7   :  { %2832 = vrot.lane.b32.xlu1 %v4184_v12, %s3192_s13  ;;  %v2570_v12 = vmul.f32 0.033562396, %v2554_v32  ;;  %v2525_v50 = vpop.permute.xlu0 %2524 }
 0x5e8   :  { %2830 = vrot.lane.b32.xlu0 %v4172_v22, %s3192_s13  ;;  %v2569_v22 = vmul.f32 0.033562396, %v2553_v44  ;;  %v2527_v8 = vpop.permute.xlu1 %2526  ;;  %v2558_v7 = vadd.f32 %v2525_v50, %v4212_v15 }
 0x5e9   :  { %v2559_v2 = vadd.f32 %v2527_v8, %v4210_v13  ;;  %v4626_v8 = vld [vmem:[#allocation3 + $0x18] sm:$0xff] }
 0x5eb   :  { %2836 = vrot.lane.b32.xlu1 %v4194_v11, %s3192_s13  ;;  %v2572_v11 = vmul.f32 0.033562396, %v2556_v3 }
 0x5ec   :  { %2834 = vrot.lane.b32.xlu0 %v4182_v21, %s3192_s13  ;;  %v2571_v21 = vmul.f32 0.033562396, %v2555_v54  ;;  %v4619_v54 = vld [vmem:[#allocation3 + $0x8] sm:$0xff] }
 0x5ef   :  { %2840 = vrot.lane.b32.xlu1 %v4204_v43, %s3192_s13 }
 0x5f0   :  { %2838 = vrot.lane.b32.xlu0 %v4192_v31, %s3192_s13  ;;  %v2573_v31 = vmul.f32 0.033562396, %v2557_v4  ;;  %v4622_v4 = vld [vmem:[#allocation3 + $0x20] sm:$0xff] }
 0x5f3   :  { %2844 = vrot.lane.b32.xlu1 %v4212_v15, %s3192_s13  ;;  %v4610_v15 = vld [vmem:[#allocation3] sm:$0xff] }
 0x5f4   :  { %2842 = vrot.lane.b32.xlu0 %v4202_v27, %s3192_s13  ;;  %v2575_v27 = vmul.f32 0.033562396, %v2559_v2 }
 0x5f7   :  { %2602 = vrot.lane.b32.xlu1 %v2565_v60, %s3170_s20  ;;  %v2574_v60 = vmul.f32 0.033562396, %v2558_v7  ;;  %v4630_v7 = vld [vmem:[#allocation3 + $0x30] sm:$0xff] }
 0x5f8   :  { %2846 = vrot.lane.b32.xlu0 %v4210_v13, %s3192_s13 }
 0x5fb   :  { %2606 = vrot.lane.b32.xlu1 %v2567_v48, %s3170_s20 }
 0x5fc   :  { %2604 = vrot.lane.b32.xlu0 %v2566_v37, %s3170_s20 }
 0x5ff   :  { %2610 = vrot.lane.b32.xlu1 %v2569_v22, %s3170_s20 }
 0x600   :  { %2608 = vrot.lane.b32.xlu0 %v2568_v41, %s3170_s20 }
 0x603   :  { %2614 = vrot.lane.b32.xlu1 %v2571_v21, %s3170_s20 }
 0x604   :  { %2612 = vrot.lane.b32.xlu0 %v2570_v12, %s3170_s20 }
 0x607   :  { %2618 = vrot.lane.b32.xlu1 %v2573_v31, %s3170_s20 }
 0x608   :  { %2616 = vrot.lane.b32.xlu0 %v2572_v11, %s3170_s20 }
 0x60b   :  { %2622 = vrot.lane.b32.xlu1 %v2575_v27, %s3170_s20 }
 0x60c   :  { %2620 = vrot.lane.b32.xlu0 %v2574_v60, %s3170_s20 }
 0x621   :  { %v4602_v43 = vpop.permute.xlu1 %2594 }
 0x622   :  { %v4604_v49 = vpop.permute.xlu0 %2592 }
 0x625   :  { %v4606_v53 = vpop.permute.xlu1 %2598 }
 0x626   :  { %v4608_v13 = vpop.permute.xlu0 %2596 }
 0x629   :  { %v2657_v59 = vpop.permute.xlu1 %2656 }
 0x62a   :  { %v2704_v56 = vadd.f32 %v4610_v15, %v2657_v59  ;;  %v4613_v48 = vpop.permute.xlu0 %2600  ;;  %v4634_v59 = vld [vmem:[#allocation3 + $0x28] sm:$0xff] }
 0x62c   :  { %v2720_v44 = vmul.f32 0.018215904, %v2704_v56 }
 0x62d   :  { %v2661_v37 = vpop.permute.xlu1 %2660 }
 0x62e   :  { %v2706_v24 = vadd.f32 %v4615_v45, %v2661_v37  ;;  %v2659_v22 = vpop.permute.xlu0 %2658  ;;  %2752 = vrot.lane.b32.xlu0 %v2720_v44, %s3193_s14 }
 0x62f   :  { %v2705_v55 = vadd.f32 %v4619_v54, %v2659_v22  ;;  %v4638_v22 = vld [vmem:[#allocation3 + $0x40] sm:$0xff] }
 0x630   :  { %v2722_v41 = vmul.f32 0.018215904, %v2706_v24 }
 0x631   :  { %v2721_v32 = vmul.f32 0.018215904, %v2705_v55  ;;  %v2665_v21 = vpop.permute.xlu1 %2664 }
 0x632   :  { %v2708_v12 = vadd.f32 %v4622_v4, %v2665_v21  ;;  %v2663_v3 = vpop.permute.xlu0 %2662  ;;  %2756 = vrot.lane.b32.xlu0 %v2722_v41, %s3193_s14 }
 0x633   :  { %v2707_v50 = vadd.f32 %v4626_v8, %v2663_v3  ;;  %2754 = vrot.lane.b32.xlu1 %v2721_v32, %s3193_s14  ;;  %v4642_v32 = vld [vmem:[#allocation3 + $0x38] sm:$0xff] }
 0x634   :  { %v2724_v31 = vmul.f32 0.018215904, %v2708_v12 }
 0x635   :  { %v2723_v2 = vmul.f32 0.018215904, %v2707_v50  ;;  %v2669_v11 = vpop.permute.xlu1 %2668 }
 0x636   :  { %v2710_v27 = vadd.f32 %v4630_v7, %v2669_v11  ;;  %v2667_v60 = vpop.permute.xlu0 %2666  ;;  %2760 = vrot.lane.b32.xlu0 %v2724_v31, %s3193_s14  ;;  %v4646_v31 = vld [vmem:[#allocation3 + $0x50] sm:$0xff] }
 0x637   :  { %v2709_v56 = vadd.f32 %v4634_v59, %v2667_v60  ;;  %2758 = vrot.lane.b32.xlu1 %v2723_v2, %s3193_s14 }
 0x638   :  { %v2726_v44 = vmul.f32 0.018215904, %v2710_v27  ;;  %v4650_v27 = vld [vmem:[#allocation3 + $0x48] sm:$0xff] }
 0x639   :  { %v2725_v37 = vmul.f32 0.018215904, %v2709_v56  ;;  %v2673_v24 = vpop.permute.xlu1 %2672 }
 0x63a   :  { %v2712_v55 = vadd.f32 %v4638_v22, %v2673_v24  ;;  %v2671_v41 = vpop.permute.xlu0 %2670  ;;  %2764 = vrot.lane.b32.xlu0 %v2726_v44, %s3193_s14 }
 0x63b   :  { %v2711_v21 = vadd.f32 %v4642_v32, %v2671_v41  ;;  %2762 = vrot.lane.b32.xlu1 %v2725_v37, %s3193_s14  ;;  %v4654_v37 = vld [vmem:[#allocation3 + $0x60] sm:$0xff] }
 0x63c   :  { %v2728_v12 = vmul.f32 0.018215904, %v2712_v55 }
 0x63d   :  { %v2727_v3 = vmul.f32 0.018215904, %v2711_v21  ;;  %v2677_v50 = vpop.permute.xlu1 %2676  ;;  %v4658_v21 = vld [vmem:[#allocation3 + $0x58] sm:$0xff] }
 0x63e   :  { %v2714_v2 = vadd.f32 %v4646_v31, %v2677_v50  ;;  %v2675_v11 = vpop.permute.xlu0 %2674  ;;  %2768 = vrot.lane.b32.xlu0 %v2728_v12, %s3193_s14  ;;  %4953 = vst [vmem:[#allocation45_spill] sm:$0xff] %v4658_v21 }
 0x63f   :  { %v2713_v60 = vadd.f32 %v4650_v27, %v2675_v11  ;;  %2766 = vrot.lane.b32.xlu1 %v2727_v3, %s3193_s14  ;;  %v4662_v3 = vld [vmem:[#allocation3 + $0x70] sm:$0xff] }
 0x640   :  { %v2730_v56 = vmul.f32 0.018215904, %v2714_v2  ;;  %4954 = vst [vmem:[#allocation46_spill] sm:$0xff] %v4662_v3 }
 0x641   :  { %v2729_v44 = vmul.f32 0.018215904, %v2713_v60  ;;  %v2681_v24 = vpop.permute.xlu1 %2680 }
 0x642   :  { %v2716_v55 = vadd.f32 %v4654_v37, %v2681_v24  ;;  %v2679_v41 = vpop.permute.xlu0 %2678  ;;  %2772 = vrot.lane.b32.xlu0 %v2730_v56, %s3193_s14  ;;  %v4666_v24 = vld [vmem:[#allocation3 + $0x68] sm:$0xff] }
 0x643   :  { %v2715_v12 = vadd.f32 %v4658_v21, %v2679_v41  ;;  %2770 = vrot.lane.b32.xlu1 %v2729_v44, %s3193_s14  ;;  %4955 = vst [vmem:[#allocation47_spill] sm:$0xff] %v4666_v24 }
 0x644   :  { %v2732_v50 = vmul.f32 0.018215904, %v2716_v55 }
 0x645   :  { %v2731_v11 = vmul.f32 0.018215904, %v2715_v12  ;;  %v2685_v36 = vpop.permute.xlu1 %2684  ;;  %v4672_v12 = vld [vmem:[#allocation3 + $0x78] sm:$0xff] }
 0x646   :  { %v2718_v2 = vadd.f32 %v4662_v3, %v2685_v36  ;;  %v2683_v60 = vpop.permute.xlu0 %2682  ;;  %2776 = vrot.lane.b32.xlu0 %v2732_v50, %s3193_s14  ;;  %4956 = vst [vmem:[#allocation48_spill] sm:$0xff] %v4672_v12 }
 0x647   :  { %v2717_v56 = vadd.f32 %v4666_v24, %v2683_v60  ;;  %2774 = vrot.lane.b32.xlu1 %v2731_v11, %s3193_s14 }
 0x648   :  { %v2734_v57 = vmul.f32 0.018215904, %v2718_v2 }
 0x649   :  { %v2733_v41 = vmul.f32 0.018215904, %v2717_v56  ;;  %v2817_v39 = vpop.permute.xlu1 %2816 }
 0x64a   :  { %v2864_v44 = vadd.f32 %v4610_v15, %v2817_v39  ;;  %v2687_v55 = vpop.permute.xlu0 %2686  ;;  %2780 = vrot.lane.b32.xlu0 %v2734_v57, %s3193_s14 }
 0x64b   :  { %v2719_v36 = vadd.f32 %v4672_v12, %v2687_v55  ;;  %2778 = vrot.lane.b32.xlu1 %v2733_v41, %s3193_s14 }
 0x64c   :  { %v2880_v50 = vmul.f32 0.008846949, %v2864_v44 }
 0x64d   :  { %v2735_v51 = vmul.f32 0.018215904, %v2719_v36  ;;  %v2821_v6 = vpop.permute.xlu1 %2820 }
 0x64e   :  { %v2866_v60 = vadd.f32 %v4615_v45, %v2821_v6  ;;  %v2819_v11 = vpop.permute.xlu0 %2818  ;;  %2912 = vrot.lane.b32.xlu0 %v2880_v50, %s3169_s0 }
 0x64f   :  { %v2865_v2 = vadd.f32 %v4619_v54, %v2819_v11  ;;  %2782 = vrot.lane.b32.xlu1 %v2735_v51, %s3193_s14 }
 0x650   :  { %v2882_v39 = vmul.f32 0.008846949, %v2866_v60 }
 0x651   :  { %v2881_v57 = vmul.f32 0.008846949, %v2865_v2  ;;  %v2825_v56 = vpop.permute.xlu1 %2824 }
 0x652   :  { %v2868_v62 = vadd.f32 %v4622_v4, %v2825_v56  ;;  %v2823_v55 = vpop.permute.xlu0 %2822  ;;  %2916 = vrot.lane.b32.xlu0 %v2882_v39, %s3169_s0 }
 0x653   :  { %v2867_v41 = vadd.f32 %v4626_v8, %v2823_v55  ;;  %2914 = vrot.lane.b32.xlu1 %v2881_v57, %s3169_s0 }
 0x654   :  { %v2884_v6 = vmul.f32 0.008846949, %v2868_v62 }
 0x655   :  { %v2883_v44 = vmul.f32 0.008846949, %v2867_v41  ;;  %v2829_v36 = vpop.permute.xlu1 %2828 }
 0x656   :  { %v2870_v50 = vadd.f32 %v4630_v7, %v2829_v36  ;;  %v2827_v11 = vpop.permute.xlu0 %2826  ;;  %2920 = vrot.lane.b32.xlu0 %v2884_v6, %s3169_s0 }
 0x657   :  { %v2869_v51 = vadd.f32 %v4634_v59, %v2827_v11  ;;  %2918 = vrot.lane.b32.xlu1 %v2883_v44, %s3169_s0 }
 0x658   :  { %v2886_v60 = vmul.f32 0.008846949, %v2870_v50 }
 0x659   :  { %v2885_v2 = vmul.f32 0.008846949, %v2869_v51  ;;  %v2833_v56 = vpop.permute.xlu1 %2832 }
 0x65a   :  { %v2872_v39 = vadd.f32 %v4638_v22, %v2833_v56  ;;  %v2831_v55 = vpop.permute.xlu0 %2830  ;;  %2924 = vrot.lane.b32.xlu0 %v2886_v60, %s3169_s0 }
 0x65b   :  { %v2871_v62 = vadd.f32 %v4642_v32, %v2831_v55  ;;  %2922 = vrot.lane.b32.xlu1 %v2885_v2, %s3169_s0 }
 0x65c   :  { %v2888_v57 = vmul.f32 0.008846949, %v2872_v39 }
 0x65d   :  { %v2887_v41 = vmul.f32 0.008846949, %v2871_v62  ;;  %v2837_v36 = vpop.permute.xlu1 %2836 }
 0x65e   :  { %v2874_v6 = vadd.f32 %v4646_v31, %v2837_v36  ;;  %v2835_v11 = vpop.permute.xlu0 %2834  ;;  %2928 = vrot.lane.b32.xlu0 %v2888_v57, %s3169_s0 }
 0x65f   :  { %v2873_v44 = vadd.f32 %v4650_v27, %v2835_v11  ;;  %2926 = vrot.lane.b32.xlu1 %v2887_v41, %s3169_s0 }
 0x660   :  { %v2890_v50 = vmul.f32 0.008846949, %v2874_v6 }
 0x661   :  { %v2889_v51 = vmul.f32 0.008846949, %v2873_v44  ;;  %v2841_v56 = vpop.permute.xlu1 %2840 }
 0x662   :  { %v2876_v60 = vadd.f32 %v4654_v37, %v2841_v56  ;;  %v2839_v55 = vpop.permute.xlu0 %2838  ;;  %2932 = vrot.lane.b32.xlu0 %v2890_v50, %s3169_s0 }
 0x663   :  { %v2875_v2 = vadd.f32 %v4658_v21, %v2839_v55  ;;  %2930 = vrot.lane.b32.xlu1 %v2889_v51, %s3169_s0  ;;  %v1825_v21 = vmul.f32 0.13459834, %v4619_v54 }
 0x664   :  { %v2892_v39 = vmul.f32 0.008846949, %v2876_v60 }
 0x665   :  { %v2891_v62 = vmul.f32 0.008846949, %v2875_v2  ;;  %v2845_v36 = vpop.permute.xlu1 %2844 }
 0x666   :  { %v2878_v57 = vadd.f32 %v4662_v3, %v2845_v36  ;;  %v2843_v11 = vpop.permute.xlu0 %2842  ;;  %2936 = vrot.lane.b32.xlu0 %v2892_v39, %s3169_s0 }
 0x667   :  { %v2877_v41 = vadd.f32 %v4666_v24, %v2843_v11  ;;  %2934 = vrot.lane.b32.xlu1 %v2891_v62, %s3169_s0 }
 0x668   :  { %v2894_v6 = vmul.f32 0.008846949, %v2878_v57 }
 0x669   :  { %v2893_v44 = vmul.f32 0.008846949, %v2877_v41  ;;  %v4708_v60 = vpop.permute.xlu1 %2602 }
 0x66a   :  { %v2847_v56 = vpop.permute.xlu0 %2846  ;;  %2940 = vrot.lane.b32.xlu0 %v2894_v6, %s3169_s0 }
 0x66b   :  { %v2879_v50 = vadd.f32 %v4672_v12, %v2847_v56  ;;  %2938 = vrot.lane.b32.xlu1 %v2893_v44, %s3169_s0 }
 0x66d   :  { %v2895_v51 = vmul.f32 0.008846949, %v2879_v50  ;;  %v4712_v2 = vpop.permute.xlu1 %2606 }
 0x66e   :  { %v4710_v55 = vpop.permute.xlu0 %2604  ;;  %4957 = vst [vmem:[#allocation49_spill] sm:$0xff] %v4712_v2  ;;  %v1826_v2 = vmul.f32 0.13459834, %v4615_v45 }
 0x66f   :  { %2942 = vrot.lane.b32.xlu1 %v2895_v51, %s3169_s0 }
 0x671   :  { %v4716_v62 = vpop.permute.xlu1 %2610 }
 0x672   :  { %v4714_v39 = vpop.permute.xlu0 %2608  ;;  %4959 = vst [vmem:[#allocation51_spill] sm:$0xff] %v4716_v62 }
 0x673   :  { %4958 = vst [vmem:[#allocation50_spill] sm:$0xff] %v4714_v39 }
 0x675   :  { %v4720_v57 = vpop.permute.xlu1 %2614 }
 0x676   :  { %v4718_v36 = vpop.permute.xlu0 %2612  ;;  %4961 = vst [vmem:[#allocation53_spill] sm:$0xff] %v4720_v57 }
 0x677   :  { %4960 = vst [vmem:[#allocation52_spill] sm:$0xff] %v4718_v36 }
 0x679   :  { %v4724_v41 = vpop.permute.xlu1 %2618 }
 0x67a   :  { %v4722_v11 = vpop.permute.xlu0 %2616  ;;  %4963 = vst [vmem:[#allocation55_spill] sm:$0xff] %v4724_v41  ;;  %v1824_v41 = vmul.f32 0.13459834, %v4610_v15  ;;  %v2001_v15 = vadd.f32 %v4266_v17, %v1825_v21  ;;  %v1829_v21 = vmul.f32 0.13459834, %v4634_v59 }
 0x67b   :  { %4962 = vst [vmem:[#allocation54_spill] sm:$0xff] %v4722_v11 }
 0x67c   :  { %v2161_v54 = vadd.f32 %v4346_v63, %v2001_v15 }
 0x67d   :  { %v4728_v56 = vpop.permute.xlu1 %2622 }
 0x67e   :  { %v4726_v6 = vpop.permute.xlu0 %2620  ;;  %4965 = vst [vmem:[#allocation57_spill] sm:$0xff] %v4728_v56  ;;  %v2000_v56 = vadd.f32 %v4268_v19, %v1824_v41  ;;  %v1828_v19 = vmul.f32 0.13459834, %v4622_v4 }
 0x67f   :  { %4964 = vst [vmem:[#allocation56_spill] sm:$0xff] %v4726_v6 }
 0x680   :  { %v2160_v39 = vadd.f32 %v4348_v30, %v2000_v56  ;;  %v1827_v30 = vmul.f32 0.13459834, %v4626_v8 }
 0x682   :  { %v2003_v17 = vadd.f32 %v4270_v25, %v1827_v30 }
 0x6a0   :  { %v2753_v44 = vpop.permute.xlu0 %2752 }
 0x6a4   :  { %v2757_v50 = vpop.permute.xlu0 %2756 }
 0x6a5   :  { %v2755_v51 = vpop.permute.xlu1 %2754 }
 0x6a8   :  { %v4730_v12 = vpop.permute.xlu0 %2760 }
 0x6a9   :  { %v4732_v24 = vpop.permute.xlu1 %2758 }
 0x6ac   :  { %v4734_v62 = vpop.permute.xlu0 %2764 }
 0x6ad   :  { %4966 = vst [vmem:[#allocation58_spill] sm:$0xff] %v4734_v62  ;;  %v4736_v36 = vpop.permute.xlu1 %2762 }
 0x6ae   :  { %4967 = vst [vmem:[#allocation59_spill] sm:$0xff] %v4736_v36 }
 0x6b0   :  { %v4738_v57 = vpop.permute.xlu0 %2768 }
 0x6b1   :  { %4968 = vst [vmem:[#allocation60_spill] sm:$0xff] %v4738_v57  ;;  %v4740_v11 = vpop.permute.xlu1 %2766  ;;  %v2002_v57 = vadd.f32 %v4272_v26, %v1826_v2  ;;  %v2004_v26 = vadd.f32 %v4276_v33, %v1828_v19  ;;  %v2163_v33 = vadd.f32 %v4350_v0, %v2003_v17  ;;  %v1832_v0 = vmul.f32 0.13459834, %v4638_v22 }
 0x6b2   :  { %4969 = vst [vmem:[#allocation61_spill] sm:$0xff] %v4740_v11  ;;  %v2320_v11 = vadd.f32 %v4428_v23, %v2160_v39 }
 0x6b3   :  { %v2162_v41 = vadd.f32 %v4352_v16, %v2002_v57  ;;  %v2321_v16 = vadd.f32 %v4426_v1, %v2161_v54  ;;  %v2164_v4 = vadd.f32 %v4356_v52, %v2004_v26  ;;  %v2005_v52 = vadd.f32 %v4274_v20, %v1829_v21 }
 0x6b4   :  { %v4743_v6 = vpop.permute.xlu0 %2772  ;;  %v2480_v45 = vadd.f32 %v4508_v42, %v2320_v11  ;;  %v1830_v42 = vmul.f32 0.13459834, %v4630_v7 }
 0x6b5   :  { %v4746_v3 = vpop.permute.xlu1 %2770  ;;  %v2322_v23 = vadd.f32 %v4432_v46, %v2162_v41  ;;  %v2481_v46 = vadd.f32 %v4506_v40, %v2321_v16  ;;  %v2324_v25 = vadd.f32 %v4436_v28, %v2164_v4  ;;  %v1831_v28 = vmul.f32 0.13459834, %v4642_v32 }
 0x6b6   :  { %v2640_v2 = vadd.f32 %v4604_v49, %v2480_v45  ;;  %v2006_v57 = vadd.f32 %v4280_v34, %v1830_v42  ;;  %v4975_v42 = vld [vmem:[#allocation10_spill] sm:$0xff] }
 0x6b7   :  { %v2482_v63 = vadd.f32 %v4512_v58, %v2322_v23  ;;  %v2323_v58 = vadd.f32 %v4430_v35, %v2163_v33  ;;  %v2641_v59 = vadd.f32 %v4602_v43, %v2481_v46  ;;  %v2008_v35 = vadd.f32 %v4284_v38, %v1832_v0  ;;  %v4977_v33 = vld [vmem:[#allocation20_spill] sm:$0xff] }
 0x6b8   :  { %v4751_v62 = vpop.permute.xlu0 %2776  ;;  %v2800_v8 = vadd.f32 %v2753_v44, %v2640_v2  ;;  %v2166_v40 = vadd.f32 %v4360_v10, %v2006_v57  ;;  %v2484_v44 = vadd.f32 %v4516_v18, %v2324_v25  ;;  %v2007_v18 = vadd.f32 %v4278_v9, %v1831_v28  ;;  %v4972_v9 = vld [vmem:[#allocation34_spill] sm:$0xff]  ;;  %v4985_v28 = vld [vmem:[#allocation29_spill] sm:$0xff] }
 0x6b9   :  { %v4755_v36 = vpop.permute.xlu1 %2774  ;;  %v2642_v1 = vadd.f32 %v4608_v13, %v2482_v63  ;;  %v2165_v13 = vadd.f32 %v4354_v5, %v2005_v52  ;;  %v2483_v15 = vadd.f32 %v4510_v61, %v2323_v58  ;;  %v2801_v20 = vadd.f32 %v2755_v51, %v2641_v59  ;;  %v4970_v51 = vld [vmem:[#allocation36_spill] sm:$0xff]  ;;  %v4979_v25 = vld [vmem:[#allocation58_spill] sm:$0xff]  ;;  %v4982_v59 = vld [vmem:[#allocation35_spill] sm:$0xff] }
 0x6ba   :  { %v2326_v43 = vadd.f32 %v4440_v29, %v2166_v40  ;;  %v2644_v22 = vadd.f32 %v4613_v48, %v2484_v44  ;;  %v1834_v5 = vmul.f32 0.13459834, %v4646_v31  ;;  %v2168_v61 = vadd.f32 %v4364_v14, %v2008_v35  ;;  %v4971_v48 = vld [vmem:[#allocation17_spill] sm:$0xff]  ;;  %v4973_v31 = vld [vmem:[#allocation12_spill] sm:$0xff]  ;;  %v4974_v14 = vld [vmem:[#allocation27_spill] sm:$0xff] }
 0x6bb   :  { %v2802_v34 = vadd.f32 %v2757_v50, %v2642_v1  ;;  %v2325_v50 = vadd.f32 %v4434_v47, %v2165_v13  ;;  %v2643_v32 = vadd.f32 %v4606_v53, %v2483_v15  ;;  %v1833_v29 = vmul.f32 0.13459834, %v4650_v27  ;;  %v4976_v27 = vld [vmem:[#allocation25_spill] sm:$0xff]  ;;  %v4981_v52 = vld [vmem:[#allocation18_spill] sm:$0xff]  ;;  %v4983_v40 = vld [vmem:[#allocation59_spill] sm:$0xff] }
 0x6bc   :  { %v4763_v56 = vpop.permute.xlu0 %2780  ;;  %v2486_v30 = vadd.f32 %v4970_v51, %v2326_v43  ;;  %v2804_v38 = vadd.f32 %v4730_v12, %v2644_v22  ;;  %v2167_v54 = vadd.f32 %v4971_v48, %v2007_v18  ;;  %v2010_v23 = vadd.f32 %v4973_v31, %v1834_v5  ;;  %v4986_v15 = vld [vmem:[#allocation50_spill] sm:$0xff]  ;;  %v4987_v43 = vld [vmem:[#allocation11_spill] sm:$0xff]  ;;  %v4989_v18 = vld [vmem:[#allocation49_spill] sm:$0xff] }
 0x6bd   :  { %v4768_v39 = vpop.permute.xlu1 %2778  ;;  %v2485_v26 = vadd.f32 %v4972_v9, %v2325_v50  ;;  %v2803_v47 = vadd.f32 %v4732_v24, %v2643_v32  ;;  %v2328_v2 = vadd.f32 %v4974_v14, %v2168_v61  ;;  %v2009_v4 = vadd.f32 %v4975_v42, %v1833_v29  ;;  %v4991_v61 = vld [vmem:[#allocation22_spill] sm:$0xff]  ;;  %v4993_v29 = vld [vmem:[#allocation60_spill] sm:$0xff] }
 0x6be   :  { %v2646_v17 = vadd.f32 %v4710_v55, %v2486_v30  ;;  %v2327_v63 = vadd.f32 %v4976_v27, %v2167_v54  ;;  %v1836_v24 = vmul.f32 0.13459834, %v4654_v37  ;;  %v2170_v46 = vadd.f32 %v4977_v33, %v2010_v23  ;;  %v4980_v55 = vld [vmem:[#allocation45_spill] sm:$0xff]  ;;  %v4984_v37 = vld [vmem:[#allocation14_spill] sm:$0xff]  ;;  %v4992_v30 = vld [vmem:[#allocation40_spill] sm:$0xff] }
 0x6bf   :  { %v2169_v58 = vadd.f32 %v4981_v52, %v2009_v4  ;;  %v4994_v54 = vld [vmem:[#allocation47_spill] sm:$0xff]  ;;  %v4997_v23 = vld [vmem:[#allocation61_spill] sm:$0xff]  ;;  %v5000_v4 = vld [vmem:[#allocation52_spill] sm:$0xff] }
 0x6c0   :  { %v2913_v49 = vpop.permute.xlu0 %2912  ;;  %v2806_v1 = vadd.f32 %v4979_v25, %v2646_v17  ;;  %v2487_v0 = vadd.f32 %v4982_v59, %v2327_v63  ;;  %v2330_v13 = vadd.f32 %v4985_v28, %v2170_v46  ;;  %v1837_v9 = vmul.f32 0.13459834, %v4994_v54  ;;  %v4998_v17 = vld [vmem:[#allocation16_spill] sm:$0xff] }
 0x6c1   :  { %v4781_v11 = vpop.permute.xlu1 %2782  ;;  %v2960_v7 = vadd.f32 %v2913_v49, %v2800_v8  ;;  %v2645_v8 = vadd.f32 %v4708_v60, %v2485_v26  ;;  %v4978_v49 = vld [vmem:[#allocation38_spill] sm:$0xff]  ;;  %v4995_v26 = vld [vmem:[#allocation19_spill] sm:$0xff]  ;;  %v5002_v33 = vld [vmem:[#allocation28_spill] sm:$0xff] }
 0x6c2   :  { %v2488_v57 = vadd.f32 %v4978_v49, %v2328_v2  ;;  %v2647_v50 = vadd.f32 %v4989_v18, %v2487_v0  ;;  %v5003_v49 = vld [vmem:[#allocation51_spill] sm:$0xff]  ;;  %v5006_v59 = vld [vmem:[#allocation48_spill] sm:$0xff]  ;;  %v5013_v18 = vld [vmem:[#allocation53_spill] sm:$0xff] }
 0x6c3   :  { %2992 = vrot.lane.b32.xlu0 %v2960_v7, %s3182_s3  ;;  %v1835_v7 = vmul.f32 0.13459834, %v4980_v55  ;;  %v2805_v44 = vadd.f32 %v4983_v40, %v2645_v8  ;;  %v1839_v0 = vmul.f32 0.13459834, %v5006_v59  ;;  %v5007_v40 = vld [vmem:[#allocation21_spill] sm:$0xff]  ;;  %v5017_v54 = vld [vmem:[#allocation56_spill] sm:$0xff] }
 0x6c4   :  { %v2917_v19 = vpop.permute.xlu0 %2916  ;;  %v2807_v14 = vadd.f32 %v4997_v23, %v2647_v50  ;;  %v5019_v23 = vld [vmem:[#allocation55_spill] sm:$0xff] }
 0x6c5   :  { %v2915_v10 = vpop.permute.xlu1 %2914  ;;  %v2962_v41 = vadd.f32 %v2917_v19, %v2802_v34  ;;  %v2012_v34 = vadd.f32 %v4984_v37, %v1836_v24  ;;  %v2011_v22 = vadd.f32 %v4987_v43, %v1835_v7  ;;  %v5005_v7 = vld [vmem:[#allocation42_spill] sm:$0xff] }
 0x6c6   :  { %v2961_v45 = vadd.f32 %v2915_v10, %v2801_v20  ;;  %v2648_v20 = vadd.f32 %v4986_v15, %v2488_v57  ;;  %v4988_v10 = vld [vmem:[#allocation26_spill] sm:$0xff] }
 0x6c7   :  { %2996 = vrot.lane.b32.xlu0 %v2962_v41, %s3182_s3  ;;  %v2329_v41 = vadd.f32 %v4988_v10, %v2169_v58  ;;  %v2172_v51 = vadd.f32 %v4991_v61, %v2012_v34  ;;  %v5012_v10 = vld [vmem:[#allocation30_spill] sm:$0xff]  ;;  %v5015_v61 = vld [vmem:[#allocation23_spill] sm:$0xff] }
 0x6c8   :  { %2994 = vrot.lane.b32.xlu1 %v2961_v45, %s3182_s3  ;;  %v2921_v53 = vpop.permute.xlu0 %2920  ;;  %v4990_v45 = vld [vmem:[#allocation46_spill] sm:$0xff]  ;;  %v2808_v48 = vadd.f32 %v4993_v29, %v2648_v20 }
 0x6c9   :  { %v2919_v12 = vpop.permute.xlu1 %2918  ;;  %v2964_v16 = vadd.f32 %v2921_v53, %v2804_v38  ;;  %v1838_v5 = vmul.f32 0.13459834, %v4990_v45  ;;  %v2490_v38 = vadd.f32 %v4992_v30, %v2330_v13  ;;  %v4996_v53 = vld [vmem:[#allocation37_spill] sm:$0xff]  ;;  %v5010_v20 = vld [vmem:[#allocation54_spill] sm:$0xff]  ;;  %v5014_v45 = vld [vmem:[#allocation44_spill] sm:$0xff] }
 0x6ca   :  { %v2963_v21 = vadd.f32 %v2919_v12, %v2803_v47  ;;  %v2171_v47 = vadd.f32 %v4995_v26, %v2011_v22  ;;  %v2489_v31 = vadd.f32 %v4996_v53, %v2329_v41  ;;  %v5009_v13 = vld [vmem:[#allocation33_spill] sm:$0xff]  ;;  %v5018_v53 = vld [vmem:[#allocation32_spill] sm:$0xff] }
 0x6cb   :  { %3000 = vrot.lane.b32.xlu0 %v2964_v16, %s3182_s3  ;;  %v2014_v12 = vadd.f32 %v4998_v17, %v1838_v5  ;;  %v4999_v16 = vld [vmem:[#allocation31_spill] sm:$0xff]  ;;  %v2650_v27 = vadd.f32 %v5000_v4, %v2490_v38  ;;  %v5016_v30 = vld [vmem:[#allocation41_spill] sm:$0xff] }
 0x6cc   :  { %2998 = vrot.lane.b32.xlu1 %v2963_v21, %s3182_s3  ;;  %v2925_v60 = vpop.permute.xlu0 %2924  ;;  %v2332_v42 = vadd.f32 %v4999_v16, %v2172_v51  ;;  %v5001_v21 = vld [vmem:[#allocation13_spill] sm:$0xff]  ;;  %v2331_v46 = vadd.f32 %v5002_v33, %v2171_v47  ;;  %v2649_v57 = vadd.f32 %v5003_v49, %v2489_v31  ;;  %v5020_v17 = vld [vmem:[#allocation43_spill] sm:$0xff] }
 0x6cd   :  { %v2923_v19 = vpop.permute.xlu1 %2922  ;;  %v2966_v35 = vadd.f32 %v2925_v60, %v2806_v1  ;;  %v2013_v24 = vadd.f32 %v5001_v21, %v1837_v9  ;;  %v5004_v1 = vld [vmem:[#allocation24_spill] sm:$0xff]  ;;  %v2810_v58 = vadd.f32 %v4743_v6, %v2650_v27  ;;  %v5008_v60 = vld [vmem:[#allocation39_spill] sm:$0xff]  ;;  %v5021_v27 = vld [vmem:[#allocation57_spill] sm:$0xff] }
 0x6ce   :  { %v2965_v32 = vadd.f32 %v2923_v19, %v2805_v44  ;;  %v2174_v55 = vadd.f32 %v5004_v1, %v2014_v12  ;;  %v2492_v52 = vadd.f32 %v5005_v7, %v2332_v42  ;;  %v2491_v37 = vadd.f32 %v5008_v60, %v2331_v46  ;;  %v5011_v6 = vld [vmem:[#allocation15_spill] sm:$0xff] }
 0x6cf   :  { %3004 = vrot.lane.b32.xlu0 %v2966_v35, %s3182_s3  ;;  %v2173_v44 = vadd.f32 %v5007_v40, %v2013_v24  ;;  %v2809_v34 = vadd.f32 %v4746_v3, %v2649_v57  ;;  %v2015_v22 = vadd.f32 %v5011_v6, %v1839_v0 }
 0x6d0   :  { %3002 = vrot.lane.b32.xlu1 %v2965_v32, %s3182_s3  ;;  %v2929_v2 = vpop.permute.xlu0 %2928  ;;  %v2334_v15 = vadd.f32 %v5009_v13, %v2174_v55  ;;  %v2652_v19 = vadd.f32 %v5010_v20, %v2492_v52  ;;  %v2651_v50 = vadd.f32 %v5013_v18, %v2491_v37 }
 0x6d1   :  { %v2927_v63 = vpop.permute.xlu1 %2926  ;;  %v2968_v8 = vadd.f32 %v2929_v2, %v2808_v48  ;;  %v2333_v41 = vadd.f32 %v5012_v10, %v2173_v44  ;;  %v2175_v51 = vadd.f32 %v5015_v61, %v2015_v22 }
 0x6d2   :  { %v2967_v25 = vadd.f32 %v2927_v63, %v2807_v14  ;;  %v2494_v5 = vadd.f32 %v5014_v45, %v2334_v15  ;;  %v2812_v3 = vadd.f32 %v4751_v62, %v2652_v19  ;;  %v2811_v29 = vadd.f32 %v4755_v36, %v2651_v50 }
 0x6d3   :  { %3008 = vrot.lane.b32.xlu0 %v2968_v8, %s3182_s3  ;;  %v2493_v38 = vadd.f32 %v5016_v30, %v2333_v41  ;;  %v2335_v31 = vadd.f32 %v5018_v53, %v2175_v51 }
 0x6d4   :  { %3006 = vrot.lane.b32.xlu1 %v2967_v25, %s3182_s3  ;;  %v2933_v28 = vpop.permute.xlu0 %2932  ;;  %v2654_v9 = vadd.f32 %v5017_v54, %v2494_v5 }
 0x6d5   :  { %v2931_v35 = vpop.permute.xlu1 %2930  ;;  %v2970_v43 = vadd.f32 %v2933_v28, %v2810_v58  ;;  %v2653_v14 = vadd.f32 %v5019_v23, %v2493_v38  ;;  %v2495_v12 = vadd.f32 %v5020_v17, %v2335_v31 }
 0x6d6   :  { %v2969_v32 = vadd.f32 %v2931_v35, %v2809_v34  ;;  %v2814_v2 = vadd.f32 %v4763_v56, %v2654_v9 }
 0x6d7   :  { %3012 = vrot.lane.b32.xlu0 %v2970_v43, %s3182_s3  ;;  %v2813_v36 = vadd.f32 %v4768_v39, %v2653_v14  ;;  %v2655_v63 = vadd.f32 %v5021_v27, %v2495_v12 }
 0x6d8   :  { %3010 = vrot.lane.b32.xlu1 %v2969_v32, %s3182_s3  ;;  %v2937_v48 = vpop.permute.xlu0 %2936 }
 0x6d9   :  { %v2935_v26 = vpop.permute.xlu1 %2934  ;;  %v2972_v47 = vadd.f32 %v2937_v48, %v2812_v3  ;;  %v2815_v21 = vadd.f32 %v4781_v11, %v2655_v63 }
 0x6da   :  { %v2971_v62 = vadd.f32 %v2935_v26, %v2811_v29 }
 0x6db   :  { %3016 = vrot.lane.b32.xlu0 %v2972_v47, %s3182_s3 }
 0x6dc   :  { %3014 = vrot.lane.b32.xlu1 %v2971_v62, %s3182_s3  ;;  %v2941_v16 = vpop.permute.xlu0 %2940 }
 0x6dd   :  { %v2939_v42 = vpop.permute.xlu1 %2938  ;;  %v2974_v4 = vadd.f32 %v2941_v16, %v2814_v2 }
 0x6de   :  { %v2973_v8 = vadd.f32 %v2939_v42, %v2813_v36 }
 0x6df   :  { %3020 = vrot.lane.b32.xlu0 %v2974_v4, %s3182_s3 }
 0x6e0   :  { %3018 = vrot.lane.b32.xlu1 %v2973_v8, %s3182_s3 }
 0x6e1   :  { %v2943_v56 = vpop.permute.xlu1 %2942 }
 0x6e2   :  { %v2975_v24 = vadd.f32 %v2943_v56, %v2815_v21 }
 0x6e4   :  { %3022 = vrot.lane.b32.xlu1 %v2975_v24, %s3182_s3 }
 0x735   :  { %v2993_v33 = vpop.permute.xlu0 %2992 }
 0x736   :  { %3040 = vst.msk [vmem:[#allocation7] sm:$0xff] %vm39_vm0, %v2993_v33 }
 0x739   :  { %v2997_v39 = vpop.permute.xlu0 %2996 }
 0x73a   :  { %v2995_v46 = vpop.permute.xlu1 %2994  ;;  %3042 = vst.msk [vmem:[#allocation7 + $0x10] sm:$0xff] %vm39_vm0, %v2997_v39 }
 0x73b   :  { %3041 = vst.msk [vmem:[#allocation7 + $0x8] sm:$0xff] %vm39_vm0, %v2995_v46 }
 0x73d   :  { %v3001_v49 = vpop.permute.xlu0 %3000 }
 0x73e   :  { %v2999_v57 = vpop.permute.xlu1 %2998  ;;  %3044 = vst.msk [vmem:[#allocation7 + $0x20] sm:$0xff] %vm39_vm0, %v3001_v49 }
 0x73f   :  { %3043 = vst.msk [vmem:[#allocation7 + $0x18] sm:$0xff] %vm39_vm0, %v2999_v57 }
 0x741   :  { %v3005_v11 = vpop.permute.xlu0 %3004 }
 0x742   :  { %v3003_v25 = vpop.permute.xlu1 %3002  ;;  %3046 = vst.msk [vmem:[#allocation7 + $0x30] sm:$0xff] %vm39_vm0, %v3005_v11 }
 0x743   :  { %3045 = vst.msk [vmem:[#allocation7 + $0x28] sm:$0xff] %vm39_vm0, %v3003_v25 }
 0x745   :  { %v3009_v1 = vpop.permute.xlu0 %3008 }
 0x746   :  { %v3007_v55 = vpop.permute.xlu1 %3006  ;;  %3048 = vst.msk [vmem:[#allocation7 + $0x40] sm:$0xff] %vm39_vm0, %v3009_v1 }
 0x747   :  { %3047 = vst.msk [vmem:[#allocation7 + $0x38] sm:$0xff] %vm39_vm0, %v3007_v55 }
 0x749   :  { %v3013_v7 = vpop.permute.xlu0 %3012 }
 0x74a   :  { %v3011_v52 = vpop.permute.xlu1 %3010  ;;  %3050 = vst.msk [vmem:[#allocation7 + $0x50] sm:$0xff] %vm39_vm0, %v3013_v7 }
 0x74b   :  { %3049 = vst.msk [vmem:[#allocation7 + $0x48] sm:$0xff] %vm39_vm0, %v3011_v52 }
 0x74d   :  { %v3017_v58 = vpop.permute.xlu0 %3016 }
 0x74e   :  { %v3015_v59 = vpop.permute.xlu1 %3014  ;;  %3052 = vst.msk [vmem:[#allocation7 + $0x60] sm:$0xff] %vm39_vm0, %v3017_v58 }
 0x74f   :  { %3051 = vst.msk [vmem:[#allocation7 + $0x58] sm:$0xff] %vm39_vm0, %v3015_v59 }
 0x751   :  { %v3021_v0 = vpop.permute.xlu0 %3020 }
 0x752   :  { %v3019_v40 = vpop.permute.xlu1 %3018  ;;  %3054 = vst.msk [vmem:[#allocation7 + $0x70] sm:$0xff] %vm39_vm0, %v3021_v0 }
 0x753   :  { %3053 = vst.msk [vmem:[#allocation7 + $0x68] sm:$0xff] %vm39_vm0, %v3019_v40 }
 0x756   :  { %v3023_v44 = vpop.permute.xlu1 %3022 }
 0x757   :  { %3055 = vst.msk [vmem:[#allocation7 + $0x78] sm:$0xff] %vm39_vm0, %v3023_v44 }
 0x758   :  { %3151 = shalt.err (!%p3148_p12)
}
 0x759   :  { %s3152_s21 = scalar_lea.hbm %s4913_s1, 2048 }
 0x75a   :  { %p3153_p13 = scmp.ne.s32.totalorder %s4913_s1, %s3152_s21  ;;  %p3156_p0 = scmp.lt.u32.totalorder %s3152_s21, %s4913_s1 }
 0x75c   :  { %p3158_p1 = pnand %p3156_p0, %p3153_p13 }
 0x75e   :  { %3161 = shalt.err (!%p3158_p1)
}
 0x75f   :  { %3067 = dma.vmem_to_hbm [thread:$0]  %s3062_s18, 2048, %s4913_s1, [#allocation6], %s3167_s16, %s3167_s16, %s3168_s17  }
 0x760   :  { %3164 = dma.done.wait [#allocation6], 2048  }
 0x761   :  { %3165 = vsyncadd [#allocation6], 4294965248 }
 0x762   :  { %3071 = vsyncpa [#allocation5], 1 }
 0x763   :  { %3072 = vsyncpa [#allocation6], 1 }

</bundles_post_ra>
